<compile_context>
chip_gen: v7x
topology: tpu7x:2x2x1
jax: 0.10.0
libtpu: 0.0.40
codegen_flags: <defaults>
</compile_context>

<pallas_src>
import jax
import jax.numpy as jnp
import numpy as np
from jax import lax
from jax.experimental import pallas as pl
from jax.experimental.pallas import tpu as pltpu

LANE = 128                       # channel dims padded to a multiple of this
_VMEM_LIMIT = 32 * 1024 * 1024   # explicit scoped-VMEM budget (safe on v5e/v6e/v7x)


def _round_up(x, m):
    return ((x + m - 1) // m) * m


# ---------------------------------------------------------------------------
# Kernel 1: tiled (im2col patches @ weight) + bias + optional ReLU
# ---------------------------------------------------------------------------
def _make_mm_kernel(relu_out):
    def kernel(a_ref, w_ref, b_ref, o_ref, acc_ref):
        @pl.when(pl.program_id(2) == 0)
        def _():
            acc_ref[...] = jnp.zeros_like(acc_ref)

        acc_ref[...] += jnp.dot(a_ref[...], w_ref[...],
                                preferred_element_type=jnp.float32)

        @pl.when(pl.program_id(2) == pl.num_programs(2) - 1)
        def _():
            out = acc_ref[...] + b_ref[...]
            if relu_out:
                out = jnp.maximum(out, 0.0)
            o_ref[...] = out.astype(o_ref.dtype)

    return kernel


def matmul_bias_act(patches, w, bias, *, relu_out, out_dtype=jnp.bfloat16):
    """patches: (M, K) bf16, w: (K, Np) bf16 with Np % 128 == 0, bias: (1, Np) f32."""
    M, K = patches.shape
    Np = w.shape[1]
    assert Np % LANE == 0

    tm = min(_round_up(M, 8), 1024)
    Mp = _round_up(M, tm)
    if Mp != M:
        patches = jnp.pad(patches, ((0, Mp - M), (0, 0)))
    Kp = _round_up(K, LANE)
    if Kp != K:
        patches = jnp.pad(patches, ((0, 0), (0, Kp - K)))
        w = jnp.pad(w, ((0, Kp - K), (0, 0)))
    tk = 512 if Kp % 512 == 0 else (256 if Kp % 256 == 0 else LANE)
    tn = LANE

    grid = (Mp // tm, Np // tn, Kp // tk)
    out = pl.pallas_call(
        _make_mm_kernel(relu_out),
        out_shape=jax.ShapeDtypeStruct((Mp, Np), out_dtype),
        grid_spec=pltpu.PrefetchScalarGridSpec(
            num_scalar_prefetch=0,
            grid=grid,
            in_specs=[
                pl.BlockSpec((tm, tk), lambda i, j, k: (i, k)),
                pl.BlockSpec((tk, tn), lambda i, j, k: (k, j)),
                pl.BlockSpec((1, tn), lambda i, j, k: (0, j)),
            ],
            out_specs=pl.BlockSpec((tm, tn), lambda i, j, k: (i, j)),
            scratch_shapes=[pltpu.VMEM((tm, tn), jnp.float32)],
        ),
        compiler_params=pltpu.CompilerParams(
            dimension_semantics=("parallel", "parallel", "arbitrary"),
            vmem_limit_bytes=_VMEM_LIMIT),
    )(patches, w, bias)
    return out[:M] if Mp != M else out


# ---------------------------------------------------------------------------
# conv1/conv2: im2col (JAX glue, bf16, TRUE channel count) + tiled Pallas matmul
# ---------------------------------------------------------------------------
def _im2col(x_nhwc, kh, kw, stride, pad):
    N, H, W, C = x_nhwc.shape
    xp = jnp.pad(x_nhwc, ((0, 0), (pad, pad), (pad, pad), (0, 0)))
    Ho = (H + 2 * pad - kh) // stride + 1
    Wo = (W + 2 * pad - kw) // stride + 1
    taps = []
    for i in range(kh):
        for j in range(kw):
            taps.append(xp[:, i:i + stride * Ho:stride, j:j + stride * Wo:stride, :])
    p = jnp.concatenate(taps, axis=-1)               # (N, Ho, Wo, kh*kw*C)
    return p.reshape(N * Ho * Wo, kh * kw * C), (N, Ho, Wo)


def conv2d_downsample(x_nhwc, w, b, *, stride, pad, relu_out):
    """x_nhwc carries its TRUE channel count (no 128-padding) so the im2col
    reduction dim stays small.  Output channels padded to 128 (lane-dense),
    stored bf16."""
    KH, KW, Cin, Cout = w.shape
    assert x_nhwc.shape[-1] == Cin
    Np = _round_up(Cout, LANE)
    wp = jnp.pad(w, ((0, 0), (0, 0), (0, 0), (0, Np - Cout)))
    bias = jnp.pad(b, (0, Np - Cout)).reshape(1, Np).astype(jnp.float32)

    patches, (N, Ho, Wo) = _im2col(x_nhwc.astype(jnp.bfloat16), KH, KW, stride, pad)
    w2 = wp.reshape(KH * KW * Cin, Np).astype(jnp.bfloat16)
    out = matmul_bias_act(patches, w2, bias, relu_out=relu_out,
                          out_dtype=jnp.bfloat16)
    return out.reshape(N, Ho, Wo, Np)


# ---------------------------------------------------------------------------
# Kernel 2: fused conv3 (3x3, bias) + full residual stack + final ReLU
#           — one pallas_call, x resident in VMEM, whole-plane per-tap matmuls
# ---------------------------------------------------------------------------
def _make_stack_kernel(H, W, Cp, Rp, L):
    Wp = W + 2                 # padded width
    HP = H + 3                 # 1 top + 2 bottom padding rows (tap over-read slack)
    M = H * Wp                 # rows of the padded-width accumulator plane
    R0 = Wp + 1                # plane offset of valid pixel (0, 0)

    def kernel(*refs):
        it = iter(refs)
        xin_ref = next(it)                       # (1, HP*Wp, Cp) bf16   conv2 output (padded plane)
        w3_ref = next(it)                        # (9, Cp, Cp)   bf16
        b3_ref = next(it)                        # (1, Cp)       f32
        w1_ref = next(it) if L > 0 else None     # (L*9, Cp, Rp) bf16
        w2_ref = next(it) if L > 0 else None     # (L*Rp, Cp)    bf16
        o_ref = next(it)                         # (1, HP*Wp, Cp) f32
        xs_ref = next(it)                        # scratch (HP*Wp, Cp) f32  tap source
        xp_ref = next(it)                        # scratch (HP*Wp, Cp) f32  resident x

        # Valid-column mask for the padded-width accumulator layout
        # (row r = y*Wp + x is valid iff x < W; junk columns land on zero borders).
        row = lax.broadcasted_iota(jnp.int32, (M, Cp), 0)
        valid = (row % Wp) < W

        # ---------------- conv3: 9 whole-plane per-tap matmuls ----------------
        xs_ref[...] = xin_ref[0].astype(jnp.float32)
        acc = jnp.zeros((M, Cp), jnp.float32)
        for t in range(9):
            off = (t // 3) * Wp + (t % 3)
            a = xs_ref[off:off + M, :].astype(jnp.bfloat16)
            acc += jnp.dot(a, w3_ref[t], preferred_element_type=jnp.float32)
        acc += b3_ref[...]
        xp_ref[...] = jnp.zeros_like(xp_ref)                 # zero padding borders
        xp_ref[R0:R0 + M, :] = jnp.where(valid, acc, 0.0)

        # ---------------- residual blocks (x stays resident in VMEM) ----------
        for i in range(L):
            xs_ref[...] = jnp.maximum(xp_ref[...], 0.0)      # ReLU-in, borders stay 0
            hacc = jnp.zeros((M, Rp), jnp.float32)
            for t in range(9):
                off = (t // 3) * Wp + (t % 3)
                a = xs_ref[off:off + M, :].astype(jnp.bfloat16)
                hacc += jnp.dot(a, w1_ref[i * 9 + t],
                                preferred_element_type=jnp.float32)
            h = jnp.maximum(hacc, 0.0).astype(jnp.bfloat16)  # never leaves VMEM/vregs
            delta = jnp.dot(h, w2_ref[i * Rp:(i + 1) * Rp, :],
                            preferred_element_type=jnp.float32)
            xp_ref[R0:R0 + M, :] = (xp_ref[R0:R0 + M, :]
                                    + jnp.where(valid, delta, 0.0))

        # ---------------- final ReLU of the ResidualStack ---------------------
        o_ref[0] = jnp.maximum(xp_ref[...], 0.0).astype(o_ref.dtype)

    return kernel


def conv3_residual_stack(x_nhwc, w3, b3, res_params):
    """x_nhwc: (N, H, W, Cp) bf16 with channels zero-padded to 128.
    Runs conv3 + every residual block + final ReLU in a single pallas_call."""
    N, H, W, Cp = x_nhwc.shape
    nh = w3.shape[3]
    L = len(res_params)
    Rp = _round_up(res_params[0]["w1"].shape[3], LANE) if L > 0 else LANE
    Wp, HP = W + 2, H + 3
    rows = HP * Wp

    # Spatial zero-pad: 1 top, 2 bottom, 1 left, 1 right (extra bottom row =
    # slack for the whole-plane tap slices); flatten to a (rows, Cp) plane.
    xp = jnp.pad(x_nhwc, ((0, 0), (1, 2), (1, 1), (0, 0))).reshape(N, rows, Cp)

    w3p = jnp.pad(w3, ((0, 0), (0, 0), (0, Cp - w3.shape[2]), (0, Cp - nh)))
    w3p = w3p.reshape(9, Cp, Cp).astype(jnp.bfloat16)
    b3p = jnp.pad(b3, (0, Cp - nh)).reshape(1, Cp).astype(jnp.float32)

    inputs = [xp, w3p, b3p]
    in_specs = [
        pl.BlockSpec((1, rows, Cp), lambda n: (n, 0, 0)),
        pl.BlockSpec((9, Cp, Cp), lambda n: (0, 0, 0)),
        pl.BlockSpec((1, Cp), lambda n: (0, 0)),
    ]
    if L > 0:
        w1s, w2s = [], []
        for layer in res_params:
            w1, w2 = layer["w1"], layer["w2"]              # (3,3,nh,nrh), (1,1,nrh,nh)
            nrh = w1.shape[3]
            w1p = jnp.pad(w1, ((0, 0), (0, 0),
                               (0, Cp - w1.shape[2]), (0, Rp - nrh)))
            w1s.append(w1p.reshape(9, Cp, Rp))
            w2s.append(jnp.pad(w2[0, 0], ((0, Rp - nrh), (0, Cp - w2.shape[3]))))
        W1 = jnp.concatenate(w1s, axis=0).astype(jnp.bfloat16)   # (L*9, Cp, Rp)
        W2 = jnp.concatenate(w2s, axis=0).astype(jnp.bfloat16)   # (L*Rp, Cp)
        inputs += [W1, W2]
        in_specs += [
            pl.BlockSpec((L * 9, Cp, Rp), lambda n: (0, 0, 0)),
            pl.BlockSpec((L * Rp, Cp), lambda n: (0, 0)),
        ]

    out = pl.pallas_call(
        _make_stack_kernel(H, W, Cp, Rp, L),
        out_shape=jax.ShapeDtypeStruct((N, rows, Cp), jnp.float32),
        grid_spec=pltpu.PrefetchScalarGridSpec(
            num_scalar_prefetch=0,
            grid=(N,),
            in_specs=in_specs,
            out_specs=pl.BlockSpec((1, rows, Cp), lambda n: (n, 0, 0)),
            scratch_shapes=[pltpu.VMEM((rows, Cp), jnp.float32),   # tap source
                            pltpu.VMEM((rows, Cp), jnp.float32)],  # resident x
        ),
        compiler_params=pltpu.CompilerParams(
            dimension_semantics=("parallel",),
            vmem_limit_bytes=_VMEM_LIMIT),
    )(*inputs)
    out = out.reshape(N, HP, Wp, Cp)[:, 1:H + 1, 1:W + 1, :]
    return out


# ---------------------------------------------------------------------------
# Encoder parameters (deterministic synthetic init) + forward
# ---------------------------------------------------------------------------
def init_encoder_params(key, in_channels, num_hiddens, num_residual_layers,
                        num_residual_hiddens):
    n_keys = 6 + 2 * num_residual_layers
    keys = jax.random.split(key, max(n_keys, 2))
    k = iter(keys)

    def w(kk, kh, kw, cin, cout):
        return 0.1 * jax.random.normal(kk, (kh, kw, cin, cout), jnp.float32)

    def b(kk, cout):
        return 0.1 * jax.random.normal(kk, (cout,), jnp.float32)

    params = {
        "conv1_w": w(next(k), 4, 4, in_channels, num_hiddens // 2),
        "conv1_b": b(next(k), num_hiddens // 2),
        "conv2_w": w(next(k), 4, 4, num_hiddens // 2, num_hiddens),
        "conv2_b": b(next(k), num_hiddens),
        "conv3_w": w(next(k), 3, 3, num_hiddens, num_hiddens),
        "conv3_b": b(next(k), num_hiddens),
        "res": [],
    }
    for _ in range(num_residual_layers):
        params["res"].append({
            "w1": w(next(k), 3, 3, num_hiddens, num_residual_hiddens),  # 3x3, no bias
            "w2": w(next(k), 1, 1, num_residual_hiddens, num_hiddens),  # 1x1, no bias
        })
    return params


def encoder_forward(params, x_nchw):
    nh = params["conv3_w"].shape[3]
    x = jnp.transpose(x_nchw, (0, 2, 3, 1)).astype(jnp.float32)   # NCHW -> NHWC

    # conv1 + ReLU (im2col K = 4*4*in_channels), output bf16, 128-padded chans
    x = conv2d_downsample(x, params["conv1_w"], params["conv1_b"],
                          stride=2, pad=1, relu_out=True)
    # Drop the channel padding BEFORE conv2's im2col: K = 4*4*(nh//2) = 256, not 2048.
    x = x[..., : nh // 2]
    # conv2 + ReLU, output bf16, 128-padded channels (zeros in the pad)
    x = conv2d_downsample(x, params["conv2_w"], params["conv2_b"],
                          stride=2, pad=1, relu_out=True)
    # conv3 + full residual stack + final ReLU: ONE pallas_call.
    x = conv3_residual_stack(x, params["conv3_w"], params["conv3_b"], params["res"])
    x = x[..., :nh]                              # drop channel padding
    return jnp.transpose(x, (0, 3, 1, 2))        # NHWC -> NCHW


# ---------------------------------------------------------------------------
# Pure-JAX reference (lax.conv) with the same bf16-MXU / f32-accumulate policy
# ---------------------------------------------------------------------------
def _ref_conv(x, w, b=None, stride=1, pad=0):
    out = jax.lax.conv_general_dilated(
        x.astype(jnp.bfloat16), w.astype(jnp.bfloat16),
        (stride, stride), ((pad, pad), (pad, pad)),
        dimension_numbers=("NHWC", "HWIO", "NHWC"),
        preferred_element_type=jnp.float32)
    if b is not None:
        out = out + b
    return out


def encoder_forward_ref(params, x_nchw):
    x = jnp.transpose(x_nchw, (0, 2, 3, 1))
    x = jax.nn.relu(_ref_conv(x, params["conv1_w"], params["conv1_b"], 2, 1))
    x = jax.nn.relu(_ref_conv(x, params["conv2_w"], params["conv2_b"], 2, 1))
    x = _ref_conv(x, params["conv3_w"], params["conv3_b"], 1, 1)
    for layer in params["res"]:
        h = jax.nn.relu(_ref_conv(jax.nn.relu(x), layer["w1"], None, 1, 1))
        x = x + _ref_conv(h, layer["w2"], None, 1, 0)
    x = jax.nn.relu(x)
    return jnp.transpose(x, (0, 3, 1, 2))


# ---------------------------------------------------------------------------
if __name__ == "__main__":
    in_channels = 3
    num_hiddens = 32
    num_residual_layers = 2
    num_residual_hiddens = 8
    batch, spatial = 2, 16

    key = jax.random.PRNGKey(0)
    k_par, k_x = jax.random.split(key)
    params = init_encoder_params(k_par, in_channels, num_hiddens,
                                 num_residual_layers, num_residual_hiddens)
    x = jax.random.normal(k_x, (batch, in_channels, spatial, spatial), jnp.float32)

    out = jax.jit(encoder_forward)(params, x)
    out = jax.block_until_ready(out)

    ref = jax.block_until_ready(encoder_forward_ref(params, x))
    assert out.shape == (batch, num_hiddens, spatial // 4, spatial // 4), out.shape
    np.testing.assert_allclose(np.asarray(out), np.asarray(ref),
                               rtol=1e-2, atol=1e-2)

    print("KERNEL_OK")
</pallas_src>

<mosaic_0001>
module attributes {stable_mosaic.version = 11 : i64} {
  func.func @kernel(%arg0: i32, %arg1: i32, %arg2: i32, %arg3: memref<128x128xbf16, #tpu.memory_space<vmem>>, %arg4: memref<128x128xbf16, #tpu.memory_space<vmem>>, %arg5: memref<1x128xf32, #tpu.memory_space<vmem>>, %arg6: memref<128x128xbf16, #tpu.memory_space<vmem>>, %arg7: memref<128x128xf32, #tpu.memory_space<vmem>>) attributes {dimension_semantics = [#tpu.dimension_semantics<parallel>, #tpu.dimension_semantics<parallel>, #tpu.dimension_semantics<arbitrary>], iteration_bounds = array<i64: 1, 1, 1>, scalar_prefetch = 0 : i64, scratch_operands = 1 : i64, tpu.core_type = #tpu.core_type<tc>, window_params = [{transform_indices = @transform_0, window_bounds = array<i64: 128, 128>}, {transform_indices = @transform_1, window_bounds = array<i64: 128, 128>}, {transform_indices = @transform_2, window_bounds = array<i64: 1, 128>}, {transform_indices = @transform_3, window_bounds = array<i64: 128, 128>}]} {
    %c0_i32 = arith.constant 0 : i32
    %0 = arith.cmpi eq, %arg2, %c0_i32 : i32
    %1 = arith.extui %0 : i1 to i32
    %c0_i32_0 = arith.constant 0 : i32
    %2 = arith.cmpi ne, %1, %c0_i32_0 : i32
    scf.if %2 {
      %cst_10 = arith.constant 0.000000e+00 : f32
      %12 = vector.broadcast %cst_10 : f32 to vector<128x128xf32>
      %c0_11 = arith.constant 0 : index
      %c0_12 = arith.constant 0 : index
      %13 = vector.load %arg7[%c0_11, %c0_12] : memref<128x128xf32, #tpu.memory_space<vmem>>, vector<128x128xf32>
      tpu.vector_store %arg7[%c0_11, %c0_12], %12 {strides = array<i32>} : memref<128x128xf32, #tpu.memory_space<vmem>>, vector<128x128xf32>,
    } else {
    }
    %c0 = arith.constant 0 : index
    %c0_1 = arith.constant 0 : index
    %3 = vector.load %arg7[%c0, %c0_1] : memref<128x128xf32, #tpu.memory_space<vmem>>, vector<128x128xf32>
    %c0_2 = arith.constant 0 : index
    %c0_3 = arith.constant 0 : index
    %4 = vector.load %arg3[%c0_2, %c0_3] : memref<128x128xbf16, #tpu.memory_space<vmem>>, vector<128x128xbf16>
    %c0_4 = arith.constant 0 : index
    %c0_5 = arith.constant 0 : index
    %5 = vector.load %arg4[%c0_4, %c0_5] : memref<128x128xbf16, #tpu.memory_space<vmem>>, vector<128x128xbf16>
    %cst = arith.constant dense<0.000000e+00> : vector<128x128xf32>
    %6 = tpu.matmul %4, %5, %cst {dimension_numbers = #tpu.dot_dimension_numbers<[1], [0], [0], [1], [0, 0, 1, 1], [], []>} : vector<128x128xbf16>, vector<128x128xbf16>, vector<128x128xf32> -> vector<128x128xf32>
    %7 = arith.addf %3, %6 : vector<128x128xf32>
    %c0_6 = arith.constant 0 : index
    %c0_7 = arith.constant 0 : index
    %8 = vector.load %arg7[%c0_6, %c0_7] : memref<128x128xf32, #tpu.memory_space<vmem>>, vector<128x128xf32>
    tpu.vector_store %arg7[%c0_6, %c0_7], %7 {strides = array<i32>} : memref<128x128xf32, #tpu.memory_space<vmem>>, vector<128x128xf32>,
    %c0_i32_8 = arith.constant 0 : i32
    %9 = arith.cmpi eq, %arg2, %c0_i32_8 : i32
    %10 = arith.extui %9 : i1 to i32
    %c0_i32_9 = arith.constant 0 : i32
    %11 = arith.cmpi ne, %10, %c0_i32_9 : i32
    scf.if %11 {
      %c0_10 = arith.constant 0 : index
      %c0_11 = arith.constant 0 : index
      %12 = vector.load %arg7[%c0_10, %c0_11] : memref<128x128xf32, #tpu.memory_space<vmem>>, vector<128x128xf32>
      %c0_12 = arith.constant 0 : index
      %c0_13 = arith.constant 0 : index
      %13 = vector.load %arg5[%c0_12, %c0_13] : memref<1x128xf32, #tpu.memory_space<vmem>>, vector<1x128xf32>
      %14 = vector.broadcast %13 : vector<1x128xf32> to vector<128x128xf32>
      %15 = arith.addf %12, %14 : vector<128x128xf32>
      %cst_14 = arith.constant 0.000000e+00 : f32
      %16 = vector.broadcast %cst_14 : f32 to vector<128x128xf32>
      %17 = arith.maximumf %15, %16 : vector<128x128xf32>
      %18 = arith.truncf %17 : vector<128x128xf32> to vector<128x128xbf16>
      %c0_15 = arith.constant 0 : index
      %c0_16 = arith.constant 0 : index
      %19 = vector.load %arg6[%c0_15, %c0_16] : memref<128x128xbf16, #tpu.memory_space<vmem>>, vector<128x128xbf16>
      tpu.vector_store %arg6[%c0_15, %c0_16], %18 {strides = array<i32>} : memref<128x128xbf16, #tpu.memory_space<vmem>>, vector<128x128xbf16>,
    } else {
    }
    return
  }
  func.func @transform_0(%arg0: i32, %arg1: i32, %arg2: i32) -> (i32, i32) {
    %c0_i32 = arith.constant 0 : i32
    return %arg0, %arg2 : i32, i32
  }
  func.func @transform_1(%arg0: i32, %arg1: i32, %arg2: i32) -> (i32, i32) {
    %c0_i32 = arith.constant 0 : i32
    return %arg2, %arg1 : i32, i32
  }
  func.func @transform_2(%arg0: i32, %arg1: i32, %arg2: i32) -> (i32, i32) {
    %c0_i32 = arith.constant 0 : i32
    %c0_i32_0 = arith.constant 0 : i32
    return %c0_i32, %arg1 : i32, i32
  }
  func.func @transform_3(%arg0: i32, %arg1: i32, %arg2: i32) -> (i32, i32) {
    %c0_i32 = arith.constant 0 : i32
    return %arg0, %arg1 : i32, i32
  }
}

module attributes {stable_mosaic.version = 11 : i64} {
  func.func @kernel(%arg0: i32, %arg1: i32, %arg2: i32, %arg3: memref<32x256xbf16, #tpu.memory_space<vmem>>, %arg4: memref<256x128xbf16, #tpu.memory_space<vmem>>, %arg5: memref<1x128xf32, #tpu.memory_space<vmem>>, %arg6: memref<32x128xbf16, #tpu.memory_space<vmem>>, %arg7: memref<32x128xf32, #tpu.memory_space<vmem>>) attributes {dimension_semantics = [#tpu.dimension_semantics<parallel>, #tpu.dimension_semantics<parallel>, #tpu.dimension_semantics<arbitrary>], iteration_bounds = array<i64: 1, 1, 1>, scalar_prefetch = 0 : i64, scratch_operands = 1 : i64, tpu.core_type = #tpu.core_type<tc>, window_params = [{transform_indices = @transform_0, window_bounds = array<i64: 32, 256>}, {transform_indices = @transform_1, window_bounds = array<i64: 256, 128>}, {transform_indices = @transform_2, window_bounds = array<i64: 1, 128>}, {transform_indices = @transform_3, window_bounds = array<i64: 32, 128>}]} {
    %c0_i32 = arith.constant 0 : i32
    %0 = arith.cmpi eq, %arg2, %c0_i32 : i32
    %1 = arith.extui %0 : i1 to i32
    %c0_i32_0 = arith.constant 0 : i32
    %2 = arith.cmpi ne, %1, %c0_i32_0 : i32
    scf.if %2 {
      %cst_10 = arith.constant 0.000000e+00 : f32
      %12 = vector.broadcast %cst_10 : f32 to vector<32x128xf32>
      %c0_11 = arith.constant 0 : index
      %c0_12 = arith.constant 0 : index
      %13 = vector.load %arg7[%c0_11, %c0_12] : memref<32x128xf32, #tpu.memory_space<vmem>>, vector<32x128xf32>
      tpu.vector_store %arg7[%c0_11, %c0_12], %12 {strides = array<i32>} : memref<32x128xf32, #tpu.memory_space<vmem>>, vector<32x128xf32>,
    } else {
    }
    %c0 = arith.constant 0 : index
    %c0_1 = arith.constant 0 : index
    %3 = vector.load %arg7[%c0, %c0_1] : memref<32x128xf32, #tpu.memory_space<vmem>>, vector<32x128xf32>
    %c0_2 = arith.constant 0 : index
    %c0_3 = arith.constant 0 : index
    %4 = vector.load %arg3[%c0_2, %c0_3] : memref<32x256xbf16, #tpu.memory_space<vmem>>, vector<32x256xbf16>
    %c0_4 = arith.constant 0 : index
    %c0_5 = arith.constant 0 : index
    %5 = vector.load %arg4[%c0_4, %c0_5] : memref<256x128xbf16, #tpu.memory_space<vmem>>, vector<256x128xbf16>
    %cst = arith.constant dense<0.000000e+00> : vector<32x128xf32>
    %6 = tpu.matmul %4, %5, %cst {dimension_numbers = #tpu.dot_dimension_numbers<[1], [0], [0], [1], [0, 0, 1, 1], [], []>} : vector<32x256xbf16>, vector<256x128xbf16>, vector<32x128xf32> -> vector<32x128xf32>
    %7 = arith.addf %3, %6 : vector<32x128xf32>
    %c0_6 = arith.constant 0 : index
    %c0_7 = arith.constant 0 : index
    %8 = vector.load %arg7[%c0_6, %c0_7] : memref<32x128xf32, #tpu.memory_space<vmem>>, vector<32x128xf32>
    tpu.vector_store %arg7[%c0_6, %c0_7], %7 {strides = array<i32>} : memref<32x128xf32, #tpu.memory_space<vmem>>, vector<32x128xf32>,
    %c0_i32_8 = arith.constant 0 : i32
    %9 = arith.cmpi eq, %arg2, %c0_i32_8 : i32
    %10 = arith.extui %9 : i1 to i32
    %c0_i32_9 = arith.constant 0 : i32
    %11 = arith.cmpi ne, %10, %c0_i32_9 : i32
    scf.if %11 {
      %c0_10 = arith.constant 0 : index
      %c0_11 = arith.constant 0 : index
      %12 = vector.load %arg7[%c0_10, %c0_11] : memref<32x128xf32, #tpu.memory_space<vmem>>, vector<32x128xf32>
      %c0_12 = arith.constant 0 : index
      %c0_13 = arith.constant 0 : index
      %13 = vector.load %arg5[%c0_12, %c0_13] : memref<1x128xf32, #tpu.memory_space<vmem>>, vector<1x128xf32>
      %14 = vector.broadcast %13 : vector<1x128xf32> to vector<32x128xf32>
      %15 = arith.addf %12, %14 : vector<32x128xf32>
      %cst_14 = arith.constant 0.000000e+00 : f32
      %16 = vector.broadcast %cst_14 : f32 to vector<32x128xf32>
      %17 = arith.maximumf %15, %16 : vector<32x128xf32>
      %18 = arith.truncf %17 : vector<32x128xf32> to vector<32x128xbf16>
      %c0_15 = arith.constant 0 : index
      %c0_16 = arith.constant 0 : index
      %19 = vector.load %arg6[%c0_15, %c0_16] : memref<32x128xbf16, #tpu.memory_space<vmem>>, vector<32x128xbf16>
      tpu.vector_store %arg6[%c0_15, %c0_16], %18 {strides = array<i32>} : memref<32x128xbf16, #tpu.memory_space<vmem>>, vector<32x128xbf16>,
    } else {
    }
    return
  }
  func.func @transform_0(%arg0: i32, %arg1: i32, %arg2: i32) -> (i32, i32) {
    %c0_i32 = arith.constant 0 : i32
    return %arg0, %arg2 : i32, i32
  }
  func.func @transform_1(%arg0: i32, %arg1: i32, %arg2: i32) -> (i32, i32) {
    %c0_i32 = arith.constant 0 : i32
    return %arg2, %arg1 : i32, i32
  }
  func.func @transform_2(%arg0: i32, %arg1: i32, %arg2: i32) -> (i32, i32) {
    %c0_i32 = arith.constant 0 : i32
    %c0_i32_0 = arith.constant 0 : i32
    return %c0_i32, %arg1 : i32, i32
  }
  func.func @transform_3(%arg0: i32, %arg1: i32, %arg2: i32) -> (i32, i32) {
    %c0_i32 = arith.constant 0 : i32
    return %arg0, %arg1 : i32, i32
  }
}

module attributes {stable_mosaic.version = 11 : i64} {
  func.func @kernel(%arg0: i32, %arg1: memref<1x42x128xbf16, #tpu.memory_space<vmem>>, %arg2: memref<9x128x128xbf16, #tpu.memory_space<vmem>>, %arg3: memref<1x128xf32, #tpu.memory_space<vmem>>, %arg4: memref<18x128x128xbf16, #tpu.memory_space<vmem>>, %arg5: memref<256x128xbf16, #tpu.memory_space<vmem>>, %arg6: memref<1x42x128xf32, #tpu.memory_space<vmem>>, %arg7: memref<42x128xf32, #tpu.memory_space<vmem>>, %arg8: memref<42x128xf32, #tpu.memory_space<vmem>>) attributes {dimension_semantics = [#tpu.dimension_semantics<parallel>], iteration_bounds = array<i64: 2>, scalar_prefetch = 0 : i64, scratch_operands = 2 : i64, tpu.core_type = #tpu.core_type<tc>, window_params = [{transform_indices = @transform_0, window_bounds = array<i64: 1, 42, 128>}, {pipeline_mode = #tpu.pipeline_mode<synchronous>, transform_indices = @transform_1, window_bounds = array<i64: 9, 128, 128>}, {pipeline_mode = #tpu.pipeline_mode<synchronous>, transform_indices = @transform_2, window_bounds = array<i64: 1, 128>}, {pipeline_mode = #tpu.pipeline_mode<synchronous>, transform_indices = @transform_3, window_bounds = array<i64: 18, 128, 128>}, {pipeline_mode = #tpu.pipeline_mode<synchronous>, transform_indices = @transform_4, window_bounds = array<i64: 256, 128>}, {transform_indices = @transform_5, window_bounds = array<i64: 1, 42, 128>}]} {
    %0 = tpu.iota {dimensions = array<i32: 0>} : vector<24x128xi32>
    %c6_i32 = arith.constant 6 : i32
    %c0_i32 = arith.constant 0 : i32
    %1 = arith.cmpi eq, %c6_i32, %c0_i32 : i32
    %c1_i32 = arith.constant 1 : i32
    %2 = arith.select %1, %c1_i32, %c6_i32 : i32
    %3 = vector.broadcast %2 : i32 to vector<24x128xi32>
    %4 = arith.remsi %0, %3 : vector<24x128xi32>
    %c0_i32_0 = arith.constant 0 : i32
    %5 = vector.broadcast %c0_i32_0 : i32 to vector<24x128xi32>
    %6 = arith.cmpi ne, %4, %5 : vector<24x128xi32>
    %c0_i32_1 = arith.constant 0 : i32
    %7 = vector.broadcast %c0_i32_1 : i32 to vector<24x128xi32>
    %8 = arith.cmpi slt, %4, %7 : vector<24x128xi32>
    %c0_i32_2 = arith.constant 0 : i32
    %9 = arith.cmpi slt, %2, %c0_i32_2 : i32
    %10 = vector.broadcast %9 : i1 to vector<24x128xi1>
    %11 = vector.broadcast %10 : vector<24x128xi1> to vector<24x128xi1>
    %12 = arith.xori %8, %11 : vector<24x128xi1>
    %13 = arith.andi %12, %6 : vector<24x128xi1>
    %14 = vector.broadcast %2 : i32 to vector<24x128xi32>
    %15 = arith.addi %4, %14 : vector<24x128xi32>
    %16 = arith.select %13, %15, %4 : vector<24x128xi1>, vector<24x128xi32>
    %c4_i32 = arith.constant 4 : i32
    %17 = vector.broadcast %c4_i32 : i32 to vector<24x128xi32>
    %18 = arith.cmpi slt, %16, %17 : vector<24x128xi32>
    %c0 = arith.constant 0 : index
    %c0_3 = arith.constant 0 : index
    %c0_4 = arith.constant 0 : index
    %19 = vector.load %arg1[%c0, %c0_3, %c0_4] : memref<1x42x128xbf16, #tpu.memory_space<vmem>>, vector<1x42x128xbf16>
    %20 = vector.shape_cast %19 : vector<1x42x128xbf16> to vector<42x128xbf16>
    %21 = arith.extf %20 : vector<42x128xbf16> to vector<42x128xf32>
    %c0_5 = arith.constant 0 : index
    %c0_6 = arith.constant 0 : index
    %22 = vector.load %arg7[%c0_5, %c0_6] : memref<42x128xf32, #tpu.memory_space<vmem>>, vector<42x128xf32>
    tpu.vector_store %arg7[%c0_5, %c0_6], %21 {strides = array<i32>} : memref<42x128xf32, #tpu.memory_space<vmem>>, vector<42x128xf32>,
    %cst = arith.constant 0.000000e+00 : f32
    %23 = vector.broadcast %cst : f32 to vector<24x128xf32>
    %c0_7 = arith.constant 0 : index
    %c0_8 = arith.constant 0 : index
    %24 = vector.load %arg7[%c0_7, %c0_8] : memref<42x128xf32, #tpu.memory_space<vmem>>, vector<24x128xf32>
    %25 = arith.truncf %24 : vector<24x128xf32> to vector<24x128xbf16>
    %c0_9 = arith.constant 0 : index
    %c0_10 = arith.constant 0 : index
    %c0_11 = arith.constant 0 : index
    %26 = vector.load %arg2[%c0_9, %c0_10, %c0_11] : memref<9x128x128xbf16, #tpu.memory_space<vmem>>, vector<1x128x128xbf16>
    %27 = vector.shape_cast %26 : vector<1x128x128xbf16> to vector<128x128xbf16>
    %cst_12 = arith.constant dense<0.000000e+00> : vector<24x128xf32>
    %28 = tpu.matmul %25, %27, %cst_12 {dimension_numbers = #tpu.dot_dimension_numbers<[1], [0], [0], [1], [0, 0, 1, 1], [], []>} : vector<24x128xbf16>, vector<128x128xbf16>, vector<24x128xf32> -> vector<24x128xf32>
    %29 = arith.addf %23, %28 : vector<24x128xf32>
    %c1 = arith.constant 1 : index
    %c0_13 = arith.constant 0 : index
    %30 = vector.load %arg7[%c1, %c0_13] : memref<42x128xf32, #tpu.memory_space<vmem>>, vector<24x128xf32>
    %31 = arith.truncf %30 : vector<24x128xf32> to vector<24x128xbf16>
    %c1_14 = arith.constant 1 : index
    %c0_15 = arith.constant 0 : index
    %c0_16 = arith.constant 0 : index
    %32 = vector.load %arg2[%c1_14, %c0_15, %c0_16] : memref<9x128x128xbf16, #tpu.memory_space<vmem>>, vector<1x128x128xbf16>
    %33 = vector.shape_cast %32 : vector<1x128x128xbf16> to vector<128x128xbf16>
    %cst_17 = arith.constant dense<0.000000e+00> : vector<24x128xf32>
    %34 = tpu.matmul %31, %33, %cst_17 {dimension_numbers = #tpu.dot_dimension_numbers<[1], [0], [0], [1], [0, 0, 1, 1], [], []>} : vector<24x128xbf16>, vector<128x128xbf16>, vector<24x128xf32> -> vector<24x128xf32>
    %35 = arith.addf %29, %34 : vector<24x128xf32>
    %c2 = arith.constant 2 : index
    %c0_18 = arith.constant 0 : index
    %36 = vector.load %arg7[%c2, %c0_18] : memref<42x128xf32, #tpu.memory_space<vmem>>, vector<24x128xf32>
    %37 = arith.truncf %36 : vector<24x128xf32> to vector<24x128xbf16>
    %c2_19 = arith.constant 2 : index
    %c0_20 = arith.constant 0 : index
    %c0_21 = arith.constant 0 : index
    %38 = vector.load %arg2[%c2_19, %c0_20, %c0_21] : memref<9x128x128xbf16, #tpu.memory_space<vmem>>, vector<1x128x128xbf16>
    %39 = vector.shape_cast %38 : vector<1x128x128xbf16> to vector<128x128xbf16>
    %cst_22 = arith.constant dense<0.000000e+00> : vector<24x128xf32>
    %40 = tpu.matmul %37, %39, %cst_22 {dimension_numbers = #tpu.dot_dimension_numbers<[1], [0], [0], [1], [0, 0, 1, 1], [], []>} : vector<24x128xbf16>, vector<128x128xbf16>, vector<24x128xf32> -> vector<24x128xf32>
    %41 = arith.addf %35, %40 : vector<24x128xf32>
    %c6 = arith.constant 6 : index
    %c0_23 = arith.constant 0 : index
    %42 = vector.load %arg7[%c6, %c0_23] : memref<42x128xf32, #tpu.memory_space<vmem>>, vector<24x128xf32>
    %43 = arith.truncf %42 : vector<24x128xf32> to vector<24x128xbf16>
    %c3 = arith.constant 3 : index
    %c0_24 = arith.constant 0 : index
    %c0_25 = arith.constant 0 : index
    %44 = vector.load %arg2[%c3, %c0_24, %c0_25] : memref<9x128x128xbf16, #tpu.memory_space<vmem>>, vector<1x128x128xbf16>
    %45 = vector.shape_cast %44 : vector<1x128x128xbf16> to vector<128x128xbf16>
    %cst_26 = arith.constant dense<0.000000e+00> : vector<24x128xf32>
    %46 = tpu.matmul %43, %45, %cst_26 {dimension_numbers = #tpu.dot_dimension_numbers<[1], [0], [0], [1], [0, 0, 1, 1], [], []>} : vector<24x128xbf16>, vector<128x128xbf16>, vector<24x128xf32> -> vector<24x128xf32>
    %47 = arith.addf %41, %46 : vector<24x128xf32>
    %c7 = arith.constant 7 : index
    %c0_27 = arith.constant 0 : index
    %48 = vector.load %arg7[%c7, %c0_27] : memref<42x128xf32, #tpu.memory_space<vmem>>, vector<24x128xf32>
    %49 = arith.truncf %48 : vector<24x128xf32> to vector<24x128xbf16>
    %c4 = arith.constant 4 : index
    %c0_28 = arith.constant 0 : index
    %c0_29 = arith.constant 0 : index
    %50 = vector.load %arg2[%c4, %c0_28, %c0_29] : memref<9x128x128xbf16, #tpu.memory_space<vmem>>, vector<1x128x128xbf16>
    %51 = vector.shape_cast %50 : vector<1x128x128xbf16> to vector<128x128xbf16>
    %cst_30 = arith.constant dense<0.000000e+00> : vector<24x128xf32>
    %52 = tpu.matmul %49, %51, %cst_30 {dimension_numbers = #tpu.dot_dimension_numbers<[1], [0], [0], [1], [0, 0, 1, 1], [], []>} : vector<24x128xbf16>, vector<128x128xbf16>, vector<24x128xf32> -> vector<24x128xf32>
    %53 = arith.addf %47, %52 : vector<24x128xf32>
    %c8 = arith.constant 8 : index
    %c0_31 = arith.constant 0 : index
    %54 = vector.load %arg7[%c8, %c0_31] : memref<42x128xf32, #tpu.memory_space<vmem>>, vector<24x128xf32>
    %55 = arith.truncf %54 : vector<24x128xf32> to vector<24x128xbf16>
    %c5 = arith.constant 5 : index
    %c0_32 = arith.constant 0 : index
    %c0_33 = arith.constant 0 : index
    %56 = vector.load %arg2[%c5, %c0_32, %c0_33] : memref<9x128x128xbf16, #tpu.memory_space<vmem>>, vector<1x128x128xbf16>
    %57 = vector.shape_cast %56 : vector<1x128x128xbf16> to vector<128x128xbf16>
    %cst_34 = arith.constant dense<0.000000e+00> : vector<24x128xf32>
    %58 = tpu.matmul %55, %57, %cst_34 {dimension_numbers = #tpu.dot_dimension_numbers<[1], [0], [0], [1], [0, 0, 1, 1], [], []>} : vector<24x128xbf16>, vector<128x128xbf16>, vector<24x128xf32> -> vector<24x128xf32>
    %59 = arith.addf %53, %58 : vector<24x128xf32>
    %c12 = arith.constant 12 : index
    %c0_35 = arith.constant 0 : index
    %60 = vector.load %arg7[%c12, %c0_35] : memref<42x128xf32, #tpu.memory_space<vmem>>, vector<24x128xf32>
    %61 = arith.truncf %60 : vector<24x128xf32> to vector<24x128xbf16>
    %c6_36 = arith.constant 6 : index
    %c0_37 = arith.constant 0 : index
    %c0_38 = arith.constant 0 : index
    %62 = vector.load %arg2[%c6_36, %c0_37, %c0_38] : memref<9x128x128xbf16, #tpu.memory_space<vmem>>, vector<1x128x128xbf16>
    %63 = vector.shape_cast %62 : vector<1x128x128xbf16> to vector<128x128xbf16>
    %cst_39 = arith.constant dense<0.000000e+00> : vector<24x128xf32>
    %64 = tpu.matmul %61, %63, %cst_39 {dimension_numbers = #tpu.dot_dimension_numbers<[1], [0], [0], [1], [0, 0, 1, 1], [], []>} : vector<24x128xbf16>, vector<128x128xbf16>, vector<24x128xf32> -> vector<24x128xf32>
    %65 = arith.addf %59, %64 : vector<24x128xf32>
    %c13 = arith.constant 13 : index
    %c0_40 = arith.constant 0 : index
    %66 = vector.load %arg7[%c13, %c0_40] : memref<42x128xf32, #tpu.memory_space<vmem>>, vector<24x128xf32>
    %67 = arith.truncf %66 : vector<24x128xf32> to vector<24x128xbf16>
    %c7_41 = arith.constant 7 : index
    %c0_42 = arith.constant 0 : index
    %c0_43 = arith.constant 0 : index
    %68 = vector.load %arg2[%c7_41, %c0_42, %c0_43] : memref<9x128x128xbf16, #tpu.memory_space<vmem>>, vector<1x128x128xbf16>
    %69 = vector.shape_cast %68 : vector<1x128x128xbf16> to vector<128x128xbf16>
    %cst_44 = arith.constant dense<0.000000e+00> : vector<24x128xf32>
    %70 = tpu.matmul %67, %69, %cst_44 {dimension_numbers = #tpu.dot_dimension_numbers<[1], [0], [0], [1], [0, 0, 1, 1], [], []>} : vector<24x128xbf16>, vector<128x128xbf16>, vector<24x128xf32> -> vector<24x128xf32>
    %71 = arith.addf %65, %70 : vector<24x128xf32>
    %c14 = arith.constant 14 : index
    %c0_45 = arith.constant 0 : index
    %72 = vector.load %arg7[%c14, %c0_45] : memref<42x128xf32, #tpu.memory_space<vmem>>, vector<24x128xf32>
    %73 = arith.truncf %72 : vector<24x128xf32> to vector<24x128xbf16>
    %c8_46 = arith.constant 8 : index
    %c0_47 = arith.constant 0 : index
    %c0_48 = arith.constant 0 : index
    %74 = vector.load %arg2[%c8_46, %c0_47, %c0_48] : memref<9x128x128xbf16, #tpu.memory_space<vmem>>, vector<1x128x128xbf16>
    %75 = vector.shape_cast %74 : vector<1x128x128xbf16> to vector<128x128xbf16>
    %cst_49 = arith.constant dense<0.000000e+00> : vector<24x128xf32>
    %76 = tpu.matmul %73, %75, %cst_49 {dimension_numbers = #tpu.dot_dimension_numbers<[1], [0], [0], [1], [0, 0, 1, 1], [], []>} : vector<24x128xbf16>, vector<128x128xbf16>, vector<24x128xf32> -> vector<24x128xf32>
    %77 = arith.addf %71, %76 : vector<24x128xf32>
    %c0_50 = arith.constant 0 : index
    %c0_51 = arith.constant 0 : index
    %78 = vector.load %arg3[%c0_50, %c0_51] : memref<1x128xf32, #tpu.memory_space<vmem>>, vector<1x128xf32>
    %79 = vector.broadcast %78 : vector<1x128xf32> to vector<24x128xf32>
    %80 = arith.addf %77, %79 : vector<24x128xf32>
    %cst_52 = arith.constant 0.000000e+00 : f32
    %81 = vector.broadcast %cst_52 : f32 to vector<42x128xf32>
    %c0_53 = arith.constant 0 : index
    %c0_54 = arith.constant 0 : index
    %82 = vector.load %arg8[%c0_53, %c0_54] : memref<42x128xf32, #tpu.memory_space<vmem>>, vector<42x128xf32>
    tpu.vector_store %arg8[%c0_53, %c0_54], %81 {strides = array<i32>} : memref<42x128xf32, #tpu.memory_space<vmem>>, vector<42x128xf32>,
    %cst_55 = arith.constant 0.000000e+00 : f32
    %83 = vector.broadcast %cst_55 : f32 to vector<24x128xf32>
    %84 = arith.select %18, %80, %83 : vector<24x128xi1>, vector<24x128xf32>
    %c7_56 = arith.constant 7 : index
    %c0_57 = arith.constant 0 : index
    %85 = vector.load %arg8[%c7_56, %c0_57] : memref<42x128xf32, #tpu.memory_space<vmem>>, vector<24x128xf32>
    tpu.vector_store %arg8[%c7_56, %c0_57], %84 {strides = array<i32>} : memref<42x128xf32, #tpu.memory_space<vmem>>, vector<24x128xf32>,
    %c0_58 = arith.constant 0 : index
    %c0_59 = arith.constant 0 : index
    %86 = vector.load %arg8[%c0_58, %c0_59] : memref<42x128xf32, #tpu.memory_space<vmem>>, vector<42x128xf32>
    %cst_60 = arith.constant 0.000000e+00 : f32
    %87 = vector.broadcast %cst_60 : f32 to vector<42x128xf32>
    %88 = arith.maximumf %86, %87 : vector<42x128xf32>
    %c0_61 = arith.constant 0 : index
    %c0_62 = arith.constant 0 : index
    %89 = vector.load %arg7[%c0_61, %c0_62] : memref<42x128xf32, #tpu.memory_space<vmem>>, vector<42x128xf32>
    tpu.vector_store %arg7[%c0_61, %c0_62], %88 {strides = array<i32>} : memref<42x128xf32, #tpu.memory_space<vmem>>, vector<42x128xf32>,
    %cst_63 = arith.constant 0.000000e+00 : f32
    %90 = vector.broadcast %cst_63 : f32 to vector<24x128xf32>
    %c0_64 = arith.constant 0 : index
    %c0_65 = arith.constant 0 : index
    %91 = vector.load %arg7[%c0_64, %c0_65] : memref<42x128xf32, #tpu.memory_space<vmem>>, vector<24x128xf32>
    %92 = arith.truncf %91 : vector<24x128xf32> to vector<24x128xbf16>
    %c0_66 = arith.constant 0 : index
    %c0_67 = arith.constant 0 : index
    %c0_68 = arith.constant 0 : index
    %93 = vector.load %arg4[%c0_66, %c0_67, %c0_68] : memref<18x128x128xbf16, #tpu.memory_space<vmem>>, vector<1x128x128xbf16>
    %94 = vector.shape_cast %93 : vector<1x128x128xbf16> to vector<128x128xbf16>
    %cst_69 = arith.constant dense<0.000000e+00> : vector<24x128xf32>
    %95 = tpu.matmul %92, %94, %cst_69 {dimension_numbers = #tpu.dot_dimension_numbers<[1], [0], [0], [1], [0, 0, 1, 1], [], []>} : vector<24x128xbf16>, vector<128x128xbf16>, vector<24x128xf32> -> vector<24x128xf32>
    %96 = arith.addf %90, %95 : vector<24x128xf32>
    %c1_70 = arith.constant 1 : index
    %c0_71 = arith.constant 0 : index
    %97 = vector.load %arg7[%c1_70, %c0_71] : memref<42x128xf32, #tpu.memory_space<vmem>>, vector<24x128xf32>
    %98 = arith.truncf %97 : vector<24x128xf32> to vector<24x128xbf16>
    %c1_72 = arith.constant 1 : index
    %c0_73 = arith.constant 0 : index
    %c0_74 = arith.constant 0 : index
    %99 = vector.load %arg4[%c1_72, %c0_73, %c0_74] : memref<18x128x128xbf16, #tpu.memory_space<vmem>>, vector<1x128x128xbf16>
    %100 = vector.shape_cast %99 : vector<1x128x128xbf16> to vector<128x128xbf16>
    %cst_75 = arith.constant dense<0.000000e+00> : vector<24x128xf32>
    %101 = tpu.matmul %98, %100, %cst_75 {dimension_numbers = #tpu.dot_dimension_numbers<[1], [0], [0], [1], [0, 0, 1, 1], [], []>} : vector<24x128xbf16>, vector<128x128xbf16>, vector<24x128xf32> -> vector<24x128xf32>
    %102 = arith.addf %96, %101 : vector<24x128xf32>
    %c2_76 = arith.constant 2 : index
    %c0_77 = arith.constant 0 : index
    %103 = vector.load %arg7[%c2_76, %c0_77] : memref<42x128xf32, #tpu.memory_space<vmem>>, vector<24x128xf32>
    %104 = arith.truncf %103 : vector<24x128xf32> to vector<24x128xbf16>
    %c2_78 = arith.constant 2 : index
    %c0_79 = arith.constant 0 : index
    %c0_80 = arith.constant 0 : index
    %105 = vector.load %arg4[%c2_78, %c0_79, %c0_80] : memref<18x128x128xbf16, #tpu.memory_space<vmem>>, vector<1x128x128xbf16>
    %106 = vector.shape_cast %105 : vector<1x128x128xbf16> to vector<128x128xbf16>
    %cst_81 = arith.constant dense<0.000000e+00> : vector<24x128xf32>
    %107 = tpu.matmul %104, %106, %cst_81 {dimension_numbers = #tpu.dot_dimension_numbers<[1], [0], [0], [1], [0, 0, 1, 1], [], []>} : vector<24x128xbf16>, vector<128x128xbf16>, vector<24x128xf32> -> vector<24x128xf32>
    %108 = arith.addf %102, %107 : vector<24x128xf32>
    %c6_82 = arith.constant 6 : index
    %c0_83 = arith.constant 0 : index
    %109 = vector.load %arg7[%c6_82, %c0_83] : memref<42x128xf32, #tpu.memory_space<vmem>>, vector<24x128xf32>
    %110 = arith.truncf %109 : vector<24x128xf32> to vector<24x128xbf16>
    %c3_84 = arith.constant 3 : index
    %c0_85 = arith.constant 0 : index
    %c0_86 = arith.constant 0 : index
    %111 = vector.load %arg4[%c3_84, %c0_85, %c0_86] : memref<18x128x128xbf16, #tpu.memory_space<vmem>>, vector<1x128x128xbf16>
    %112 = vector.shape_cast %111 : vector<1x128x128xbf16> to vector<128x128xbf16>
    %cst_87 = arith.constant dense<0.000000e+00> : vector<24x128xf32>
    %113 = tpu.matmul %110, %112, %cst_87 {dimension_numbers = #tpu.dot_dimension_numbers<[1], [0], [0], [1], [0, 0, 1, 1], [], []>} : vector<24x128xbf16>, vector<128x128xbf16>, vector<24x128xf32> -> vector<24x128xf32>
    %114 = arith.addf %108, %113 : vector<24x128xf32>
    %c7_88 = arith.constant 7 : index
    %c0_89 = arith.constant 0 : index
    %115 = vector.load %arg7[%c7_88, %c0_89] : memref<42x128xf32, #tpu.memory_space<vmem>>, vector<24x128xf32>
    %116 = arith.truncf %115 : vector<24x128xf32> to vector<24x128xbf16>
    %c4_90 = arith.constant 4 : index
    %c0_91 = arith.constant 0 : index
    %c0_92 = arith.constant 0 : index
    %117 = vector.load %arg4[%c4_90, %c0_91, %c0_92] : memref<18x128x128xbf16, #tpu.memory_space<vmem>>, vector<1x128x128xbf16>
    %118 = vector.shape_cast %117 : vector<1x128x128xbf16> to vector<128x128xbf16>
    %cst_93 = arith.constant dense<0.000000e+00> : vector<24x128xf32>
    %119 = tpu.matmul %116, %118, %cst_93 {dimension_numbers = #tpu.dot_dimension_numbers<[1], [0], [0], [1], [0, 0, 1, 1], [], []>} : vector<24x128xbf16>, vector<128x128xbf16>, vector<24x128xf32> -> vector<24x128xf32>
    %120 = arith.addf %114, %119 : vector<24x128xf32>
    %c8_94 = arith.constant 8 : index
    %c0_95 = arith.constant 0 : index
    %121 = vector.load %arg7[%c8_94, %c0_95] : memref<42x128xf32, #tpu.memory_space<vmem>>, vector<24x128xf32>
    %122 = arith.truncf %121 : vector<24x128xf32> to vector<24x128xbf16>
    %c5_96 = arith.constant 5 : index
    %c0_97 = arith.constant 0 : index
    %c0_98 = arith.constant 0 : index
    %123 = vector.load %arg4[%c5_96, %c0_97, %c0_98] : memref<18x128x128xbf16, #tpu.memory_space<vmem>>, vector<1x128x128xbf16>
    %124 = vector.shape_cast %123 : vector<1x128x128xbf16> to vector<128x128xbf16>
    %cst_99 = arith.constant dense<0.000000e+00> : vector<24x128xf32>
    %125 = tpu.matmul %122, %124, %cst_99 {dimension_numbers = #tpu.dot_dimension_numbers<[1], [0], [0], [1], [0, 0, 1, 1], [], []>} : vector<24x128xbf16>, vector<128x128xbf16>, vector<24x128xf32> -> vector<24x128xf32>
    %126 = arith.addf %120, %125 : vector<24x128xf32>
    %c12_100 = arith.constant 12 : index
    %c0_101 = arith.constant 0 : index
    %127 = vector.load %arg7[%c12_100, %c0_101] : memref<42x128xf32, #tpu.memory_space<vmem>>, vector<24x128xf32>
    %128 = arith.truncf %127 : vector<24x128xf32> to vector<24x128xbf16>
    %c6_102 = arith.constant 6 : index
    %c0_103 = arith.constant 0 : index
    %c0_104 = arith.constant 0 : index
    %129 = vector.load %arg4[%c6_102, %c0_103, %c0_104] : memref<18x128x128xbf16, #tpu.memory_space<vmem>>, vector<1x128x128xbf16>
    %130 = vector.shape_cast %129 : vector<1x128x128xbf16> to vector<128x128xbf16>
    %cst_105 = arith.constant dense<0.000000e+00> : vector<24x128xf32>
    %131 = tpu.matmul %128, %130, %cst_105 {dimension_numbers = #tpu.dot_dimension_numbers<[1], [0], [0], [1], [0, 0, 1, 1], [], []>} : vector<24x128xbf16>, vector<128x128xbf16>, vector<24x128xf32> -> vector<24x128xf32>
    %132 = arith.addf %126, %131 : vector<24x128xf32>
    %c13_106 = arith.constant 13 : index
    %c0_107 = arith.constant 0 : index
    %133 = vector.load %arg7[%c13_106, %c0_107] : memref<42x128xf32, #tpu.memory_space<vmem>>, vector<24x128xf32>
    %134 = arith.truncf %133 : vector<24x128xf32> to vector<24x128xbf16>
    %c7_108 = arith.constant 7 : index
    %c0_109 = arith.constant 0 : index
    %c0_110 = arith.constant 0 : index
    %135 = vector.load %arg4[%c7_108, %c0_109, %c0_110] : memref<18x128x128xbf16, #tpu.memory_space<vmem>>, vector<1x128x128xbf16>
    %136 = vector.shape_cast %135 : vector<1x128x128xbf16> to vector<128x128xbf16>
    %cst_111 = arith.constant dense<0.000000e+00> : vector<24x128xf32>
    %137 = tpu.matmul %134, %136, %cst_111 {dimension_numbers = #tpu.dot_dimension_numbers<[1], [0], [0], [1], [0, 0, 1, 1], [], []>} : vector<24x128xbf16>, vector<128x128xbf16>, vector<24x128xf32> -> vector<24x128xf32>
    %138 = arith.addf %132, %137 : vector<24x128xf32>
    %c14_112 = arith.constant 14 : index
    %c0_113 = arith.constant 0 : index
    %139 = vector.load %arg7[%c14_112, %c0_113] : memref<42x128xf32, #tpu.memory_space<vmem>>, vector<24x128xf32>
    %140 = arith.truncf %139 : vector<24x128xf32> to vector<24x128xbf16>
    %c8_114 = arith.constant 8 : index
    %c0_115 = arith.constant 0 : index
    %c0_116 = arith.constant 0 : index
    %141 = vector.load %arg4[%c8_114, %c0_115, %c0_116] : memref<18x128x128xbf16, #tpu.memory_space<vmem>>, vector<1x128x128xbf16>
    %142 = vector.shape_cast %141 : vector<1x128x128xbf16> to vector<128x128xbf16>
    %cst_117 = arith.constant dense<0.000000e+00> : vector<24x128xf32>
    %143 = tpu.matmul %140, %142, %cst_117 {dimension_numbers = #tpu.dot_dimension_numbers<[1], [0], [0], [1], [0, 0, 1, 1], [], []>} : vector<24x128xbf16>, vector<128x128xbf16>, vector<24x128xf32> -> vector<24x128xf32>
    %144 = arith.addf %138, %143 : vector<24x128xf32>
    %cst_118 = arith.constant 0.000000e+00 : f32
    %145 = vector.broadcast %cst_118 : f32 to vector<24x128xf32>
    %146 = arith.maximumf %144, %145 : vector<24x128xf32>
    %147 = arith.truncf %146 : vector<24x128xf32> to vector<24x128xbf16>
    %c0_119 = arith.constant 0 : index
    %c0_120 = arith.constant 0 : index
    %148 = vector.load %arg5[%c0_119, %c0_120] : memref<256x128xbf16, #tpu.memory_space<vmem>>, vector<128x128xbf16>
    %cst_121 = arith.constant dense<0.000000e+00> : vector<24x128xf32>
    %149 = tpu.matmul %147, %148, %cst_121 {dimension_numbers = #tpu.dot_dimension_numbers<[1], [0], [0], [1], [0, 0, 1, 1], [], []>} : vector<24x128xbf16>, vector<128x128xbf16>, vector<24x128xf32> -> vector<24x128xf32>
    %c7_122 = arith.constant 7 : index
    %c0_123 = arith.constant 0 : index
    %150 = vector.load %arg8[%c7_122, %c0_123] : memref<42x128xf32, #tpu.memory_space<vmem>>, vector<24x128xf32>
    %cst_124 = arith.constant 0.000000e+00 : f32
    %151 = vector.broadcast %cst_124 : f32 to vector<24x128xf32>
    %152 = arith.select %18, %149, %151 : vector<24x128xi1>, vector<24x128xf32>
    %153 = arith.addf %150, %152 : vector<24x128xf32>
    %c7_125 = arith.constant 7 : index
    %c0_126 = arith.constant 0 : index
    %154 = vector.load %arg8[%c7_125, %c0_126] : memref<42x128xf32, #tpu.memory_space<vmem>>, vector<24x128xf32>
    tpu.vector_store %arg8[%c7_125, %c0_126], %153 {strides = array<i32>} : memref<42x128xf32, #tpu.memory_space<vmem>>, vector<24x128xf32>,
    %c0_127 = arith.constant 0 : index
    %c0_128 = arith.constant 0 : index
    %155 = vector.load %arg8[%c0_127, %c0_128] : memref<42x128xf32, #tpu.memory_space<vmem>>, vector<42x128xf32>
    %cst_129 = arith.constant 0.000000e+00 : f32
    %156 = vector.broadcast %cst_129 : f32 to vector<42x128xf32>
    %157 = arith.maximumf %155, %156 : vector<42x128xf32>
    %c0_130 = arith.constant 0 : index
    %c0_131 = arith.constant 0 : index
    %158 = vector.load %arg7[%c0_130, %c0_131] : memref<42x128xf32, #tpu.memory_space<vmem>>, vector<42x128xf32>
    tpu.vector_store %arg7[%c0_130, %c0_131], %157 {strides = array<i32>} : memref<42x128xf32, #tpu.memory_space<vmem>>, vector<42x128xf32>,
    %cst_132 = arith.constant 0.000000e+00 : f32
    %159 = vector.broadcast %cst_132 : f32 to vector<24x128xf32>
    %c0_133 = arith.constant 0 : index
    %c0_134 = arith.constant 0 : index
    %160 = vector.load %arg7[%c0_133, %c0_134] : memref<42x128xf32, #tpu.memory_space<vmem>>, vector<24x128xf32>
    %161 = arith.truncf %160 : vector<24x128xf32> to vector<24x128xbf16>
    %c9 = arith.constant 9 : index
    %c0_135 = arith.constant 0 : index
    %c0_136 = arith.constant 0 : index
    %162 = vector.load %arg4[%c9, %c0_135, %c0_136] : memref<18x128x128xbf16, #tpu.memory_space<vmem>>, vector<1x128x128xbf16>
    %163 = vector.shape_cast %162 : vector<1x128x128xbf16> to vector<128x128xbf16>
    %cst_137 = arith.constant dense<0.000000e+00> : vector<24x128xf32>
    %164 = tpu.matmul %161, %163, %cst_137 {dimension_numbers = #tpu.dot_dimension_numbers<[1], [0], [0], [1], [0, 0, 1, 1], [], []>} : vector<24x128xbf16>, vector<128x128xbf16>, vector<24x128xf32> -> vector<24x128xf32>
    %165 = arith.addf %159, %164 : vector<24x128xf32>
    %c1_138 = arith.constant 1 : index
    %c0_139 = arith.constant 0 : index
    %166 = vector.load %arg7[%c1_138, %c0_139] : memref<42x128xf32, #tpu.memory_space<vmem>>, vector<24x128xf32>
    %167 = arith.truncf %166 : vector<24x128xf32> to vector<24x128xbf16>
    %c10 = arith.constant 10 : index
    %c0_140 = arith.constant 0 : index
    %c0_141 = arith.constant 0 : index
    %168 = vector.load %arg4[%c10, %c0_140, %c0_141] : memref<18x128x128xbf16, #tpu.memory_space<vmem>>, vector<1x128x128xbf16>
    %169 = vector.shape_cast %168 : vector<1x128x128xbf16> to vector<128x128xbf16>
    %cst_142 = arith.constant dense<0.000000e+00> : vector<24x128xf32>
    %170 = tpu.matmul %167, %169, %cst_142 {dimension_numbers = #tpu.dot_dimension_numbers<[1], [0], [0], [1], [0, 0, 1, 1], [], []>} : vector<24x128xbf16>, vector<128x128xbf16>, vector<24x128xf32> -> vector<24x128xf32>
    %171 = arith.addf %165, %170 : vector<24x128xf32>
    %c2_143 = arith.constant 2 : index
    %c0_144 = arith.constant 0 : index
    %172 = vector.load %arg7[%c2_143, %c0_144] : memref<42x128xf32, #tpu.memory_space<vmem>>, vector<24x128xf32>
    %173 = arith.truncf %172 : vector<24x128xf32> to vector<24x128xbf16>
    %c11 = arith.constant 11 : index
    %c0_145 = arith.constant 0 : index
    %c0_146 = arith.constant 0 : index
    %174 = vector.load %arg4[%c11, %c0_145, %c0_146] : memref<18x128x128xbf16, #tpu.memory_space<vmem>>, vector<1x128x128xbf16>
    %175 = vector.shape_cast %174 : vector<1x128x128xbf16> to vector<128x128xbf16>
    %cst_147 = arith.constant dense<0.000000e+00> : vector<24x128xf32>
    %176 = tpu.matmul %173, %175, %cst_147 {dimension_numbers = #tpu.dot_dimension_numbers<[1], [0], [0], [1], [0, 0, 1, 1], [], []>} : vector<24x128xbf16>, vector<128x128xbf16>, vector<24x128xf32> -> vector<24x128xf32>
    %177 = arith.addf %171, %176 : vector<24x128xf32>
    %c6_148 = arith.constant 6 : index
    %c0_149 = arith.constant 0 : index
    %178 = vector.load %arg7[%c6_148, %c0_149] : memref<42x128xf32, #tpu.memory_space<vmem>>, vector<24x128xf32>
    %179 = arith.truncf %178 : vector<24x128xf32> to vector<24x128xbf16>
    %c12_150 = arith.constant 12 : index
    %c0_151 = arith.constant 0 : index
    %c0_152 = arith.constant 0 : index
    %180 = vector.load %arg4[%c12_150, %c0_151, %c0_152] : memref<18x128x128xbf16, #tpu.memory_space<vmem>>, vector<1x128x128xbf16>
    %181 = vector.shape_cast %180 : vector<1x128x128xbf16> to vector<128x128xbf16>
    %cst_153 = arith.constant dense<0.000000e+00> : vector<24x128xf32>
    %182 = tpu.matmul %179, %181, %cst_153 {dimension_numbers = #tpu.dot_dimension_numbers<[1], [0], [0], [1], [0, 0, 1, 1], [], []>} : vector<24x128xbf16>, vector<128x128xbf16>, vector<24x128xf32> -> vector<24x128xf32>
    %183 = arith.addf %177, %182 : vector<24x128xf32>
    %c7_154 = arith.constant 7 : index
    %c0_155 = arith.constant 0 : index
    %184 = vector.load %arg7[%c7_154, %c0_155] : memref<42x128xf32, #tpu.memory_space<vmem>>, vector<24x128xf32>
    %185 = arith.truncf %184 : vector<24x128xf32> to vector<24x128xbf16>
    %c13_156 = arith.constant 13 : index
    %c0_157 = arith.constant 0 : index
    %c0_158 = arith.constant 0 : index
    %186 = vector.load %arg4[%c13_156, %c0_157, %c0_158] : memref<18x128x128xbf16, #tpu.memory_space<vmem>>, vector<1x128x128xbf16>
    %187 = vector.shape_cast %186 : vector<1x128x128xbf16> to vector<128x128xbf16>
    %cst_159 = arith.constant dense<0.000000e+00> : vector<24x128xf32>
    %188 = tpu.matmul %185, %187, %cst_159 {dimension_numbers = #tpu.dot_dimension_numbers<[1], [0], [0], [1], [0, 0, 1, 1], [], []>} : vector<24x128xbf16>, vector<128x128xbf16>, vector<24x128xf32> -> vector<24x128xf32>
    %189 = arith.addf %183, %188 : vector<24x128xf32>
    %c8_160 = arith.constant 8 : index
    %c0_161 = arith.constant 0 : index
    %190 = vector.load %arg7[%c8_160, %c0_161] : memref<42x128xf32, #tpu.memory_space<vmem>>, vector<24x128xf32>
    %191 = arith.truncf %190 : vector<24x128xf32> to vector<24x128xbf16>
    %c14_162 = arith.constant 14 : index
    %c0_163 = arith.constant 0 : index
    %c0_164 = arith.constant 0 : index
    %192 = vector.load %arg4[%c14_162, %c0_163, %c0_164] : memref<18x128x128xbf16, #tpu.memory_space<vmem>>, vector<1x128x128xbf16>
    %193 = vector.shape_cast %192 : vector<1x128x128xbf16> to vector<128x128xbf16>
    %cst_165 = arith.constant dense<0.000000e+00> : vector<24x128xf32>
    %194 = tpu.matmul %191, %193, %cst_165 {dimension_numbers = #tpu.dot_dimension_numbers<[1], [0], [0], [1], [0, 0, 1, 1], [], []>} : vector<24x128xbf16>, vector<128x128xbf16>, vector<24x128xf32> -> vector<24x128xf32>
    %195 = arith.addf %189, %194 : vector<24x128xf32>
    %c12_166 = arith.constant 12 : index
    %c0_167 = arith.constant 0 : index
    %196 = vector.load %arg7[%c12_166, %c0_167] : memref<42x128xf32, #tpu.memory_space<vmem>>, vector<24x128xf32>
    %197 = arith.truncf %196 : vector<24x128xf32> to vector<24x128xbf16>
    %c15 = arith.constant 15 : index
    %c0_168 = arith.constant 0 : index
    %c0_169 = arith.constant 0 : index
    %198 = vector.load %arg4[%c15, %c0_168, %c0_169] : memref<18x128x128xbf16, #tpu.memory_space<vmem>>, vector<1x128x128xbf16>
    %199 = vector.shape_cast %198 : vector<1x128x128xbf16> to vector<128x128xbf16>
    %cst_170 = arith.constant dense<0.000000e+00> : vector<24x128xf32>
    %200 = tpu.matmul %197, %199, %cst_170 {dimension_numbers = #tpu.dot_dimension_numbers<[1], [0], [0], [1], [0, 0, 1, 1], [], []>} : vector<24x128xbf16>, vector<128x128xbf16>, vector<24x128xf32> -> vector<24x128xf32>
    %201 = arith.addf %195, %200 : vector<24x128xf32>
    %c13_171 = arith.constant 13 : index
    %c0_172 = arith.constant 0 : index
    %202 = vector.load %arg7[%c13_171, %c0_172] : memref<42x128xf32, #tpu.memory_space<vmem>>, vector<24x128xf32>
    %203 = arith.truncf %202 : vector<24x128xf32> to vector<24x128xbf16>
    %c16 = arith.constant 16 : index
    %c0_173 = arith.constant 0 : index
    %c0_174 = arith.constant 0 : index
    %204 = vector.load %arg4[%c16, %c0_173, %c0_174] : memref<18x128x128xbf16, #tpu.memory_space<vmem>>, vector<1x128x128xbf16>
    %205 = vector.shape_cast %204 : vector<1x128x128xbf16> to vector<128x128xbf16>
    %cst_175 = arith.constant dense<0.000000e+00> : vector<24x128xf32>
    %206 = tpu.matmul %203, %205, %cst_175 {dimension_numbers = #tpu.dot_dimension_numbers<[1], [0], [0], [1], [0, 0, 1, 1], [], []>} : vector<24x128xbf16>, vector<128x128xbf16>, vector<24x128xf32> -> vector<24x128xf32>
    %207 = arith.addf %201, %206 : vector<24x128xf32>
    %c14_176 = arith.constant 14 : index
    %c0_177 = arith.constant 0 : index
    %208 = vector.load %arg7[%c14_176, %c0_177] : memref<42x128xf32, #tpu.memory_space<vmem>>, vector<24x128xf32>
    %209 = arith.truncf %208 : vector<24x128xf32> to vector<24x128xbf16>
    %c17 = arith.constant 17 : index
    %c0_178 = arith.constant 0 : index
    %c0_179 = arith.constant 0 : index
    %210 = vector.load %arg4[%c17, %c0_178, %c0_179] : memref<18x128x128xbf16, #tpu.memory_space<vmem>>, vector<1x128x128xbf16>
    %211 = vector.shape_cast %210 : vector<1x128x128xbf16> to vector<128x128xbf16>
    %cst_180 = arith.constant dense<0.000000e+00> : vector<24x128xf32>
    %212 = tpu.matmul %209, %211, %cst_180 {dimension_numbers = #tpu.dot_dimension_numbers<[1], [0], [0], [1], [0, 0, 1, 1], [], []>} : vector<24x128xbf16>, vector<128x128xbf16>, vector<24x128xf32> -> vector<24x128xf32>
    %213 = arith.addf %207, %212 : vector<24x128xf32>
    %cst_181 = arith.constant 0.000000e+00 : f32
    %214 = vector.broadcast %cst_181 : f32 to vector<24x128xf32>
    %215 = arith.maximumf %213, %214 : vector<24x128xf32>
    %216 = arith.truncf %215 : vector<24x128xf32> to vector<24x128xbf16>
    %c128 = arith.constant 128 : index
    %c0_182 = arith.constant 0 : index
    %217 = vector.load %arg5[%c128, %c0_182] : memref<256x128xbf16, #tpu.memory_space<vmem>>, vector<128x128xbf16>
    %cst_183 = arith.constant dense<0.000000e+00> : vector<24x128xf32>
    %218 = tpu.matmul %216, %217, %cst_183 {dimension_numbers = #tpu.dot_dimension_numbers<[1], [0], [0], [1], [0, 0, 1, 1], [], []>} : vector<24x128xbf16>, vector<128x128xbf16>, vector<24x128xf32> -> vector<24x128xf32>
    %c7_184 = arith.constant 7 : index
    %c0_185 = arith.constant 0 : index
    %219 = vector.load %arg8[%c7_184, %c0_185] : memref<42x128xf32, #tpu.memory_space<vmem>>, vector<24x128xf32>
    %cst_186 = arith.constant 0.000000e+00 : f32
    %220 = vector.broadcast %cst_186 : f32 to vector<24x128xf32>
    %221 = arith.select %18, %218, %220 : vector<24x128xi1>, vector<24x128xf32>
    %222 = arith.addf %219, %221 : vector<24x128xf32>
    %c7_187 = arith.constant 7 : index
    %c0_188 = arith.constant 0 : index
    %223 = vector.load %arg8[%c7_187, %c0_188] : memref<42x128xf32, #tpu.memory_space<vmem>>, vector<24x128xf32>
    tpu.vector_store %arg8[%c7_187, %c0_188], %222 {strides = array<i32>} : memref<42x128xf32, #tpu.memory_space<vmem>>, vector<24x128xf32>,
    %c0_189 = arith.constant 0 : index
    %c0_190 = arith.constant 0 : index
    %224 = vector.load %arg8[%c0_189, %c0_190] : memref<42x128xf32, #tpu.memory_space<vmem>>, vector<42x128xf32>
    %cst_191 = arith.constant 0.000000e+00 : f32
    %225 = vector.broadcast %cst_191 : f32 to vector<42x128xf32>
    %226 = arith.maximumf %224, %225 : vector<42x128xf32>
    %c0_192 = arith.constant 0 : index
    %c0_193 = arith.constant 0 : index
    %c0_194 = arith.constant 0 : index
    %227 = vector.load %arg6[%c0_192, %c0_193, %c0_194] : memref<1x42x128xf32, #tpu.memory_space<vmem>>, vector<1x42x128xf32>
    %228 = vector.shape_cast %227 : vector<1x42x128xf32> to vector<42x128xf32>
    %229 = vector.shape_cast %226 : vector<42x128xf32> to vector<1x42x128xf32>
    tpu.vector_store %arg6[%c0_192, %c0_193, %c0_194], %229 {strides = array<i32>} : memref<1x42x128xf32, #tpu.memory_space<vmem>>, vector<1x42x128xf32>,
    return
  }
  func.func @transform_0(%arg0: i32) -> (i32, i32, i32) {
    %c0_i32 = arith.constant 0 : i32
    %c0_i32_0 = arith.constant 0 : i32
    %c0_i32_1 = arith.constant 0 : i32
    return %arg0, %c0_i32, %c0_i32_0 : i32, i32, i32
  }
  func.func @transform_1(%arg0: i32) -> (i32, i32, i32) {
    %c0_i32 = arith.constant 0 : i32
    %c0_i32_0 = arith.constant 0 : i32
    %c0_i32_1 = arith.constant 0 : i32
    %c0_i32_2 = arith.constant 0 : i32
    return %c0_i32, %c0_i32_0, %c0_i32_1 : i32, i32, i32
  }
  func.func @transform_2(%arg0: i32) -> (i32, i32) {
    %c0_i32 = arith.constant 0 : i32
    %c0_i32_0 = arith.constant 0 : i32
    %c0_i32_1 = arith.constant 0 : i32
    return %c0_i32, %c0_i32_0 : i32, i32
  }
  func.func @transform_3(%arg0: i32) -> (i32, i32, i32) {
    %c0_i32 = arith.constant 0 : i32
    %c0_i32_0 = arith.constant 0 : i32
    %c0_i32_1 = arith.constant 0 : i32
    %c0_i32_2 = arith.constant 0 : i32
    return %c0_i32, %c0_i32_0, %c0_i32_1 : i32, i32, i32
  }
  func.func @transform_4(%arg0: i32) -> (i32, i32) {
    %c0_i32 = arith.constant 0 : i32
    %c0_i32_0 = arith.constant 0 : i32
    %c0_i32_1 = arith.constant 0 : i32
    return %c0_i32, %c0_i32_0 : i32, i32
  }
  func.func @transform_5(%arg0: i32) -> (i32, i32, i32) {
    %c0_i32 = arith.constant 0 : i32
    %c0_i32_0 = arith.constant 0 : i32
    %c0_i32_1 = arith.constant 0 : i32
    return %arg0, %c0_i32, %c0_i32_0 : i32, i32, i32
  }
}

</mosaic_0001>

<bundles_post_ra>
// kernel: encoder_forward.4
= control target key start
LH: loop header
LB: loop body
LE: loop exit
PB: predicated region body
PF: predicated region fallthrough
CT: control target
= control target key end

     0   :  { %s477_s1 = inlined_call_operand.vmem [shape: bf16[256,128], index: 1, kind: input, shape index: {}]   ;;  %s478_s0 = inlined_call_operand.vmem [shape: bf16[32,256], index: 0, kind: input, shape index: {}]   ;;  %s479_s2 = inlined_call_operand.vmem [shape: f32[1,128], index: 2, kind: input, shape index: {}]   ;;  %s480_s3 = inlined_call_operand.vmem [shape: bf16[32,128], index: 3, kind: output, shape index: {}]  }
   0x1   :  { %v366_v0 = vld [vmem:[%s477_s1 + $0x40] sm:$0xff]   ;;  %v368_v2 = vld [vmem:[%s477_s1 + $0x48] sm:$0xff]   ;;  %v370_v4 = vld [vmem:[%s477_s1 + $0x50] sm:$0xff]  }
   0x2   :  { %v367_v1 = vld [vmem:[%s477_s1] sm:$0xff]   ;;  %322 = vmatprep.subr.bf16.mxu0 %v366_v0  ;;  %350 = vmatprep.subr.bf16.mxu1 %v366_v0  ;;  %v369_v3 = vld [vmem:[%s477_s1 + $0x8] sm:$0xff]   ;;  %v371_v5 = vld [vmem:[%s477_s1 + $0x10] sm:$0xff]  }
   0x3   :  { %323 = vmatpush3.bf16.msra.mxu0 %v367_v1  ;;  %358 = vmatpush3.bf16.msra.mxu1 %v367_v1  ;;  %v372_v6 = vld [vmem:[%s477_s1 + $0x58] sm:$0xff]   ;;  %v374_v8 = vld [vmem:[%s477_s1 + $0x60] sm:$0xff]   ;;  %v376_v10 = vld [vmem:[%s477_s1 + $0x68] sm:$0xff]  }
   0x4   :  { %324 = vmatprep.subr.bf16.mxu0 %v368_v2  ;;  %351 = vmatprep.subr.bf16.mxu1 %v368_v2  ;;  %v373_v7 = vld [vmem:[%s477_s1 + $0x18] sm:$0xff]   ;;  %v375_v9 = vld [vmem:[%s477_s1 + $0x20] sm:$0xff]   ;;  %v377_v13 = vld [vmem:[%s477_s1 + $0x28] sm:$0xff]  }
   0x5   :  { %v384_v11 = vld [vmem:[%s478_s0 + $0x4] ss:$8 sps:$4 sm:$0xff]   ;;  %v387_v12 = vld [vmem:[%s478_s0 + $0x14] ss:$8 sps:$4 sm:$0xff]   ;;  %v382_v18 = vld [vmem:[%s478_s0] ss:$8 sps:$4 sm:$0xff]  }
   0x6   :  { %v378_v14 = vld [vmem:[%s477_s1 + $0x70] sm:$0xff]   ;;  %211 = vmatprep.mubr.bf16.mxu0 %v384_v11  ;;  %219 = vmatprep.mubr.bf16.mxu1 %v387_v12  ;;  %v380_v16 = vld [vmem:[%s477_s1 + $0x78] sm:$0xff]   ;;  %v302_v23 = vld [vmem:[%s479_s2] ss:$0 sm:$0xff] }
   0x7   :  { %325 = vmatpush3.bf16.msra.mxu0 %v369_v3  ;;  %359 = vmatpush3.bf16.msra.mxu1 %v369_v3  ;;  %v379_v15 = vld [vmem:[%s477_s1 + $0x30] sm:$0xff]   ;;  %v381_v17 = vld [vmem:[%s477_s1 + $0x38] sm:$0xff]  }
   0x8   :  { %326 = vmatprep.subr.bf16.mxu0 %v370_v4  ;;  %352 = vmatprep.subr.bf16.mxu1 %v370_v4  ;;  %v385_v19 = vld [vmem:[%s478_s0 + $0x10] ss:$8 sps:$4 sm:$0xff]  }
   0xb   :  { %327 = vmatpush3.bf16.msra.mxu0 %v371_v5  ;;  %360 = vmatpush3.bf16.msra.mxu1 %v371_v5 }
   0xc   :  { %328 = vmatprep.subr.bf16.mxu0 %v372_v6  ;;  %353 = vmatprep.subr.bf16.mxu1 %v372_v6 }
   0xf   :  { %329 = vmatpush3.bf16.msra.mxu0 %v373_v7  ;;  %361 = vmatpush3.bf16.msra.mxu1 %v373_v7 }
  0x10   :  { %330 = vmatprep.subr.bf16.mxu0 %v374_v8  ;;  %354 = vmatprep.subr.bf16.mxu1 %v374_v8 }
  0x13   :  { %331 = vmatpush3.bf16.msra.mxu0 %v375_v9  ;;  %362 = vmatpush3.bf16.msra.mxu1 %v375_v9 }
  0x14   :  { %332 = vmatprep.subr.bf16.mxu0 %v376_v10  ;;  %355 = vmatprep.subr.bf16.mxu1 %v376_v10 }
  0x17   :  { %333 = vmatpush3.bf16.msra.mxu0 %v377_v13  ;;  %363 = vmatpush3.bf16.msra.mxu1 %v377_v13 }
  0x18   :  { %334 = vmatprep.subr.bf16.mxu0 %v378_v14  ;;  %356 = vmatprep.subr.bf16.mxu1 %v378_v14 }
  0x1b   :  { %335 = vmatpush3.bf16.msra.mxu0 %v379_v15  ;;  %364 = vmatpush3.bf16.msra.mxu1 %v379_v15 }
  0x1c   :  { %336 = vmatprep.subr.bf16.mxu0 %v380_v16  ;;  %357 = vmatprep.subr.bf16.mxu1 %v380_v16 }
  0x1f   :  { %337 = vmatpush3.bf16.msra.mxu0 %v381_v17  ;;  %365 = vmatpush3.bf16.msra.mxu1 %v381_v17 }
  0x22   :  { %212 = vmatmul.mubr.bf16.vlgmr.msra.gmra.mrb[0].mxu0 %v382_v18  ;;  %220 = vmatmul.mubr.bf16.vlgmr.msra.gmra.mrb[0].mxu1 %v385_v19 }
  0xf5   :  { %v338_v20 = vpop.f32.mrb[0].mxu0  ;;  %v344_v21 = vpop.f32.mrb[0].mxu1 }
  0xf6   :  { %v339_v22 = vpop.f32.mrb[1].mxu0  ;;  %v345_v24 = vpop.f32.mrb[1].mxu1 }
  0xf7   :  { %v340_v25 = vadd.f32 %v339_v22, %v338_v20  ;;  %v346_v26 = vadd.f32 %v345_v24, %v344_v21  ;;  %v341_v27 = vpop.f32.mrb[2].mxu0  ;;  %v347_v28 = vpop.f32.mrb[2].mxu1 }
  0xf8   :  { %v342_v29 = vpop.f32.mrb[3].mxu0  ;;  %v348_v30 = vpop.f32.mrb[3].mxu1 }
  0xf9   :  { %v250_v31 = vadd.f32 %v340_v25, %v302_v23  ;;  %v252_v32 = vadd.f32 %v346_v26, %v302_v23  ;;  %v343_v33 = vadd.f32 %v342_v29, %v341_v27  ;;  %v349_v34 = vadd.f32 %v348_v30, %v347_v28 }
  0xfb   :  { %v251_v35 = vadd.f32 %v343_v33, %v302_v23  ;;  %v253_v36 = vadd.f32 %v349_v34, %v302_v23  ;;  %v254_v37 = vmax.f32 %v250_v31, 0.0  ;;  %v256_v38 = vmax.f32 %v252_v32, 0.0 }
  0xfd   :  { %v255_v39 = vmax.f32 %v251_v35, 0.0  ;;  %v257_v40 = vmax.f32 %v253_v36, 0.0 }
  0xff   :  { %v314_v41 = vpack.c.bf16 %v255_v39, %v254_v37  ;;  %v319_v42 = vpack.c.bf16 %v257_v40, %v256_v38 }
 0x101   :  { %315 = vst [vmem:[%s480_s3] sm:$0xff] %v314_v41   ;;  %321 = vst [vmem:[%s480_s3 + $0x8] sm:$0xff] %v319_v42  }

// kernel: encoder_forward.3
= control target key start
LH: loop header
LB: loop body
LE: loop exit
PB: predicated region body
PF: predicated region fallthrough
CT: control target
= control target key end

     0   :  { %s721_s1 = inlined_call_operand.vmem [shape: bf16[128,128], index: 1, kind: input, shape index: {}]   ;;  %s722_s0 = inlined_call_operand.vmem [shape: bf16[128,128], index: 0, kind: input, shape index: {}]   ;;  %s723_s2 = inlined_call_operand.vmem [shape: f32[1,128], index: 2, kind: input, shape index: {}]   ;;  %s724_s3 = inlined_call_operand.vmem [shape: bf16[128,128], index: 3, kind: output, shape index: {}]  }
   0x1   :  { %v610_v0 = vld [vmem:[%s721_s1] sm:$0xff]   ;;  %v611_v1 = vld [vmem:[%s721_s1 + $0x8] sm:$0xff]   ;;  %v612_v2 = vld [vmem:[%s721_s1 + $0x10] sm:$0xff]  }
   0x2   :  { %562 = vmatprep.subr.bf16.mxu0 %v610_v0  ;;  %594 = vmatprep.subr.bf16.mxu1 %v610_v0  ;;  %v613_v3 = vld [vmem:[%s721_s1 + $0x18] sm:$0xff]   ;;  %v618_v4 = vld [vmem:[%s722_s0] sm:$0xff]   ;;  %v615_v7 = vld [vmem:[%s721_s1 + $0x28] sm:$0xff]  }
   0x3   :  { %563 = vmatpush3.bf16.msra.mxu0 %v610_v0  ;;  %602 = vmatpush3.bf16.msra.mxu1 %v610_v0  ;;  %v619_v5 = vld [vmem:[%s722_s0 + $0x20] sm:$0xff]   ;;  %v616_v8 = vld [vmem:[%s721_s1 + $0x30] sm:$0xff]   ;;  %v617_v9 = vld [vmem:[%s721_s1 + $0x38] sm:$0xff]  }
   0x4   :  { %564 = vmatprep.subr.bf16.mxu0 %v611_v1  ;;  %595 = vmatprep.subr.bf16.mxu1 %v611_v1  ;;  %v614_v6 = vld [vmem:[%s721_s1 + $0x20] sm:$0xff]   ;;  %v620_v10 = vld [vmem:[%s722_s0 + $0x8] sm:$0xff]   ;;  %v622_v12 = vld [vmem:[%s722_s0 + $0x10] sm:$0xff]  }
   0x5   :  { %578 = vmatprep.mubr.bf16.mxu0 %v618_v4  ;;  %586 = vmatprep.mubr.bf16.mxu1 %v619_v5  ;;  %v621_v11 = vld [vmem:[%s722_s0 + $0x28] sm:$0xff]   ;;  %v623_v13 = vld [vmem:[%s722_s0 + $0x30] sm:$0xff]   ;;  %v624_v14 = vld [vmem:[%s722_s0 + $0x18] sm:$0xff]  }
   0x6   :  { %v625_v15 = vld [vmem:[%s722_s0 + $0x38] sm:$0xff]   ;;  %v466_v16 = vld [vmem:[%s723_s2] ss:$0 sm:$0xff] }
   0x7   :  { %565 = vmatpush3.bf16.msra.mxu0 %v611_v1  ;;  %603 = vmatpush3.bf16.msra.mxu1 %v611_v1 }
   0x8   :  { %566 = vmatprep.subr.bf16.mxu0 %v612_v2  ;;  %596 = vmatprep.subr.bf16.mxu1 %v612_v2 }
   0xb   :  { %567 = vmatpush3.bf16.msra.mxu0 %v612_v2  ;;  %604 = vmatpush3.bf16.msra.mxu1 %v612_v2 }
   0xc   :  { %568 = vmatprep.subr.bf16.mxu0 %v613_v3  ;;  %597 = vmatprep.subr.bf16.mxu1 %v613_v3 }
   0xf   :  { %569 = vmatpush3.bf16.msra.mxu0 %v613_v3  ;;  %605 = vmatpush3.bf16.msra.mxu1 %v613_v3 }
  0x10   :  { %570 = vmatprep.subr.bf16.mxu0 %v614_v6  ;;  %598 = vmatprep.subr.bf16.mxu1 %v614_v6 }
  0x13   :  { %571 = vmatpush3.bf16.msra.mxu0 %v614_v6  ;;  %606 = vmatpush3.bf16.msra.mxu1 %v614_v6 }
  0x14   :  { %572 = vmatprep.subr.bf16.mxu0 %v615_v7  ;;  %599 = vmatprep.subr.bf16.mxu1 %v615_v7 }
  0x17   :  { %573 = vmatpush3.bf16.msra.mxu0 %v615_v7  ;;  %607 = vmatpush3.bf16.msra.mxu1 %v615_v7 }
  0x18   :  { %574 = vmatprep.subr.bf16.mxu0 %v616_v8  ;;  %600 = vmatprep.subr.bf16.mxu1 %v616_v8 }
  0x1b   :  { %575 = vmatpush3.bf16.msra.mxu0 %v616_v8  ;;  %608 = vmatpush3.bf16.msra.mxu1 %v616_v8 }
  0x1c   :  { %576 = vmatprep.subr.bf16.mxu0 %v617_v9  ;;  %601 = vmatprep.subr.bf16.mxu1 %v617_v9 }
  0x1f   :  { %577 = vmatpush3.bf16.msra.mxu0 %v617_v9  ;;  %609 = vmatpush3.bf16.msra.mxu1 %v617_v9 }
  0x22   :  { %579 = vmatmul.mubr.bf16.vlgmr.msra.gmra.mrb[0].mxu0 %v620_v10  ;;  %587 = vmatmul.mubr.bf16.vlgmr.msra.gmra.mrb[0].mxu1 %v621_v11 }
  0x23   :  { %582 = vmatprep.mubr.bf16.mxu0 %v622_v12  ;;  %590 = vmatprep.mubr.bf16.mxu1 %v623_v13 }
  0x2a   :  { %583 = vmatmul.mubr.bf16.gmra.mrb[4].mxu0 %v624_v14  ;;  %591 = vmatmul.mubr.bf16.gmra.mrb[4].mxu1 %v625_v15 }
  0xf5   :  { %v580_v17 = vpop.f32.mrb[0].mxu0  ;;  %v588_v18 = vpop.f32.mrb[0].mxu1 }
  0xf6   :  { %v336_v19 = vadd.f32 %v580_v17, %v466_v16  ;;  %v344_v20 = vadd.f32 %v588_v18, %v466_v16  ;;  %v213_v21 = vpop.f32.mrb[1].mxu0  ;;  %v245_v22 = vpop.f32.mrb[1].mxu1 }
  0xf7   :  { %v334_v23 = vadd.f32 %v466_v16, %v213_v21  ;;  %v342_v24 = vadd.f32 %v466_v16, %v245_v22  ;;  %v581_v25 = vpop.f32.mrb[2].mxu0  ;;  %v589_v26 = vpop.f32.mrb[2].mxu1 }
  0xf8   :  { %v337_v27 = vadd.f32 %v581_v25, %v466_v16  ;;  %v345_v28 = vadd.f32 %v589_v26, %v466_v16  ;;  %v216_v29 = vpop.f32.mrb[3].mxu0  ;;  %v248_v30 = vpop.f32.mrb[3].mxu1  ;;  %v352_v33 = vmax.f32 %v336_v19, 0.0  ;;  %v360_v34 = vmax.f32 %v344_v20, 0.0 }
  0xf9   :  { %v335_v31 = vadd.f32 %v466_v16, %v216_v29  ;;  %v343_v32 = vadd.f32 %v466_v16, %v248_v30  ;;  %v350_v37 = vmax.f32 %v334_v23, 0.0  ;;  %v358_v38 = vmax.f32 %v342_v24, 0.0 }
  0xfa   :  { %v353_v35 = vmax.f32 %v337_v27, 0.0  ;;  %v361_v36 = vmax.f32 %v345_v28, 0.0 }
  0xfb   :  { %v351_v39 = vmax.f32 %v335_v31, 0.0  ;;  %v359_v40 = vmax.f32 %v343_v32, 0.0 }
  0xfc   :  { %v507_v41 = vpack.c.bf16 %v353_v35, %v352_v33  ;;  %v527_v42 = vpack.c.bf16 %v361_v36, %v360_v34 }
  0xfd   :  { %v502_v43 = vpack.c.bf16 %v351_v39, %v350_v37  ;;  %v522_v44 = vpack.c.bf16 %v359_v40, %v358_v38  ;;  %v584_v45 = vpop.f32.mrb[4].mxu0  ;;  %v592_v46 = vpop.f32.mrb[4].mxu1 }
  0xfe   :  { %539 = vst [vmem:[%s724_s3 + $0x8] sm:$0xff] %v507_v41   ;;  %543 = vst [vmem:[%s724_s3 + $0x28] sm:$0xff] %v527_v42   ;;  %v340_v47 = vadd.f32 %v584_v45, %v466_v16  ;;  %v348_v48 = vadd.f32 %v592_v46, %v466_v16  ;;  %v229_v49 = vpop.f32.mrb[5].mxu0  ;;  %v261_v50 = vpop.f32.mrb[5].mxu1 }
  0xff   :  { %503 = vst [vmem:[%s724_s3] sm:$0xff] %v502_v43   ;;  %542 = vst [vmem:[%s724_s3 + $0x20] sm:$0xff] %v522_v44   ;;  %v338_v51 = vadd.f32 %v466_v16, %v229_v49  ;;  %v346_v52 = vadd.f32 %v466_v16, %v261_v50  ;;  %v585_v53 = vpop.f32.mrb[6].mxu0  ;;  %v593_v54 = vpop.f32.mrb[6].mxu1 }
 0x100   :  { %v341_v55 = vadd.f32 %v585_v53, %v466_v16  ;;  %v349_v56 = vadd.f32 %v593_v54, %v466_v16  ;;  %v232_v57 = vpop.f32.mrb[7].mxu0  ;;  %v264_v58 = vpop.f32.mrb[7].mxu1  ;;  %v356_v61 = vmax.f32 %v340_v47, 0.0  ;;  %v364_v62 = vmax.f32 %v348_v48, 0.0 }
 0x101   :  { %v339_v59 = vadd.f32 %v466_v16, %v232_v57  ;;  %v347_v60 = vadd.f32 %v466_v16, %v264_v58  ;;  %v354_v1 = vmax.f32 %v338_v51, 0.0  ;;  %v362_v2 = vmax.f32 %v346_v52, 0.0 }
 0x102   :  { %v357_v63 = vmax.f32 %v341_v55, 0.0  ;;  %v365_v0 = vmax.f32 %v349_v56, 0.0 }
 0x103   :  { %v355_v3 = vmax.f32 %v339_v59, 0.0  ;;  %v363_v4 = vmax.f32 %v347_v60, 0.0 }
 0x104   :  { %v517_v5 = vpack.c.bf16 %v357_v63, %v356_v61  ;;  %v537_v6 = vpack.c.bf16 %v365_v0, %v364_v62 }
 0x105   :  { %v512_v7 = vpack.c.bf16 %v355_v3, %v354_v1  ;;  %v532_v8 = vpack.c.bf16 %v363_v4, %v362_v2 }
 0x106   :  { %541 = vst [vmem:[%s724_s3 + $0x18] sm:$0xff] %v517_v5   ;;  %545 = vst [vmem:[%s724_s3 + $0x38] sm:$0xff] %v537_v6  }
 0x107   :  { %540 = vst [vmem:[%s724_s3 + $0x10] sm:$0xff] %v512_v7   ;;  %544 = vst [vmem:[%s724_s3 + $0x30] sm:$0xff] %v532_v8  }

// kernel: encoder_forward.5
= control target key start
LH: loop header
LB: loop body
LE: loop exit
PB: predicated region body
PF: predicated region fallthrough
CT: control target
= control target key end

     0   :  { %s5812_s18 = smov 0   ;;  %s6705_s0 = inlined_call_operand.vmem [shape: bf16[2,42,128], index: 0, kind: input, shape index: {}]   ;;  %s6706_s1 = inlined_call_operand.vmem [shape: bf16[9,128,128], index: 1, kind: input, shape index: {}]   ;;  %s6707_s2 = inlined_call_operand.vmem [shape: f32[1,128], index: 2, kind: input, shape index: {}]   ;;  %s6708_s3 = inlined_call_operand.vmem [shape: bf16[18,128,128], index: 3, kind: input, shape index: {}]   ;;  %s6709_s4 = inlined_call_operand.vmem [shape: bf16[256,128], index: 4, kind: input, shape index: {}]   ;;  %s6710_s5 = inlined_call_operand.vmem [shape: f32[2,42,128], index: 5, kind: output, shape index: {}]  }
   0x1 LB: > { %s3935_s19 = sadd.s32 4294967295, %s5779_s18   ;;  %p3939_p0 = scmp.ge.s32.totalorder %s5779_s18, 1  ;;  %s5779_s18 = sphi %s5812_s18, %s15_s18  }
   0x2   : > { %p187_p1 = scmp.lt.s32.totalorder %s5779_s18, 3 }
   0x4   : > { %p188_p2 = pnand %p3939_p0, %p187_p1 }
   0x5   : > { %v5537_v0 = vld [vmem:[%s6706_s1 + $0x40] sm:$0xff] (!%p188_p2)   ;;  %p215_p3 = scmp.lt.s32.totalorder (!%p188_p2), %s3935_s19, 1  ;;  %v5539_v2 = vld [vmem:[%s6706_s1 + $0x48] sm:$0xff] (!%p188_p2)   ;;  %v5541_v4 = vld [vmem:[%s6706_s1 + $0x50] sm:$0xff] (!%p188_p2)  }
   0x6   : > { %191 = sbr.rel (%p188_p2) target bundleno = 1827 (0x723), region = 40  ;;  %v5538_v1 = vld [vmem:[%s6706_s1] sm:$0xff] (!%p188_p2)   ;;  %4876 = vmatprep.subr.bf16.mxu0 (!%p188_p2), %v5537_v0  ;;  %v5540_v3 = vld [vmem:[%s6706_s1 + $0x8] sm:$0xff] (!%p188_p2)   ;;  %v5542_v5 = vld [vmem:[%s6706_s1 + $0x10] sm:$0xff] (!%p188_p2)  }
   0x7   : > { %4896 = vmatprep.subr.bf16.mxu1 (!%p188_p2), %v5538_v1  ;;  %4877 = vmatpush3.bf16.msra.mxu0 (!%p188_p2), %v5537_v0  ;;  %v5543_v6 = vld [vmem:[%s6706_s1 + $0x58] sm:$0xff] (!%p188_p2)   ;;  %v5545_v8 = vld [vmem:[%s6706_s1 + $0x60] sm:$0xff] (!%p188_p2)   ;;  %v5547_v10 = vld [vmem:[%s6706_s1 + $0x68] sm:$0xff] (!%p188_p2)  }
   0x8   : > { %4897 = vmatpush3.bf16.msra.mxu1 (!%p188_p2), %v5538_v1  ;;  %4878 = vmatprep.subr.bf16.mxu0 (!%p188_p2), %v5539_v2  ;;  %v5544_v7 = vld [vmem:[%s6706_s1 + $0x18] sm:$0xff] (!%p188_p2)   ;;  %v5546_v9 = vld [vmem:[%s6706_s1 + $0x20] sm:$0xff] (!%p188_p2)   ;;  %v5548_v13 = vld [vmem:[%s6706_s1 + $0x28] sm:$0xff] (!%p188_p2)  }
   0x9   : > { %4898 = vmatprep.subr.bf16.mxu1 (!%p188_p2), %v5540_v3  ;;  %v5549_v19 = vld [vmem:[%s6706_s1 + $0x70] sm:$0xff] (!%p188_p2)   ;;  %v5551_v21 = vld [vmem:[%s6706_s1 + $0x78] sm:$0xff] (!%p188_p2)   ;;  %v5555_v27 = vld [vmem:[%s6706_s1 + $0x80] sm:$0xff] (!%p188_p2)  }
   0xa   : > { %v5550_v20 = vld [vmem:[%s6706_s1 + $0x30] sm:$0xff] (!%p188_p2)   ;;  %v5552_v22 = vld [vmem:[%s6706_s1 + $0x38] sm:$0xff] (!%p188_p2)   ;;  %v5556_v28 = vld [vmem:[%s6706_s1 + $0xc0] sm:$0xff] (!%p188_p2)  }
   0xb   : > { %4879 = vmatpush3.bf16.msra.mxu0 (!%p188_p2), %v5539_v2  ;;  %v5557_v31 = vld [vmem:[%s6706_s1 + $0x88] sm:$0xff] (!%p188_p2)   ;;  %v5559_v35 = vld [vmem:[%s6706_s1 + $0x90] sm:$0xff] (!%p188_p2)   ;;  %v5561_v41 = vld [vmem:[%s6706_s1 + $0x98] sm:$0xff] (!%p188_p2)  }
   0xc   : > { %4899 = vmatpush3.bf16.msra.mxu1 (!%p188_p2), %v5540_v3  ;;  %4880 = vmatprep.subr.bf16.mxu0 (!%p188_p2), %v5541_v4  ;;  %v5558_v32 = vld [vmem:[%s6706_s1 + $0xc8] sm:$0xff] (!%p188_p2)   ;;  %v5560_v38 = vld [vmem:[%s6706_s1 + $0xd0] sm:$0xff] (!%p188_p2)   ;;  %v5562_v42 = vld [vmem:[%s6706_s1 + $0xd8] sm:$0xff] (!%p188_p2)  }
   0xd   : > { %s6720_s19 = smov (!%p215_p3, %s3935_s19), 1  ;;  %4900 = vmatprep.subr.bf16.mxu1 %v5542_v5  ;;  %v5563_v43 = vld [vmem:[%s6706_s1 + $0xa0] sm:$0xff]   ;;  %v5565_v45 = vld [vmem:[%s6706_s1 + $0xa8] sm:$0xff]   ;;  %v5567_v47 = vld [vmem:[%s6706_s1 + $0xb0] sm:$0xff]  }
   0xe   : > { %s5520_s11 = smul.u32 24, %s6720_s19  ;;  %v5564_v44 = vld [vmem:[%s6706_s1 + $0xe0] sm:$0xff]   ;;  %v5566_v46 = vld [vmem:[%s6706_s1 + $0xe8] sm:$0xff]   ;;  %v5568_v48 = vld [vmem:[%s6706_s1 + $0xf0] sm:$0xff]  }
   0xf   : > { %4881 = vmatpush3.bf16.msra.mxu0 %v5541_v4  ;;  %v5569_v49 = vld [vmem:[%s6706_s1 + $0xb8] sm:$0xff]   ;;  %v5571_v52 = vld [vmem:[%s6706_s1 + $0x100] sm:$0xff]   ;;  %v5573_v59 = vld [vmem:[%s6706_s1 + $0x108] sm:$0xff]  }
  0x10   : > { %4901 = vmatpush3.bf16.msra.mxu1 %v5542_v5  ;;  %4882 = vmatprep.subr.bf16.mxu0 %v5543_v6  ;;  %s5856_s20 = scalar_lea.vmem %s6705_s0, %s5520_s11  ;;  %v5570_v50 = vld [vmem:[%s6706_s1 + $0xf8] sm:$0xff]   ;;  %v5572_v54 = vld [vmem:[%s6706_s1 + $0x140] sm:$0xff]   ;;  %v5574_v60 = vld [vmem:[%s6706_s1 + $0x148] sm:$0xff]  }
  0x11   : > { %4902 = vmatprep.subr.bf16.mxu1 %v5544_v7  ;;  %v4578_v11 = vld [vmem:[%s5856_s20] sm:$0xff]   ;;  %v4585_v12 = vld [vmem:[%s5856_s20 + $0x8] sm:$0xff]   ;;  %v5575_v63 = vld [vmem:[%s6706_s1 + $0x110] sm:$0xff]  }
  0x12   : > { %v4579_v14 = vunpack.c.l.bf16 %v4578_v11  ;;  %v4580_v15 = vunpack.c.h.bf16 %v4578_v11  ;;  %v4583_v16 = vunpack.c.l.bf16 %v4585_v12  ;;  %v4584_v17 = vunpack.c.h.bf16 %v4585_v12  ;;  %v5553_v18 = vld [vmem:[%s5856_s20] sm:$0xff]  ;;  %v5554_v30 = vld [vmem:[%s5856_s20 + $0x8] ss:$0 sps:$4 sm:$0xff]   ;;  %v5576_v0 = vld [vmem:[%s6706_s1 + $0x150] sm:$0xff]  }
  0x13   : > { %4883 = vmatpush3.bf16.msra.mxu0 %v5543_v6  ;;  %4912 = vmatprep.mubr.bf16.mxu1 %v5553_v18  ;;  %v5588_v62 = vld [vmem:[%s5856_s20 + $0x4] ss:$4 sps:$4 sm:$0xff]   ;;  %v285_v1 = vld [vmem:[%s5856_s20 + $0x10] sm:$0xf]  ;;  %v5577_v2 = vld [vmem:[%s6706_s1 + $0x118] sm:$0xff]  }
  0x14   : > { %4903 = vmatpush3.bf16.msra.mxu1 %v5544_v7  ;;  %4884 = vmatprep.subr.bf16.mxu0 %v5545_v8  ;;  %293 = vst [vmem:[#allocation2] sm:$0xff] %v4579_v14  ;;  %294 = vst [vmem:[#allocation2 + $0x8] sm:$0xff] %v4580_v15  ;;  %v291_v3 = vunpack.c.l.bf16 %v285_v1  ;;  %v5578_v4 = vld [vmem:[%s6706_s1 + $0x158] sm:$0xff]   ;;  %v5579_v5 = vld [vmem:[%s6706_s1 + $0x120] sm:$0xff]   ;;  %v5781_v1 = vmov 0.0  }
  0x15   : > { %4904 = vmatprep.subr.bf16.mxu1 %v5546_v9  ;;  %295 = vst [vmem:[#allocation2 + $0x10] sm:$0xff] %v4583_v16  ;;  %296 = vst [vmem:[#allocation2 + $0x18] sm:$0xff] %v4584_v17  ;;  %v5580_v6 = vld [vmem:[%s6706_s1 + $0x160] sm:$0xff]   ;;  %v5581_v7 = vld [vmem:[%s6706_s1 + $0x128] sm:$0xff]  }
  0x16   : > { %297 = vst [vmem:[#allocation2 + $0x20] sm:$0xff] %v291_v3  ;;  %v5585_v11 = vld [vmem:[%s6706_s1 + $0x138] sm:$0xff]   ;;  %v5587_v14 = vld [vmem:[%s6706_s1 + $0x180] sm:$0xff]   ;;  %v5589_v18 = vld [vmem:[%s5856_s20 + $0xc] ss:$0 sps:$4 sm:$0xff]   ;;  %s5521_s20 = smul.u32 48, %s6720_s19 }
  0x17   : > { %4885 = vmatpush3.bf16.msra.mxu0 %v5545_v8  ;;  %v5582_v8 = vld [vmem:[%s6706_s1 + $0x168] sm:$0xff]   ;;  %v5586_v12 = vld [vmem:[%s6706_s1 + $0x178] sm:$0xff]   ;;  %v5590_v15 = vld [vmem:[%s6706_s1 + $0x1c0] sm:$0xff]   ;;  %1393 = vst [vmem:[#allocation3 + $0x10] sm:$0xff] %v5781_v1 }
  0x18   : > { %4905 = vmatpush3.bf16.msra.mxu1 %v5546_v9  ;;  %4886 = vmatprep.subr.bf16.mxu0 %v5547_v10  ;;  %v5583_v9 = vld [vmem:[%s6706_s1 + $0x130] sm:$0xff]   ;;  %1394 = vst [vmem:[#allocation3 + $0x18] sm:$0xff] %v5781_v1  ;;  %1396 = vst [vmem:[#allocation3 + $0x28] sm:$0x3] %v5781_v1  ;;  %s6084_s23 = scalar_lea.vmem %s6710_s5, %s5521_s20 }
  0x19   : > { %4906 = vmatprep.subr.bf16.mxu1 %v5548_v13  ;;  %1391 = vst [vmem:[#allocation3] sm:$0xff] %v5781_v1  ;;  %1392 = vst [vmem:[#allocation3 + $0x8] sm:$0xff] %v5781_v1 }
  0x1a   : > { %3878 = vst [vmem:[%s6084_s23 + $0x20] sm:$0xff] %v5781_v1 }
  0x1b   : > { %4887 = vmatpush3.bf16.msra.mxu0 %v5547_v10  ;;  %v320_v23 = vld [vmem:[#allocation2 + $0x1] sm:$0xff]  ;;  %v5584_v10 = vld [vmem:[%s6706_s1 + $0x170] sm:$0xff]  }
  0x1c   : > { %4907 = vmatpush3.bf16.msra.mxu1 %v5548_v13  ;;  %4888 = vmatprep.subr.bf16.mxu0 %v5549_v19  ;;  %v321_v24 = vld [vmem:[#allocation2 + $0x9] sm:$0xff]  ;;  %v322_v26 = vld [vmem:[#allocation2 + $0x11] sm:$0xff] }
  0x1d   : > { %4908 = vmatprep.subr.bf16.mxu1 %v5550_v20  ;;  %v323_v25 = vpack.c.bf16 %v321_v24, %v320_v23  ;;  %v324_v29 = vpack.c.bf16 %v322_v26, %v322_v26  ;;  %v534_v33 = vld [vmem:[#allocation2 + $0x2] sm:$0xff]  ;;  %v535_v34 = vld [vmem:[#allocation2 + $0xa] sm:$0xff]  ;;  %v536_v51 = vld [vmem:[#allocation2 + $0x12] sm:$0xff] }
  0x1e   : > { %v537_v36 = vpack.c.bf16 %v535_v34, %v534_v33  ;;  %v655_v37 = vld [vmem:[#allocation2 + $0x6] sm:$0xff]  ;;  %v5898_v39 = vld [vmem:[#allocation2 + $0xe] sm:$0xff]  ;;  %v5934_v53 = vld [vmem:[#allocation2 + $0x16] sm:$0xff]  ;;  %v538_v56 = vpack.c.bf16 %v536_v51, %v536_v51 }
  0x1f   : > { %4889 = vmatpush3.bf16.msra.mxu0 %v5549_v19  ;;  %4892 = vmatprep.mubr.bf16.mxu0 %v323_v25  ;;  %v658_v40 = vpack.c.bf16 %v5898_v39, %v655_v37  ;;  %v776_v55 = vld [vmem:[#allocation2 + $0x7] sm:$0xff]  ;;  %v777_v57 = vld [vmem:[#allocation2 + $0xf] sm:$0xff]  ;;  %v659_v58 = vpack.c.bf16 %v5934_v53, %v5934_v53  ;;  %v778_v13 = vld [vmem:[#allocation2 + $0x17] sm:$0xff] }
  0x20   : > { %4909 = vmatpush3.bf16.msra.mxu1 %v5550_v20  ;;  %4890 = vmatprep.subr.bf16.mxu0 %v5551_v21  ;;  %v779_v61 = vpack.c.bf16 %v777_v57, %v776_v55  ;;  %v1018_v16 = vld [vmem:[#allocation2 + $0xc] sm:$0xff]  ;;  %v1019_v17 = vld [vmem:[#allocation2 + $0x14] sm:$0xff]  ;;  %v1262_v51 = vld [vmem:[#allocation2 + $0x1e] sm:$0xff] }
  0x21   : > { %4910 = vmatprep.subr.bf16.mxu1 %v5552_v22  ;;  %v1139_v19 = vld [vmem:[#allocation2 + $0xd] sm:$0xff]  ;;  %v1140_v20 = vld [vmem:[#allocation2 + $0x15] sm:$0xff]  ;;  %v1021_v24 = vpack.c.bf16 %v1019_v17, %v1018_v16 }
  0x22   : > { %v5592_v23 = vld [vmem:[%s6706_s1 + $0x1c8] sm:$0xff]   ;;  %v5593_v25 = vld [vmem:[%s6706_s1 + $0x190] sm:$0xff]   ;;  %v1142_v26 = vpack.c.bf16 %v1140_v20, %v1139_v19  ;;  %v5604_v37 = vld [vmem:[%s6706_s1 + $0x1f8] sm:$0xff]  }
  0x23   : > { %4891 = vmatpush3.bf16.msra.mxu0 %v5551_v21  ;;  %v780_v21 = vpack.c.bf16 %v778_v13, %v778_v13  ;;  %v5600_v33 = vld [vmem:[%s6706_s1 + $0x1e8] sm:$0xff]   ;;  %v5601_v34 = vld [vmem:[%s6706_s1 + $0x1b0] sm:$0xff]  }
  0x24   : > { %4911 = vmatpush3.bf16.msra.mxu1 %v5552_v22  ;;  %4916 = vmatprep.subr.bf16.mxu0 %v5555_v27  ;;  %v5591_v22 = vld [vmem:[%s6706_s1 + $0x188] sm:$0xff]  }
  0x25   : > { %4936 = vmatprep.subr.bf16.mxu1 %v5556_v28  ;;  %v5614_v55 = vld [vmem:[%s6708_s3 + $0x48] sm:$0xff]  }
  0x26   : > { %4893 = vmatmul.mubr.bf16.vlgmr.msra.gmra.mrb[0].mxu0 %v324_v29  ;;  %v5596_v29 = vld [vmem:[%s6706_s1 + $0x1d8] sm:$0xff]  }
  0x27   : > { %4913 = vmatmul.mubr.bf16.vlgmr.msra.gmra.mrb[0].mxu1 %v5554_v30  ;;  %4917 = vmatpush3.bf16.msra.mxu0 %v5555_v27  ;;  %v5594_v27 = vld [vmem:[%s6706_s1 + $0x1d0] sm:$0xff]   ;;  %v5597_v30 = vld [vmem:[%s6706_s1 + $0x1a0] sm:$0xff]  }
  0x28   : > { %4937 = vmatpush3.bf16.msra.mxu1 %v5556_v28  ;;  %4918 = vmatprep.subr.bf16.mxu0 %v5557_v31  ;;  %v5595_v28 = vld [vmem:[%s6706_s1 + $0x198] sm:$0xff]  }
  0x29   : > { %4938 = vmatprep.subr.bf16.mxu1 %v5558_v32  ;;  %4932 = vmatprep.mubr.bf16.mxu0 %v537_v36  ;;  %v5603_v36 = vld [vmem:[%s6706_s1 + $0x1b8] sm:$0xff]  }
  0x2a   : > { %4952 = vmatprep.mubr.bf16.mxu1 %v658_v40  ;;  %v5605_v40 = vld [vmem:[%s6706_s1 + $0x200] sm:$0xff]  }
  0x2b   : > { %4919 = vmatpush3.bf16.msra.mxu0 %v5557_v31  ;;  %v5598_v31 = vld [vmem:[%s6706_s1 + $0x1e0] sm:$0xff]  }
  0x2c   : > { %4939 = vmatpush3.bf16.msra.mxu1 %v5558_v32  ;;  %4920 = vmatprep.subr.bf16.mxu0 %v5559_v35  ;;  %v5599_v32 = vld [vmem:[%s6706_s1 + $0x1a8] sm:$0xff]  }
  0x2d   : > { %4940 = vmatprep.subr.bf16.mxu1 %v5560_v38 }
  0x2f   : > { %4921 = vmatpush3.bf16.msra.mxu0 %v5559_v35  ;;  %v5602_v35 = vld [vmem:[%s6706_s1 + $0x1f0] sm:$0xff]  }
  0x30   : > { %4941 = vmatpush3.bf16.msra.mxu1 %v5560_v38  ;;  %4922 = vmatprep.subr.bf16.mxu0 %v5561_v41  ;;  %v1020_v38 = vld [vmem:[#allocation2 + $0x1c] sm:$0xff] }
  0x31   : > { %4942 = vmatprep.subr.bf16.mxu1 %v5562_v42 }
  0x33   : > { %4923 = vmatpush3.bf16.msra.mxu0 %v5561_v41  ;;  %v1141_v41 = vld [vmem:[#allocation2 + $0x1d] sm:$0xff] }
  0x34   : > { %4943 = vmatpush3.bf16.msra.mxu1 %v5562_v42  ;;  %4924 = vmatprep.subr.bf16.mxu0 %v5563_v43  ;;  %v1022_v42 = vpack.c.bf16 %v1020_v38, %v1020_v38  ;;  %1419 = vst [vmem:[#allocation2 + $0x20] sm:$0xff] %v5781_v1 }
  0x35   : > { %4944 = vmatprep.subr.bf16.mxu1 %v5564_v44 }
  0x37   : > { %4925 = vmatpush3.bf16.msra.mxu0 %v5563_v43  ;;  %v5606_v43 = vld [vmem:[%s6706_s1 + $0x208] sm:$0xff]  }
  0x38   : > { %4945 = vmatpush3.bf16.msra.mxu1 %v5564_v44  ;;  %4926 = vmatprep.subr.bf16.mxu0 %v5565_v45  ;;  %v1143_v44 = vpack.c.bf16 %v1141_v41, %v1141_v41  ;;  %v226_v41 = vlaneseq }
  0x39   : > { %4946 = vmatprep.subr.bf16.mxu1 %v5566_v46 }
  0x3b   : > { %4927 = vmatpush3.bf16.msra.mxu0 %v5565_v45  ;;  %v1263_v45 = vpack.c.bf16 %v5934_v53, %v5898_v39  ;;  %v5610_v39 = vld [vmem:[%s6706_s1 + $0x228] sm:$0xff]   ;;  %v5613_v53 = vld [vmem:[%s6708_s3 + $0x40] sm:$0xff]  }
  0x3c   : > { %4947 = vmatpush3.bf16.msra.mxu1 %v5566_v46  ;;  %4928 = vmatprep.subr.bf16.mxu0 %v5567_v47  ;;  %v5607_v46 = vld [vmem:[%s6706_s1 + $0x210] sm:$0xff]  }
  0x3d   : > { %4948 = vmatprep.subr.bf16.mxu1 %v5568_v48 }
  0x3f   : > { %4929 = vmatpush3.bf16.msra.mxu0 %v5567_v47  ;;  %v5608_v47 = vld [vmem:[%s6706_s1 + $0x218] sm:$0xff]  }
  0x40   : > { %4949 = vmatpush3.bf16.msra.mxu1 %v5568_v48  ;;  %4930 = vmatprep.subr.bf16.mxu0 %v5569_v49  ;;  %v5609_v48 = vld [vmem:[%s6706_s1 + $0x220] sm:$0xff]  }
  0x41   : > { %4950 = vmatprep.subr.bf16.mxu1 %v5570_v50 }
  0x43   : > { %4931 = vmatpush3.bf16.msra.mxu0 %v5569_v49  ;;  %v5611_v49 = vld [vmem:[%s6706_s1 + $0x230] sm:$0xff]  }
  0x44   : > { %4951 = vmatpush3.bf16.msra.mxu1 %v5570_v50  ;;  %4956 = vmatprep.subr.bf16.mxu0 %v5571_v52  ;;  %v5612_v50 = vld [vmem:[%s6706_s1 + $0x238] sm:$0xff]  }
  0x45   : > { %4976 = vmatprep.subr.bf16.mxu1 %v5572_v54 }
  0x46   : > { %4933 = vmatmul.mubr.bf16.vlgmr.msra.gmra.mrb[4].mxu0 %v538_v56 }
  0x47   : > { %4957 = vmatpush3.bf16.msra.mxu0 %v5571_v52  ;;  %4953 = vmatmul.mubr.bf16.vlgmr.msra.gmra.mrb[4].mxu1 %v659_v58  ;;  %v1264_v52 = vpack.c.bf16 %v1262_v51, %v1262_v51 }
  0x48   : > { %4977 = vmatpush3.bf16.msra.mxu1 %v5572_v54  ;;  %4958 = vmatprep.subr.bf16.mxu0 %v5573_v59 }
  0x49   : > { %4978 = vmatprep.subr.bf16.mxu1 %v5574_v60  ;;  %4972 = vmatprep.mubr.bf16.mxu0 %v779_v61 }
  0x4a   : > { %4992 = vmatprep.mubr.bf16.mxu1 %v5588_v62 }
  0x4b   : > { %4959 = vmatpush3.bf16.msra.mxu0 %v5573_v59 }
  0x4c   : > { %4979 = vmatpush3.bf16.msra.mxu1 %v5574_v60  ;;  %4960 = vmatprep.subr.bf16.mxu0 %v5575_v63 }
  0x4d   : > { %4980 = vmatprep.subr.bf16.mxu1 %v5576_v0 }
  0x4f   : > { %4961 = vmatpush3.bf16.msra.mxu0 %v5575_v63 }
  0x50   : > { %4981 = vmatpush3.bf16.msra.mxu1 %v5576_v0  ;;  %4962 = vmatprep.subr.bf16.mxu0 %v5577_v2 }
  0x51   : > { %4982 = vmatprep.subr.bf16.mxu1 %v5578_v4 }
  0x53   : > { %4963 = vmatpush3.bf16.msra.mxu0 %v5577_v2  ;;  %v5615_v2 = vld [vmem:[%s6708_s3 + $0x50] sm:$0xff]  }
  0x54   : > { %4983 = vmatpush3.bf16.msra.mxu1 %v5578_v4  ;;  %4964 = vmatprep.subr.bf16.mxu0 %v5579_v5  ;;  %v5616_v4 = vld [vmem:[%s6708_s3 + $0x58] sm:$0xff]  }
  0x55   : > { %4984 = vmatprep.subr.bf16.mxu1 %v5580_v6 }
  0x57   : > { %4965 = vmatpush3.bf16.msra.mxu0 %v5579_v5  ;;  %v5617_v5 = vld [vmem:[%s6708_s3 + $0x60] sm:$0xff]  }
  0x58   : > { %4985 = vmatpush3.bf16.msra.mxu1 %v5580_v6  ;;  %4966 = vmatprep.subr.bf16.mxu0 %v5581_v7  ;;  %v3867_v6 = vld [vmem:[#allocation3 + $0x28] sm:$0x3] }
  0x59   : > { %4986 = vmatprep.subr.bf16.mxu1 %v5582_v8 }
  0x5b   : > { %4967 = vmatpush3.bf16.msra.mxu0 %v5581_v7  ;;  %v3873_v7 = vmax.f32 %v3867_v6, 0.0 }
  0x5c   : > { %4987 = vmatpush3.bf16.msra.mxu1 %v5582_v8  ;;  %4968 = vmatprep.subr.bf16.mxu0 %v5583_v9  ;;  %v5618_v8 = vld [vmem:[%s6708_s3 + $0x68] sm:$0xff]  }
  0x5d   : > { %4988 = vmatprep.subr.bf16.mxu1 %v5584_v10  ;;  %3879 = vst [vmem:[%s6084_s23 + $0x28] sm:$0x3] %v3873_v7 }
  0x5f   : > { %4969 = vmatpush3.bf16.msra.mxu0 %v5583_v9  ;;  %v5619_v9 = vld [vmem:[%s6708_s3 + $0x70] sm:$0xff]  }
  0x60   : > { %4989 = vmatpush3.bf16.msra.mxu1 %v5584_v10  ;;  %4970 = vmatprep.subr.bf16.mxu0 %v5585_v11  ;;  %v5620_v10 = vld [vmem:[%s6708_s3 + $0x78] sm:$0xff]  }
  0x61   : > { %4990 = vmatprep.subr.bf16.mxu1 %v5586_v12 }
  0x63   : > { %4971 = vmatpush3.bf16.msra.mxu0 %v5585_v11  ;;  %v6102_v11 = vld [vmem:[%s6708_s3] sm:$0xff]  }
  0x64   : > { %4991 = vmatpush3.bf16.msra.mxu1 %v5586_v12  ;;  %4996 = vmatprep.subr.bf16.mxu0 %v5587_v14 }
  0x65   : > { %5016 = vmatprep.subr.bf16.mxu1 %v5590_v15 }
  0x66   : > { %4973 = vmatmul.mubr.bf16.vlgmr.msra.gmra.mrb[8].mxu0 %v780_v21 }
  0x67   : > { %4997 = vmatpush3.bf16.msra.mxu0 %v5587_v14  ;;  %4993 = vmatmul.mubr.bf16.vlgmr.msra.gmra.mrb[8].mxu1 %v5589_v18 }
  0x68   : > { %5017 = vmatpush3.bf16.msra.mxu1 %v5590_v15  ;;  %4998 = vmatprep.subr.bf16.mxu0 %v5591_v22 }
  0x69   : > { %5018 = vmatprep.subr.bf16.mxu1 %v5592_v23  ;;  %5012 = vmatprep.mubr.bf16.mxu0 %v1021_v24 }
  0x6a   : > { %5032 = vmatprep.mubr.bf16.mxu1 %v1142_v26 }
  0x6b   : > { %4999 = vmatpush3.bf16.msra.mxu0 %v5591_v22 }
  0x6c   : > { %5019 = vmatpush3.bf16.msra.mxu1 %v5592_v23  ;;  %5000 = vmatprep.subr.bf16.mxu0 %v5593_v25 }
  0x6d   : > { %5020 = vmatprep.subr.bf16.mxu1 %v5594_v27 }
  0x6f   : > { %5001 = vmatpush3.bf16.msra.mxu0 %v5593_v25 }
  0x70   : > { %5021 = vmatpush3.bf16.msra.mxu1 %v5594_v27  ;;  %5002 = vmatprep.subr.bf16.mxu0 %v5595_v28 }
  0x71   : > { %5022 = vmatprep.subr.bf16.mxu1 %v5596_v29 }
  0x73   : > { %5003 = vmatpush3.bf16.msra.mxu0 %v5595_v28 }
  0x74   : > { %5023 = vmatpush3.bf16.msra.mxu1 %v5596_v29  ;;  %5004 = vmatprep.subr.bf16.mxu0 %v5597_v30 }
  0x75   : > { %5024 = vmatprep.subr.bf16.mxu1 %v5598_v31 }
  0x77   : > { %5005 = vmatpush3.bf16.msra.mxu0 %v5597_v30 }
  0x78   : > { %5025 = vmatpush3.bf16.msra.mxu1 %v5598_v31  ;;  %5006 = vmatprep.subr.bf16.mxu0 %v5599_v32 }
  0x79   : > { %5026 = vmatprep.subr.bf16.mxu1 %v5600_v33 }
  0x7b   : > { %5007 = vmatpush3.bf16.msra.mxu0 %v5599_v32 }
  0x7c   : > { %5027 = vmatpush3.bf16.msra.mxu1 %v5600_v33  ;;  %5008 = vmatprep.subr.bf16.mxu0 %v5601_v34 }
  0x7d   : > { %5028 = vmatprep.subr.bf16.mxu1 %v5602_v35 }
  0x7f   : > { %5009 = vmatpush3.bf16.msra.mxu0 %v5601_v34 }
  0x80   : > { %5029 = vmatpush3.bf16.msra.mxu1 %v5602_v35  ;;  %5010 = vmatprep.subr.bf16.mxu0 %v5603_v36 }
  0x81   : > { %5030 = vmatprep.subr.bf16.mxu1 %v5604_v37 }
  0x83   : > { %5011 = vmatpush3.bf16.msra.mxu0 %v5603_v36 }
  0x84   : > { %5031 = vmatpush3.bf16.msra.mxu1 %v5604_v37  ;;  %5036 = vmatprep.subr.bf16.mxu0 %v5605_v40 }
  0x85   : > { %5056 = vmatprep.subr.bf16.mxu1 %v5613_v53 }
  0x86   : > { %5013 = vmatmul.mubr.bf16.vlgmr.msra.gmra.mrb[12].mxu0 %v1022_v42  ;;  %v227_v42 = vshrl.u32 %v226_v41, 7 }
  0x87   : > { %5037 = vmatpush3.bf16.msra.mxu0 %v5605_v40  ;;  %5033 = vmatmul.mubr.bf16.vlgmr.msra.gmra.mrb[12].mxu1 %v1143_v44 }
  0x88   : > { %5038 = vmatprep.subr.bf16.mxu0 %v5606_v43  ;;  %5052 = vmatprep.mubr.bf16.mxu0 %v1263_v45 }
  0x89   : > { %5057 = vmatpush3.bf16.msra.mxu1 %v5613_v53 }
  0x8a   : > { %5058 = vmatprep.subr.bf16.mxu1 %v5614_v55 }
  0x8b   : > { %5039 = vmatpush3.bf16.msra.mxu0 %v5606_v43 }
  0x8c   : > { %5040 = vmatprep.subr.bf16.mxu0 %v5607_v46 }
  0x8d   : > { %5059 = vmatpush3.bf16.msra.mxu1 %v5614_v55 }
  0x8e   : > { %5060 = vmatprep.subr.bf16.mxu1 %v5615_v2 }
  0x8f   : > { %5041 = vmatpush3.bf16.msra.mxu0 %v5607_v46 }
  0x90   : > { %5042 = vmatprep.subr.bf16.mxu0 %v5608_v47 }
  0x91   : > { %5061 = vmatpush3.bf16.msra.mxu1 %v5615_v2 }
  0x92   : > { %5062 = vmatprep.subr.bf16.mxu1 %v5616_v4 }
  0x93   : > { %5043 = vmatpush3.bf16.msra.mxu0 %v5608_v47  ;;  %v229_v47 = vadd.s32 16, %v227_v42 }
  0x94   : > { %5044 = vmatprep.subr.bf16.mxu0 %v5609_v48 }
  0x95   : > { %5063 = vmatpush3.bf16.msra.mxu1 %v5616_v4 }
  0x96   : > { %5064 = vmatprep.subr.bf16.mxu1 %v5617_v5 }
  0x97   : > { %5045 = vmatpush3.bf16.msra.mxu0 %v5609_v48 }
  0x98   : > { %5046 = vmatprep.subr.bf16.mxu0 %v5610_v39 }
  0x99   : > { %5065 = vmatpush3.bf16.msra.mxu1 %v5617_v5 }
  0x9a   : > { %5066 = vmatprep.subr.bf16.mxu1 %v5618_v8 }
  0x9b   : > { %5047 = vmatpush3.bf16.msra.mxu0 %v5610_v39 }
  0x9c   : > { %5048 = vmatprep.subr.bf16.mxu0 %v5611_v49 }
  0x9d   : > { %5067 = vmatpush3.bf16.msra.mxu1 %v5618_v8 }
  0x9e   : > { %5068 = vmatprep.subr.bf16.mxu1 %v5619_v9 }
  0x9f   : > { %5049 = vmatpush3.bf16.msra.mxu0 %v5611_v49 }
  0xa0   : > { %5050 = vmatprep.subr.bf16.mxu0 %v5612_v50 }
  0xa1   : > { %5069 = vmatpush3.bf16.msra.mxu1 %v5619_v9 }
  0xa2   : > { %5070 = vmatprep.subr.bf16.mxu1 %v5620_v10 }
  0xa3   : > { %5051 = vmatpush3.bf16.msra.mxu0 %v5612_v50 }
  0xa5   : > { %5071 = vmatpush3.bf16.msra.mxu1 %v5620_v10 }
  0xa6   : > { %5053 = vmatmul.mubr.bf16.vlgmr.msra.gmra.mrb[16].mxu0 %v1264_v52  ;;  %5076 = vmatprep.subr.bf16.mxu1 %v6102_v11 }
  0xf9   : > { %v4894_v54 = vpop.f32.mrb[0].mxu0 }
  0xfa   : > { %v4914_v56 = vpop.f32.mrb[0].mxu1  ;;  %v424_v57 = vpop.f32.mrb[1].mxu0 }
  0xfb   : > { %v529_v58 = vadd.f32 %v4914_v56, %v4894_v54  ;;  %v520_v59 = vpop.f32.mrb[1].mxu1  ;;  %v4895_v60 = vpop.f32.mrb[2].mxu0  ;;  %v228_v56 = vadd.s32 8, %v227_v42 }
  0xfc   : > { %v521_v61 = vadd.f32 %v520_v59, %v424_v57  ;;  %v4915_v62 = vpop.f32.mrb[2].mxu1  ;;  %v427_v63 = vpop.f32.mrb[3].mxu0 }
  0xfd   : > { %v523_v0 = vpop.f32.mrb[3].mxu1 }
  0xfe   : > { %v524_v3 = vadd.f32 %v523_v0, %v427_v63  ;;  %v6111_v62 = vmul.u32.u64.low 2863311531, %v228_v56  ;;  %v6112_v63 = vmul.u32.u64.high 2863311531, %v228_v56, %v6111_v62 }
  0xff   : > { %v5630_v62 = vld [vmem:[%s6708_s3 + $0x88] sm:$0xff]  }
 0x119   : > { %v4934_v12 = vpop.f32.mrb[4].mxu0 }
 0x11a   : > { %v654_v13 = vadd.f32 %v4934_v12, %v529_v58  ;;  %v638_v14 = vpop.f32.mrb[5].mxu0  ;;  %v4954_v15 = vpop.f32.mrb[4].mxu1  ;;  %v6105_v57 = vmul.u32.u64.low 2863311531, %v229_v47  ;;  %v6106_v58 = vmul.u32.u64.high 2863311531, %v229_v47, %v6105_v57 }
 0x11b   : > { %v652_v16 = vadd.f32 %v638_v14, %v521_v61  ;;  %v4935_v17 = vpop.f32.mrb[6].mxu0  ;;  %v759_v18 = vpop.f32.mrb[5].mxu1  ;;  %v6108_v60 = vmul.u32.u64.low 2863311531, %v227_v42  ;;  %v6109_v61 = vmul.u32.u64.high 2863311531, %v227_v42, %v6108_v60  ;;  %v5628_v57 = vld [vmem:[%s6708_s3 + $0x38] sm:$0xff]  }
 0x11c   : > { %v775_v19 = vadd.f32 %v4954_v15, %v654_v13  ;;  %v641_v20 = vpop.f32.mrb[7].mxu0  ;;  %v4955_v21 = vpop.f32.mrb[6].mxu1  ;;  %v258_v0 = vshrl.u32 %v6106_v58, 2  ;;  %v4142_v17 = vld [vmem:[%s6707_s2] ss:$0 sm:$0xff]  ;;  %v5639_v15 = vld [vmem:[%s6708_s3 + $0xd0] sm:$0xff]  }
 0x11d   : > { %v653_v22 = vadd.f32 %v641_v20, %v524_v3  ;;  %v773_v23 = vadd.f32 %v759_v18, %v652_v16  ;;  %v762_v24 = vpop.f32.mrb[7].mxu1  ;;  %v236_v2 = vshrl.u32 %v6109_v61, 2  ;;  %v247_v3 = vshrl.u32 %v6112_v63, 2  ;;  %v5629_v58 = vld [vmem:[%s6708_s3 + $0x80] sm:$0xff]  }
 0x11e   : > { %v259_v4 = vmul.u32 6, %v258_v0  ;;  %v5631_v0 = vld [vmem:[%s6708_s3 + $0x90] sm:$0xff]  }
 0x11f   : > { %v774_v25 = vadd.f32 %v762_v24, %v653_v22  ;;  %v237_v5 = vmul.u32 6, %v236_v2  ;;  %v248_v6 = vmul.u32 6, %v247_v3  ;;  %v5632_v2 = vld [vmem:[%s6708_s3 + $0x98] sm:$0xff]   ;;  %v5633_v3 = vld [vmem:[%s6708_s3 + $0xa0] sm:$0xff]  }
 0x120   : > { %v260_v7 = vsub.s32 %v229_v47, %v259_v4  ;;  %v5634_v4 = vld [vmem:[%s6708_s3 + $0xa8] sm:$0xff]  }
 0x121   : > { %v238_v8 = vsub.s32 %v227_v42, %v237_v5  ;;  %v249_v9 = vsub.s32 %v228_v56, %v248_v6  ;;  %v5627_v56 = vld [vmem:[%s6708_s3 + $0x30] sm:$0xff]   ;;  %v5636_v6 = vld [vmem:[%s6708_s3 + $0xb8] sm:$0xff]  }
 0x122   : > { %vm265_vm0 = vcmp.ne.s32.totalorder %v260_v7, 0  ;;  %vm268_vm1 = vcmp.lt.s32.totalorder %v260_v7, 0  ;;  %v274_v10 = vadd.s32 6, %v260_v7  ;;  %v5635_v5 = vld [vmem:[%s6708_s3 + $0xb0] sm:$0xff]  }
 0x123   : > { %vm263_vm2 = vcmp.ne.s32.totalorder %v238_v8, 0  ;;  %vm266_vm3 = vcmp.lt.s32.totalorder %v238_v8, 0  ;;  %vm271_vm4 = vmand %vm268_vm1, %vm265_vm0  ;;  %v272_v12 = vadd.s32 6, %v238_v8  ;;  %vm264_vm5 = vcmp.ne.s32.totalorder %v249_v9, 0 }
 0x124   : > { %vm267_vm6 = vcmp.lt.s32.totalorder %v249_v9, 0  ;;  %vm269_vm7 = vmand %vm266_vm3, %vm263_vm2  ;;  %v273_v13 = vadd.s32 6, %v249_v9  ;;  %v277_v14 = vsel %vm271_vm4, %v274_v10, %v260_v7  ;;  %v5637_v7 = vld [vmem:[%s6708_s3 + $0xc0] sm:$0xff]  }
 0x125   : > { %vm6117_vm8 = vmand %vm267_vm6, %vm264_vm5  ;;  %v275_v18 = vsel %vm269_vm7, %v272_v12, %v238_v8  ;;  %vm6124_vm9 = vcmp.lt.s32.totalorder %v277_v14, 4 }
 0x126   : > { %v276_v24 = vsel %vm6117_vm8, %v273_v13, %v249_v9  ;;  %vm6130_vm10 = vcmp.lt.s32.totalorder %v275_v18, 4  ;;  %v5638_v13 = vld [vmem:[%s6708_s3 + $0xc8] sm:$0xff]  }
 0x127   : > { %vm6136_vm11 = vcmp.lt.s32.totalorder %v276_v24, 4  ;;  %v5642_v18 = vld [vmem:[%s6708_s3 + $0xe8] sm:$0xff]  }
 0x139   : > { %v4974_v26 = vpop.f32.mrb[8].mxu0 }
 0x13a   : > { %v896_v27 = vadd.f32 %v4974_v26, %v775_v19  ;;  %v880_v28 = vpop.f32.mrb[9].mxu0  ;;  %v4994_v29 = vpop.f32.mrb[8].mxu1 }
 0x13b   : > { %v894_v30 = vadd.f32 %v880_v28, %v773_v23  ;;  %v4975_v31 = vpop.f32.mrb[10].mxu0  ;;  %v1001_v32 = vpop.f32.mrb[9].mxu1 }
 0x13c   : > { %v1017_v33 = vadd.f32 %v4994_v29, %v896_v27  ;;  %v883_v34 = vpop.f32.mrb[11].mxu0  ;;  %v4995_v35 = vpop.f32.mrb[10].mxu1 }
 0x13d   : > { %v895_v36 = vadd.f32 %v883_v34, %v774_v25  ;;  %v1015_v37 = vadd.f32 %v1001_v32, %v894_v30  ;;  %v1004_v38 = vpop.f32.mrb[11].mxu1 }
 0x13f   : > { %v1016_v40 = vadd.f32 %v1004_v38, %v895_v36 }
 0x159   : > { %v5014_v43 = vpop.f32.mrb[12].mxu0 }
 0x15a   : > { %v1138_v44 = vadd.f32 %v5014_v43, %v1017_v33  ;;  %v1122_v45 = vpop.f32.mrb[13].mxu0  ;;  %v5034_v46 = vpop.f32.mrb[12].mxu1 }
 0x15b   : > { %v1136_v48 = vadd.f32 %v1122_v45, %v1015_v37  ;;  %v5015_v39 = vpop.f32.mrb[14].mxu0  ;;  %v1243_v49 = vpop.f32.mrb[13].mxu1 }
 0x15c   : > { %v1259_v50 = vadd.f32 %v5034_v46, %v1138_v44  ;;  %v1125_v51 = vpop.f32.mrb[15].mxu0  ;;  %v5035_v52 = vpop.f32.mrb[14].mxu1 }
 0x15d   : > { %v1137_v53 = vadd.f32 %v1125_v51, %v1016_v40  ;;  %v1257_v54 = vadd.f32 %v1243_v49, %v1136_v48  ;;  %v1246_v55 = vpop.f32.mrb[15].mxu1  ;;  %v5622_v52 = vld [vmem:[%s6708_s3 + $0x8] sm:$0xff]  }
 0x15f   : > { %v1258_v59 = vadd.f32 %v1246_v55, %v1137_v53  ;;  %v5625_v55 = vld [vmem:[%s6708_s3 + $0x20] sm:$0xff]  }
 0x179   : > { %v5054_v16 = vpop.f32.mrb[16].mxu0 }
 0x17a   : > { %v1380_v19 = vadd.f32 %v5054_v16, %v1259_v50  ;;  %v1364_v20 = vpop.f32.mrb[17].mxu0  ;;  %v5640_v16 = vld [vmem:[%s6708_s3 + $0xd8] sm:$0xff]  }
 0x17b   : > { %v1378_v22 = vadd.f32 %v1364_v20, %v1257_v54  ;;  %v5055_v23 = vpop.f32.mrb[18].mxu0  ;;  %v5624_v54 = vld [vmem:[%s6708_s3 + $0x18] sm:$0xff]  }
 0x17c   : > { %v1390_v25 = vadd.f32 %v4142_v17, %v1380_v19  ;;  %v1367_v27 = vpop.f32.mrb[19].mxu0  ;;  %v5643_v19 = vld [vmem:[%s6708_s3 + $0xf0] sm:$0xff]   ;;  %v5644_v20 = vld [vmem:[%s6708_s3 + $0xf8] sm:$0xff]  }
 0x17d   : > { %v1388_v28 = vadd.f32 %v4142_v17, %v1378_v22  ;;  %v1379_v29 = vadd.f32 %v1367_v27, %v1258_v59  ;;  %v5645_v22 = vld [vmem:[%s6708_s3 + $0x100] sm:$0xff]  }
 0x17e   : > { %v1399_v30 = vsel %vm6124_vm9, %v1390_v25, 0.0 }
 0x17f   : > { %1402 = vst [vmem:[#allocation3 + $0x17] sm:$0xff] %v1399_v30  ;;  %v1397_v32 = vsel %vm6130_vm10, %v1388_v28, 0.0  ;;  %v1389_v33 = vadd.f32 %v4142_v17, %v1379_v29  ;;  %v5641_v17 = vld [vmem:[%s6708_s3 + $0xe0] sm:$0xff]   ;;  %v5646_v28 = vld [vmem:[%s6708_s3 + $0x108] sm:$0xff]   ;;  %v5647_v30 = vld [vmem:[%s6708_s3 + $0x110] sm:$0xff]  }
 0x180   : > { %1400 = vst [vmem:[#allocation3 + $0x7] sm:$0xff] %v1397_v32  ;;  %v5648_v32 = vld [vmem:[%s6708_s3 + $0x118] sm:$0xff]  }
 0x181   : > { %v6144_v34 = vsel %vm6136_vm11, %v1389_v33, 0.0  ;;  %v5649_v33 = vld [vmem:[%s6708_s3 + $0x120] sm:$0xff]  }
 0x182   : > { %1401 = vst [vmem:[#allocation3 + $0xf] sm:$0xff] %v6144_v34 }
 0x186   : > { %v1406_v35 = vld [vmem:[#allocation3 + $0x18] sm:$0xff] }
 0x187   : > { %v6147_v36 = vmax.f32 %v1406_v35, 0.0  ;;  %v1403_v37 = vld [vmem:[#allocation3] sm:$0xff]  ;;  %v5650_v35 = vld [vmem:[%s6708_s3 + $0x128] sm:$0xff]  }
 0x188   : > { %v1409_v38 = vmax.f32 %v1403_v37, 0.0  ;;  %v5651_v37 = vld [vmem:[%s6708_s3 + $0x130] sm:$0xff]  }
 0x189   : > { %1418 = vst [vmem:[#allocation2 + $0x18] sm:$0xff] %v6147_v36  ;;  %v1404_v40 = vld [vmem:[#allocation3 + $0x8] sm:$0xff]  ;;  %v1405_v41 = vld [vmem:[#allocation3 + $0x10] sm:$0xff] }
 0x18a   : > { %1415 = vst [vmem:[#allocation2] sm:$0xff] %v1409_v38  ;;  %v6150_v42 = vmax.f32 %v1404_v40, 0.0  ;;  %v6152_v43 = vmax.f32 %v1405_v41, 0.0  ;;  %v5653_v40 = vld [vmem:[%s6708_s3 + $0x140] sm:$0xff]  }
 0x18c   : > { %1416 = vst [vmem:[#allocation2 + $0x8] sm:$0xff] %v6150_v42  ;;  %1417 = vst [vmem:[#allocation2 + $0x10] sm:$0xff] %v6152_v43  ;;  %v2022_v44 = vpack.c.bf16 %v6152_v43, %v6150_v42  ;;  %v1424_v53 = vpack.c.bf16 %v6150_v42, %v1409_v38  ;;  %v1425_v61 = vpack.c.bf16 %v6152_v43, %v6152_v43  ;;  %v5652_v38 = vld [vmem:[%s6708_s3 + $0x138] sm:$0xff]   ;;  %v5657_v43 = vld [vmem:[%s6708_s3 + $0x160] sm:$0xff]  }
 0x18d   : > { %v5688_v42 = vld [vmem:[%s6709_s4 + $0x18] sm:$0xff]  }
 0x190   : > { %v6158_v45 = vld [vmem:[#allocation2 + $0x1c] sm:$0xff] }
 0x191   : > { %v6160_v46 = vld [vmem:[#allocation2 + $0x1d] sm:$0xff] }
 0x192   : > { %v6162_v47 = vld [vmem:[#allocation2 + $0x1e] sm:$0xff] }
 0x193   : > { %2648 = vst [vmem:[#allocation2 + $0x20] sm:$0xff] %v5781_v1  ;;  %v1442_v48 = vld [vmem:[#allocation2 + $0x1] sm:$0xff]  ;;  %v1443_v39 = vld [vmem:[#allocation2 + $0x9] sm:$0xff]  ;;  %v1444_v49 = vld [vmem:[#allocation2 + $0x11] sm:$0xff] }
 0x194   : > { %v1445_v50 = vpack.c.bf16 %v1443_v39, %v1442_v48  ;;  %v1446_v51 = vpack.c.bf16 %v1444_v49, %v1444_v49  ;;  %v5623_v1 = vld [vmem:[%s6708_s3 + $0x10] sm:$0xff]   ;;  %v1656_v59 = vld [vmem:[#allocation2 + $0x2] sm:$0xff] }
 0x195   : > { %v1657_v60 = vld [vmem:[#allocation2 + $0xa] sm:$0xff]  ;;  %v1658_v8 = vld [vmem:[#allocation2 + $0x12] sm:$0xff]  ;;  %v5685_v49 = vld [vmem:[%s6709_s4] sm:$0xff]  }
 0x196   : > { %5072 = vmatprep.mubr.bf16.mxu1 %v1445_v50  ;;  %v1659_v63 = vpack.c.bf16 %v1657_v60, %v1656_v59  ;;  %v1777_v9 = vld [vmem:[#allocation2 + $0x6] sm:$0xff]  ;;  %v6217_v10 = vld [vmem:[#allocation2 + $0xe] sm:$0xff]  ;;  %v1660_v12 = vpack.c.bf16 %v1658_v8, %v1658_v8  ;;  %v6244_v23 = vld [vmem:[#allocation2 + $0x16] sm:$0xff]  ;;  %5236 = vmatprep.subr.bf16.mxu0 %v5685_v49  ;;  %v2023_v59 = vpack.c.bf16 %v6147_v36, %v6147_v36 }
 0x197   : > { %5073 = vmatmul.mubr.bf16.vlgmr.msra.gmra.mrb[16].mxu1 %v1446_v51  ;;  %v1780_v14 = vpack.c.bf16 %v6217_v10, %v1777_v9  ;;  %v1898_v24 = vld [vmem:[#allocation2 + $0x7] sm:$0xff]  ;;  %v1899_v25 = vld [vmem:[#allocation2 + $0xf] sm:$0xff]  ;;  %v1781_v27 = vpack.c.bf16 %v6244_v23, %v6244_v23  ;;  %v1900_v41 = vld [vmem:[#allocation2 + $0x17] sm:$0xff]  ;;  %5237 = vmatpush3.bf16.msra.mxu0 %v5685_v49 }
 0x198   : > { %5077 = vmatpush3.bf16.msra.mxu1 %v6102_v11  ;;  %5092 = vmatprep.mubr.bf16.mxu1 %v1424_v53  ;;  %v5626_v11 = vld [vmem:[%s6708_s3 + $0x28] sm:$0xff]   ;;  %v1901_v29 = vpack.c.bf16 %v1899_v25, %v1898_v24  ;;  %v1902_v48 = vpack.c.bf16 %v1900_v41, %v1900_v41  ;;  %v5655_v51 = vld [vmem:[%s6708_s3 + $0x150] sm:$0xff]   ;;  %v5656_v53 = vld [vmem:[%s6708_s3 + $0x158] sm:$0xff]  }
 0x199   : > { %5078 = vmatprep.subr.bf16.mxu1 %v5622_v52  ;;  %v5654_v39 = vld [vmem:[%s6708_s3 + $0x148] sm:$0xff]   ;;  %v5664_v36 = vld [vmem:[%s6708_s3 + $0x198] sm:$0xff]   ;;  %v5683_v24 = vld [vmem:[%s6708_s3 + $0x230] sm:$0xff]  }
 0x19a   : > { %v5686_v50 = vld [vmem:[%s6709_s4 + $0x8] sm:$0xff]   ;;  %v5684_v25 = vld [vmem:[%s6708_s3 + $0x238] sm:$0xff]   ;;  %v5695_v49 = vld [vmem:[%s6708_s3 + $0x290] sm:$0xff]  }
 0x19b   : > { %5238 = vmatprep.subr.bf16.mxu0 %v5686_v50  ;;  %v5662_v60 = vld [vmem:[%s6708_s3 + $0x188] sm:$0xff]  }
 0x19c   : > { %5079 = vmatpush3.bf16.msra.mxu1 %v5622_v52  ;;  %v5687_v52 = vld [vmem:[%s6709_s4 + $0x10] sm:$0xff]   ;;  %5239 = vmatpush3.bf16.msra.mxu0 %v5686_v50  ;;  %v5670_v8 = vld [vmem:[%s6708_s3 + $0x1c8] sm:$0xff]   ;;  %v5696_v50 = vld [vmem:[%s6708_s3 + $0x298] sm:$0xff]  }
 0x19d   : > { %5080 = vmatprep.subr.bf16.mxu1 %v5623_v1  ;;  %5240 = vmatprep.subr.bf16.mxu0 %v5687_v52 }
 0x1a0   : > { %5081 = vmatpush3.bf16.msra.mxu1 %v5623_v1  ;;  %5241 = vmatpush3.bf16.msra.mxu0 %v5687_v52  ;;  %v5658_v1 = vld [vmem:[%s6708_s3 + $0x168] sm:$0xff]  }
 0x1a1   : > { %5082 = vmatprep.subr.bf16.mxu1 %v5624_v54  ;;  %5242 = vmatprep.subr.bf16.mxu0 %v5688_v42  ;;  %v5698_v52 = vld [vmem:[%s6708_s3 + $0x2a8] sm:$0xff]  }
 0x1a4   : > { %5083 = vmatpush3.bf16.msra.mxu1 %v5624_v54  ;;  %5243 = vmatpush3.bf16.msra.mxu0 %v5688_v42  ;;  %v5690_v54 = vld [vmem:[%s6709_s4 + $0x28] sm:$0xff]   ;;  %v5700_v42 = vld [vmem:[%s6708_s3 + $0x2b8] sm:$0xff]  }
 0x1a5   : > { %5084 = vmatprep.subr.bf16.mxu1 %v5625_v55 }
 0x1a8   : > { %5085 = vmatpush3.bf16.msra.mxu1 %v5625_v55  ;;  %v5659_v55 = vld [vmem:[%s6708_s3 + $0x170] sm:$0xff]  }
 0x1a9   : > { %5086 = vmatprep.subr.bf16.mxu1 %v5626_v11 }
 0x1ac   : > { %5087 = vmatpush3.bf16.msra.mxu1 %v5626_v11  ;;  %v5660_v11 = vld [vmem:[%s6708_s3 + $0x178] sm:$0xff]  }
 0x1ad   : > { %5088 = vmatprep.subr.bf16.mxu1 %v5627_v56 }
 0x1b0   : > { %5089 = vmatpush3.bf16.msra.mxu1 %v5627_v56  ;;  %v5661_v56 = vld [vmem:[%s6708_s3 + $0x180] sm:$0xff]  }
 0x1b1   : > { %5090 = vmatprep.subr.bf16.mxu1 %v5628_v57 }
 0x1b4   : > { %5091 = vmatpush3.bf16.msra.mxu1 %v5628_v57  ;;  %v2140_v57 = vld [vmem:[#allocation2 + $0xc] sm:$0xff] }
 0x1b5   : > { %5096 = vmatprep.subr.bf16.mxu1 %v5629_v58 }
 0x1b7   : > { %5093 = vmatmul.mubr.bf16.vlgmr.msra.gmra.mrb[16].mxu1 %v1425_v61 }
 0x1b8   : > { %5097 = vmatpush3.bf16.msra.mxu1 %v5629_v58  ;;  %5112 = vmatprep.mubr.bf16.mxu1 %v1659_v63  ;;  %v2141_v58 = vld [vmem:[#allocation2 + $0x14] sm:$0xff]  ;;  %v5665_v63 = vld [vmem:[%s6708_s3 + $0x1a0] sm:$0xff]  }
 0x1b9   : > { %5098 = vmatprep.subr.bf16.mxu1 %v5630_v62  ;;  %v2143_v61 = vpack.c.bf16 %v2141_v58, %v2140_v57 }
 0x1bc   : > { %5099 = vmatpush3.bf16.msra.mxu1 %v5630_v62  ;;  %v5663_v62 = vld [vmem:[%s6708_s3 + $0x190] sm:$0xff]  }
 0x1bd   : > { %5100 = vmatprep.subr.bf16.mxu1 %v5631_v0 }
 0x1c0   : > { %5101 = vmatpush3.bf16.msra.mxu1 %v5631_v0  ;;  %v5666_v0 = vld [vmem:[%s6708_s3 + $0x1a8] sm:$0xff]  }
 0x1c1   : > { %5102 = vmatprep.subr.bf16.mxu1 %v5632_v2 }
 0x1c4   : > { %5103 = vmatpush3.bf16.msra.mxu1 %v5632_v2  ;;  %v5667_v2 = vld [vmem:[%s6708_s3 + $0x1b0] sm:$0xff]  }
 0x1c5   : > { %5104 = vmatprep.subr.bf16.mxu1 %v5633_v3 }
 0x1c8   : > { %5105 = vmatpush3.bf16.msra.mxu1 %v5633_v3  ;;  %v5668_v3 = vld [vmem:[%s6708_s3 + $0x1b8] sm:$0xff]  }
 0x1c9   : > { %5106 = vmatprep.subr.bf16.mxu1 %v5634_v4 }
 0x1cc   : > { %5107 = vmatpush3.bf16.msra.mxu1 %v5634_v4  ;;  %v5669_v4 = vld [vmem:[%s6708_s3 + $0x1c0] sm:$0xff]  }
 0x1cd   : > { %5108 = vmatprep.subr.bf16.mxu1 %v5635_v5 }
 0x1d0   : > { %5109 = vmatpush3.bf16.msra.mxu1 %v5635_v5  ;;  %v2261_v5 = vld [vmem:[#allocation2 + $0xd] sm:$0xff] }
 0x1d1   : > { %5110 = vmatprep.subr.bf16.mxu1 %v5636_v6 }
 0x1d4   : > { %5111 = vmatpush3.bf16.msra.mxu1 %v5636_v6  ;;  %v2262_v6 = vld [vmem:[#allocation2 + $0x15] sm:$0xff] }
 0x1d5   : > { %5116 = vmatprep.subr.bf16.mxu1 %v5637_v7  ;;  %v2264_v9 = vpack.c.bf16 %v2262_v6, %v2261_v5 }
 0x1d7   : > { %5113 = vmatmul.mubr.bf16.vlgmr.msra.gmra.mrb[16].mxu1 %v1660_v12  ;;  %v5671_v12 = vld [vmem:[%s6708_s3 + $0x1d0] sm:$0xff]  }
 0x1d8   : > { %5117 = vmatpush3.bf16.msra.mxu1 %v5637_v7  ;;  %5132 = vmatprep.mubr.bf16.mxu1 %v1780_v14  ;;  %v2144_v7 = vpack.c.bf16 %v6158_v45, %v6158_v45  ;;  %v5672_v45 = vld [vmem:[%s6708_s3 + $0x1d8] sm:$0xff]   ;;  %v5674_v14 = vld [vmem:[%s6708_s3 + $0x1e8] sm:$0xff]  }
 0x1d9   : > { %5118 = vmatprep.subr.bf16.mxu1 %v5638_v13 }
 0x1dc   : > { %5119 = vmatpush3.bf16.msra.mxu1 %v5638_v13  ;;  %v5673_v13 = vld [vmem:[%s6708_s3 + $0x1e0] sm:$0xff]  }
 0x1dd   : > { %5120 = vmatprep.subr.bf16.mxu1 %v5639_v15 }
 0x1e0   : > { %5121 = vmatpush3.bf16.msra.mxu1 %v5639_v15  ;;  %v5675_v15 = vld [vmem:[%s6708_s3 + $0x1f0] sm:$0xff]  }
 0x1e1   : > { %5122 = vmatprep.subr.bf16.mxu1 %v5640_v16 }
 0x1e4   : > { %5123 = vmatpush3.bf16.msra.mxu1 %v5640_v16  ;;  %v5676_v16 = vld [vmem:[%s6708_s3 + $0x1f8] sm:$0xff]  }
 0x1e5   : > { %5124 = vmatprep.subr.bf16.mxu1 %v5641_v17 }
 0x1e8   : > { %5125 = vmatpush3.bf16.msra.mxu1 %v5641_v17  ;;  %v5677_v17 = vld [vmem:[%s6708_s3 + $0x200] sm:$0xff]  }
 0x1e9   : > { %5126 = vmatprep.subr.bf16.mxu1 %v5642_v18 }
 0x1ec   : > { %5127 = vmatpush3.bf16.msra.mxu1 %v5642_v18  ;;  %v2265_v18 = vpack.c.bf16 %v6160_v46, %v6160_v46  ;;  %v5680_v46 = vld [vmem:[%s6708_s3 + $0x218] sm:$0xff]  }
 0x1ed   : > { %5128 = vmatprep.subr.bf16.mxu1 %v5643_v19 }
 0x1f0   : > { %5129 = vmatpush3.bf16.msra.mxu1 %v5643_v19  ;;  %v5678_v19 = vld [vmem:[%s6708_s3 + $0x208] sm:$0xff]  }
 0x1f1   : > { %5130 = vmatprep.subr.bf16.mxu1 %v5644_v20 }
 0x1f4   : > { %5131 = vmatpush3.bf16.msra.mxu1 %v5644_v20  ;;  %v2385_v20 = vpack.c.bf16 %v6244_v23, %v6217_v10  ;;  %v5681_v10 = vld [vmem:[%s6708_s3 + $0x220] sm:$0xff]   ;;  %v5682_v23 = vld [vmem:[%s6708_s3 + $0x228] sm:$0xff]  }
 0x1f5   : > { %5136 = vmatprep.subr.bf16.mxu1 %v5645_v22 }
 0x1f7   : > { %5133 = vmatmul.mubr.bf16.vlgmr.msra.gmra.mrb[16].mxu1 %v1781_v27  ;;  %v2386_v27 = vpack.c.bf16 %v6162_v47, %v6162_v47 }
 0x1f8   : > { %5137 = vmatpush3.bf16.msra.mxu1 %v5645_v22  ;;  %5152 = vmatprep.mubr.bf16.mxu1 %v1901_v29  ;;  %v5679_v22 = vld [vmem:[%s6708_s3 + $0x210] sm:$0xff]   ;;  %v5692_v29 = vld [vmem:[%s6709_s4 + $0x38] sm:$0xff]  }
 0x1f9   : > { %5138 = vmatprep.subr.bf16.mxu1 %v5646_v28 }
 0x1fc   : > { %5139 = vmatpush3.bf16.msra.mxu1 %v5646_v28  ;;  %v5691_v28 = vld [vmem:[%s6709_s4 + $0x30] sm:$0xff]  }
 0x1fd   : > { %5140 = vmatprep.subr.bf16.mxu1 %v5647_v30 }
 0x200   : > { %5141 = vmatpush3.bf16.msra.mxu1 %v5647_v30  ;;  %v5693_v30 = vld [vmem:[%s6708_s3 + $0x280] sm:$0xff]  }
 0x201   : > { %5142 = vmatprep.subr.bf16.mxu1 %v5648_v32 }
 0x204   : > { %5143 = vmatpush3.bf16.msra.mxu1 %v5648_v32 }
 0x205   : > { %5144 = vmatprep.subr.bf16.mxu1 %v5649_v33 }
 0x208   : > { %5145 = vmatpush3.bf16.msra.mxu1 %v5649_v33 }
 0x209   : > { %5146 = vmatprep.subr.bf16.mxu1 %v5650_v35 }
 0x20c   : > { %5147 = vmatpush3.bf16.msra.mxu1 %v5650_v35 }
 0x20d   : > { %5148 = vmatprep.subr.bf16.mxu1 %v5651_v37 }
 0x210   : > { %5149 = vmatpush3.bf16.msra.mxu1 %v5651_v37 }
 0x211   : > { %5150 = vmatprep.subr.bf16.mxu1 %v5652_v38 }
 0x214   : > { %5151 = vmatpush3.bf16.msra.mxu1 %v5652_v38 }
 0x215   : > { %5156 = vmatprep.subr.bf16.mxu1 %v5653_v40 }
 0x217   : > { %5153 = vmatmul.mubr.bf16.vlgmr.msra.gmra.mrb[16].mxu1 %v1902_v48 }
 0x218   : > { %5157 = vmatpush3.bf16.msra.mxu1 %v5653_v40  ;;  %5172 = vmatprep.mubr.bf16.mxu1 %v2022_v44  ;;  %v5689_v44 = vld [vmem:[%s6709_s4 + $0x20] sm:$0xff]  }
 0x219   : > { %5158 = vmatprep.subr.bf16.mxu1 %v5654_v39  ;;  %5244 = vmatprep.subr.bf16.mxu0 %v5689_v44 }
 0x21a   : > { %5245 = vmatpush3.bf16.msra.mxu0 %v5689_v44 }
 0x21b   : > { %5246 = vmatprep.subr.bf16.mxu0 %v5690_v54 }
 0x21c   : > { %5159 = vmatpush3.bf16.msra.mxu1 %v5654_v39  ;;  %v5694_v39 = vld [vmem:[%s6708_s3 + $0x288] sm:$0xff]  }
 0x21d   : > { %5160 = vmatprep.subr.bf16.mxu1 %v5655_v51 }
 0x21e   : > { %5247 = vmatpush3.bf16.msra.mxu0 %v5690_v54 }
 0x21f   : > { %5248 = vmatprep.subr.bf16.mxu0 %v5691_v28 }
 0x220   : > { %5161 = vmatpush3.bf16.msra.mxu1 %v5655_v51  ;;  %v5697_v51 = vld [vmem:[%s6708_s3 + $0x2a0] sm:$0xff]  }
 0x221   : > { %5162 = vmatprep.subr.bf16.mxu1 %v5656_v53 }
 0x222   : > { %5249 = vmatpush3.bf16.msra.mxu0 %v5691_v28  ;;  %v5710_v28 = vld [vmem:[%s6708_s3 + $0x2c8] sm:$0xff]  }
 0x223   : > { %5250 = vmatprep.subr.bf16.mxu0 %v5692_v29 }
 0x224   : > { %5163 = vmatpush3.bf16.msra.mxu1 %v5656_v53  ;;  %v5699_v53 = vld [vmem:[%s6708_s3 + $0x2b0] sm:$0xff]  }
 0x225   : > { %5164 = vmatprep.subr.bf16.mxu1 %v5657_v43 }
 0x226   : > { %5251 = vmatpush3.bf16.msra.mxu0 %v5692_v29 }
 0x227   : > { %5256 = vmatprep.subr.bf16.mxu0 %v5693_v30 }
 0x228   : > { %5165 = vmatpush3.bf16.msra.mxu1 %v5657_v43  ;;  %v5701_v43 = vld [vmem:[%s6708_s3 + $0x240] sm:$0xff]  }
 0x229   : > { %5166 = vmatprep.subr.bf16.mxu1 %v5658_v1 }
 0x22c   : > { %5167 = vmatpush3.bf16.msra.mxu1 %v5658_v1  ;;  %v2622_v1 = vld [vmem:[#allocation3 + $0x17] sm:$0xff] }
 0x22d   : > { %5168 = vmatprep.subr.bf16.mxu1 %v5659_v55 }
 0x230   : > { %5169 = vmatpush3.bf16.msra.mxu1 %v5659_v55 }
 0x231   : > { %5170 = vmatprep.subr.bf16.mxu1 %v5660_v11 }
 0x234   : > { %5171 = vmatpush3.bf16.msra.mxu1 %v5660_v11 }
 0x235   : > { %5176 = vmatprep.subr.bf16.mxu1 %v5661_v56 }
 0x237   : > { %5173 = vmatmul.mubr.bf16.vlgmr.msra.gmra.mrb[16].mxu1 %v2023_v59 }
 0x238   : > { %5177 = vmatpush3.bf16.msra.mxu1 %v5661_v56  ;;  %5192 = vmatprep.mubr.bf16.mxu1 %v2143_v61  ;;  %v2620_v56 = vld [vmem:[#allocation3 + $0x7] sm:$0xff] }
 0x239   : > { %5178 = vmatprep.subr.bf16.mxu1 %v5662_v60 }
 0x23c   : > { %5179 = vmatpush3.bf16.msra.mxu1 %v5662_v60 }
 0x23d   : > { %5180 = vmatprep.subr.bf16.mxu1 %v5663_v62 }
 0x240   : > { %5181 = vmatpush3.bf16.msra.mxu1 %v5663_v62 }
 0x241   : > { %5182 = vmatprep.subr.bf16.mxu1 %v5664_v36 }
 0x244   : > { %5183 = vmatpush3.bf16.msra.mxu1 %v5664_v36 }
 0x245   : > { %5184 = vmatprep.subr.bf16.mxu1 %v5665_v63 }
 0x248   : > { %5185 = vmatpush3.bf16.msra.mxu1 %v5665_v63 }
 0x249   : > { %5186 = vmatprep.subr.bf16.mxu1 %v5666_v0 }
 0x24c   : > { %5187 = vmatpush3.bf16.msra.mxu1 %v5666_v0 }
 0x24d   : > { %5188 = vmatprep.subr.bf16.mxu1 %v5667_v2 }
 0x250   : > { %5189 = vmatpush3.bf16.msra.mxu1 %v5667_v2 }
 0x251   : > { %5190 = vmatprep.subr.bf16.mxu1 %v5668_v3 }
 0x254   : > { %5191 = vmatpush3.bf16.msra.mxu1 %v5668_v3 }
 0x255   : > { %5196 = vmatprep.subr.bf16.mxu1 %v5669_v4 }
 0x257   : > { %5193 = vmatmul.mubr.bf16.vlgmr.msra.gmra.mrb[16].mxu1 %v2144_v7 }
 0x258   : > { %5197 = vmatpush3.bf16.msra.mxu1 %v5669_v4  ;;  %5212 = vmatprep.mubr.bf16.mxu1 %v2264_v9 }
 0x259   : > { %5198 = vmatprep.subr.bf16.mxu1 %v5670_v8 }
 0x25c   : > { %5199 = vmatpush3.bf16.msra.mxu1 %v5670_v8 }
 0x25d   : > { %5200 = vmatprep.subr.bf16.mxu1 %v5671_v12 }
 0x260   : > { %5201 = vmatpush3.bf16.msra.mxu1 %v5671_v12 }
 0x261   : > { %5202 = vmatprep.subr.bf16.mxu1 %v5672_v45 }
 0x264   : > { %5203 = vmatpush3.bf16.msra.mxu1 %v5672_v45 }
 0x265   : > { %5204 = vmatprep.subr.bf16.mxu1 %v5673_v13 }
 0x268   : > { %5205 = vmatpush3.bf16.msra.mxu1 %v5673_v13  ;;  %v5702_v13 = vld [vmem:[%s6708_s3 + $0x248] sm:$0xff]  }
 0x269   : > { %5206 = vmatprep.subr.bf16.mxu1 %v5674_v14 }
 0x26c   : > { %5207 = vmatpush3.bf16.msra.mxu1 %v5674_v14 }
 0x26d   : > { %5208 = vmatprep.subr.bf16.mxu1 %v5675_v15 }
 0x270   : > { %5209 = vmatpush3.bf16.msra.mxu1 %v5675_v15 }
 0x271   : > { %5210 = vmatprep.subr.bf16.mxu1 %v5676_v16 }
 0x274   : > { %5211 = vmatpush3.bf16.msra.mxu1 %v5676_v16 }
 0x275   : > { %5216 = vmatprep.subr.bf16.mxu1 %v5677_v17 }
 0x277   : > { %5213 = vmatmul.mubr.bf16.vlgmr.msra.gmra.mrb[16].mxu1 %v2265_v18  ;;  %v5703_v18 = vld [vmem:[%s6708_s3 + $0x250] sm:$0xff]  }
 0x278   : > { %5217 = vmatpush3.bf16.msra.mxu1 %v5677_v17  ;;  %5232 = vmatprep.mubr.bf16.mxu1 %v2385_v20  ;;  %v5705_v20 = vld [vmem:[%s6708_s3 + $0x260] sm:$0xff]  }
 0x279   : > { %5218 = vmatprep.subr.bf16.mxu1 %v5678_v19 }
 0x27c   : > { %5219 = vmatpush3.bf16.msra.mxu1 %v5678_v19  ;;  %v5704_v19 = vld [vmem:[%s6708_s3 + $0x258] sm:$0xff]  }
 0x27d   : > { %5220 = vmatprep.subr.bf16.mxu1 %v5679_v22 }
 0x280   : > { %5221 = vmatpush3.bf16.msra.mxu1 %v5679_v22  ;;  %v5706_v22 = vld [vmem:[%s6708_s3 + $0x268] sm:$0xff]  }
 0x281   : > { %5222 = vmatprep.subr.bf16.mxu1 %v5680_v46 }
 0x284   : > { %5223 = vmatpush3.bf16.msra.mxu1 %v5680_v46  ;;  %v5707_v46 = vld [vmem:[%s6708_s3 + $0x270] sm:$0xff]  }
 0x285   : > { %5224 = vmatprep.subr.bf16.mxu1 %v5681_v10 }
 0x288   : > { %5225 = vmatpush3.bf16.msra.mxu1 %v5681_v10  ;;  %v5708_v10 = vld [vmem:[%s6708_s3 + $0x278] sm:$0xff]  }
 0x289   : > { %5226 = vmatprep.subr.bf16.mxu1 %v5682_v23 }
 0x28c   : > { %5227 = vmatpush3.bf16.msra.mxu1 %v5682_v23  ;;  %v5709_v23 = vld [vmem:[%s6708_s3 + $0x2c0] sm:$0xff]  }
 0x28d   : > { %5228 = vmatprep.subr.bf16.mxu1 %v5683_v24 }
 0x290   : > { %5229 = vmatpush3.bf16.msra.mxu1 %v5683_v24 }
 0x291   : > { %5230 = vmatprep.subr.bf16.mxu1 %v5684_v25 }
 0x294   : > { %5231 = vmatpush3.bf16.msra.mxu1 %v5684_v25 }
 0x297   : > { %5233 = vmatmul.mubr.bf16.vlgmr.msra.gmra.mrb[16].mxu1 %v2386_v27 }
 0x36a   : > { %v5234_v32 = vpop.f32.mrb[16].mxu1 }
 0x36b   : > { %v2486_v47 = vpop.f32.mrb[17].mxu1  ;;  %v2505_v35 = vmax.f32 %v5234_v32, 0.0  ;;  %v5712_v32 = vld [vmem:[%s6708_s3 + $0x2d8] sm:$0xff]  }
 0x36c   : > { %v5235_v33 = vpop.f32.mrb[18].mxu1  ;;  %v2503_v38 = vmax.f32 %v2486_v47, 0.0  ;;  %v5713_v47 = vld [vmem:[%s6708_s3 + $0x2e0] sm:$0xff]  }
 0x36d   : > { %v2489_v37 = vpop.f32.mrb[19].mxu1  ;;  %v2507_v48 = vpack.c.bf16 %v2505_v35, %v2505_v35  ;;  %v5714_v33 = vld [vmem:[%s6708_s3 + $0x2e8] sm:$0xff]   ;;  %v5715_v35 = vld [vmem:[%s6708_s3 + $0x2f0] sm:$0xff]  }
 0x36e   : > { %v2504_v40 = vmax.f32 %v2489_v37, 0.0  ;;  %v5716_v37 = vld [vmem:[%s6708_s3 + $0x2f8] sm:$0xff]  }
 0x370   : > { %v2506_v41 = vpack.c.bf16 %v2504_v40, %v2503_v38  ;;  %v5717_v38 = vld [vmem:[%s6708_s3 + $0x300] sm:$0xff]  }
 0x372   : > { %5252 = vmatprep.mubr.bf16.mxu0 %v2506_v41 }
 0x373   : > { %5253 = vmatmul.mubr.bf16.vlgmr.msra.gmra.mrb[20].mxu0 %v2507_v48 }
 0x374   : > { %5257 = vmatpush3.bf16.msra.mxu0 %v5693_v30  ;;  %v5711_v30 = vld [vmem:[%s6708_s3 + $0x2d0] sm:$0xff]  }
 0x375   : > { %5258 = vmatprep.subr.bf16.mxu0 %v5694_v39 }
 0x378   : > { %5259 = vmatpush3.bf16.msra.mxu0 %v5694_v39  ;;  %v5718_v39 = vld [vmem:[%s6708_s3 + $0x308] sm:$0xff]  }
 0x379   : > { %5260 = vmatprep.subr.bf16.mxu0 %v5695_v49 }
 0x37c   : > { %5261 = vmatpush3.bf16.msra.mxu0 %v5695_v49 }
 0x37d   : > { %5262 = vmatprep.subr.bf16.mxu0 %v5696_v50 }
 0x380   : > { %5263 = vmatpush3.bf16.msra.mxu0 %v5696_v50  ;;  %v5719_v50 = vld [vmem:[%s6708_s3 + $0x310] sm:$0xff]  }
 0x381   : > { %5264 = vmatprep.subr.bf16.mxu0 %v5697_v51 }
 0x384   : > { %5265 = vmatpush3.bf16.msra.mxu0 %v5697_v51  ;;  %v5720_v51 = vld [vmem:[%s6708_s3 + $0x318] sm:$0xff]  }
 0x385   : > { %5266 = vmatprep.subr.bf16.mxu0 %v5698_v52 }
 0x388   : > { %5267 = vmatpush3.bf16.msra.mxu0 %v5698_v52  ;;  %v5721_v52 = vld [vmem:[%s6708_s3 + $0x320] sm:$0xff]  }
 0x389   : > { %5268 = vmatprep.subr.bf16.mxu0 %v5699_v53 }
 0x38c   : > { %5269 = vmatpush3.bf16.msra.mxu0 %v5699_v53  ;;  %v5722_v53 = vld [vmem:[%s6708_s3 + $0x328] sm:$0xff]  }
 0x38d   : > { %5270 = vmatprep.subr.bf16.mxu0 %v5700_v42 }
 0x390   : > { %5271 = vmatpush3.bf16.msra.mxu0 %v5700_v42  ;;  %v5723_v42 = vld [vmem:[%s6708_s3 + $0x330] sm:$0xff]  }
 0x391   : > { %5276 = vmatprep.subr.bf16.mxu0 %v5701_v43 }
 0x446   : > { %v5254_v44 = vpop.f32.mrb[20].mxu0 }
 0x447   : > { %v2625_v54 = vsel %vm6124_vm9, %v5254_v44, 0.0  ;;  %v2606_v55 = vpop.f32.mrb[21].mxu0  ;;  %v5725_v44 = vld [vmem:[%s6708_s3 + $0x340] sm:$0xff]  }
 0x448   : > { %v6431_v11 = vadd.f32 %v2625_v54, %v2622_v1  ;;  %v2623_v57 = vsel %vm6130_vm10, %v2606_v55, 0.0  ;;  %v5255_v58 = vpop.f32.mrb[22].mxu0 }
 0x449   : > { %v6435_v59 = vadd.f32 %v2623_v57, %v2620_v56  ;;  %v2609_v60 = vpop.f32.mrb[23].mxu0  ;;  %v5726_v56 = vld [vmem:[%s6708_s3 + $0x348] sm:$0xff]   ;;  %v5727_v58 = vld [vmem:[%s6708_s3 + $0x350] sm:$0xff]  }
 0x44a   : > { %2631 = vst [vmem:[#allocation3 + $0x17] sm:$0xff] %v6431_v11  ;;  %v2624_v61 = vsel %vm6136_vm11, %v2609_v60, 0.0  ;;  %v5728_v60 = vld [vmem:[%s6708_s3 + $0x358] sm:$0xff]  }
 0x44b   : > { %2629 = vst [vmem:[#allocation3 + $0x7] sm:$0xff] %v6435_v59  ;;  %v6442_v62 = vadd.f32 %v2624_v61, %v6144_v34  ;;  %v5729_v61 = vld [vmem:[%s6708_s3 + $0x360] sm:$0xff]  }
 0x44d   : > { %2630 = vst [vmem:[#allocation3 + $0xf] sm:$0xff] %v6442_v62 }
 0x451   : > { %v2635_v36 = vld [vmem:[#allocation3 + $0x18] sm:$0xff] }
 0x452   : > { %v6445_v63 = vmax.f32 %v2635_v36, 0.0  ;;  %v2632_v0 = vld [vmem:[#allocation3] sm:$0xff]  ;;  %v5730_v36 = vld [vmem:[%s6708_s3 + $0x368] sm:$0xff]  }
 0x453   : > { %v2638_v2 = vmax.f32 %v2632_v0, 0.0  ;;  %v5731_v0 = vld [vmem:[%s6708_s3 + $0x370] sm:$0xff]  }
 0x454   : > { %2647 = vst [vmem:[#allocation2 + $0x18] sm:$0xff] %v6445_v63  ;;  %v2633_v3 = vld [vmem:[#allocation3 + $0x8] sm:$0xff]  ;;  %v2634_v4 = vld [vmem:[#allocation3 + $0x10] sm:$0xff] }
 0x455   : > { %2644 = vst [vmem:[#allocation2] sm:$0xff] %v2638_v2  ;;  %v6448_v5 = vmax.f32 %v2633_v3, 0.0  ;;  %v6450_v6 = vmax.f32 %v2634_v4, 0.0  ;;  %v5733_v3 = vld [vmem:[%s6708_s3 + $0x380] sm:$0xff]  }
 0x457   : > { %2645 = vst [vmem:[#allocation2 + $0x8] sm:$0xff] %v6448_v5  ;;  %2646 = vst [vmem:[#allocation2 + $0x10] sm:$0xff] %v6450_v6  ;;  %v3252_v34 = vpack.c.bf16 %v6450_v6, %v6448_v5  ;;  %v2653_v16 = vpack.c.bf16 %v6448_v5, %v2638_v2  ;;  %v2654_v27 = vpack.c.bf16 %v6450_v6, %v6450_v6  ;;  %v5732_v2 = vld [vmem:[%s6708_s3 + $0x378] sm:$0xff]   ;;  %v5737_v6 = vld [vmem:[%s6708_s3 + $0x3a0] sm:$0xff]  }
 0x458   : > { %v5768_v5 = vld [vmem:[%s6709_s4 + $0x58] sm:$0xff]  }
 0x45e   : > { %v2672_v7 = vld [vmem:[#allocation2 + $0x1] sm:$0xff]  ;;  %v2673_v8 = vld [vmem:[#allocation2 + $0x9] sm:$0xff]  ;;  %v2674_v9 = vld [vmem:[#allocation2 + $0x11] sm:$0xff] }
 0x45f   : > { %v2675_v12 = vpack.c.bf16 %v2673_v8, %v2672_v7  ;;  %v2676_v45 = vpack.c.bf16 %v2674_v9, %v2674_v9  ;;  %v6459_v14 = vld [vmem:[#allocation2 + $0xe] sm:$0xff]  ;;  %v6461_v15 = vld [vmem:[#allocation2 + $0x16] sm:$0xff]  ;;  %v2886_v24 = vld [vmem:[#allocation2 + $0x2] sm:$0xff] }
 0x460   : > { %v3615_v17 = vpack.c.bf16 %v6461_v15, %v6459_v14  ;;  %v2887_v25 = vld [vmem:[#allocation2 + $0xa] sm:$0xff]  ;;  %v2888_v40 = vld [vmem:[#allocation2 + $0x12] sm:$0xff]  ;;  %v3011_v55 = vpack.c.bf16 %v6461_v15, %v6461_v15  ;;  %v5765_v9 = vld [vmem:[%s6709_s4 + $0x40] sm:$0xff]  }
 0x461   : > { %5272 = vmatprep.mubr.bf16.mxu0 %v2675_v12  ;;  %v2889_v29 = vpack.c.bf16 %v2887_v25, %v2886_v24  ;;  %v3007_v41 = vld [vmem:[#allocation2 + $0x6] sm:$0xff]  ;;  %v2890_v48 = vpack.c.bf16 %v2888_v40, %v2888_v40  ;;  %v3129_v54 = vld [vmem:[#allocation2 + $0xf] sm:$0xff]  ;;  %v3130_v4 = vld [vmem:[#allocation2 + $0x17] sm:$0xff]  ;;  %5436 = vmatprep.subr.bf16.mxu1 %v5765_v9  ;;  %v3253_v24 = vpack.c.bf16 %v6445_v63, %v6445_v63 }
 0x462   : > { %5273 = vmatmul.mubr.bf16.vlgmr.msra.gmra.mrb[24].mxu0 %v2676_v45  ;;  %v3010_v49 = vpack.c.bf16 %v6459_v14, %v3007_v41  ;;  %v3128_v1 = vld [vmem:[#allocation2 + $0x7] sm:$0xff]  ;;  %v3132_v7 = vpack.c.bf16 %v3130_v4, %v3130_v4  ;;  %v5735_v45 = vld [vmem:[%s6708_s3 + $0x390] sm:$0xff]   ;;  %5437 = vmatpush3.bf16.msra.mxu1 %v5765_v9  ;;  %v5744_v63 = vld [vmem:[%s6708_s3 + $0x3d8] sm:$0xff]  }
 0x463   : > { %5277 = vmatpush3.bf16.msra.mxu0 %v5701_v43  ;;  %5292 = vmatprep.mubr.bf16.mxu0 %v2653_v16  ;;  %v5724_v43 = vld [vmem:[%s6708_s3 + $0x338] sm:$0xff]   ;;  %v3131_v57 = vpack.c.bf16 %v3129_v54, %v3128_v1  ;;  %v5734_v8 = vld [vmem:[%s6708_s3 + $0x388] sm:$0xff]   ;;  %v5759_v54 = vld [vmem:[%s6708_s3 + $0x450] sm:$0xff]  }
 0x464   : > { %5278 = vmatprep.subr.bf16.mxu0 %v5702_v13  ;;  %v5766_v12 = vld [vmem:[%s6709_s4 + $0x48] sm:$0xff]   ;;  %v5736_v16 = vld [vmem:[%s6708_s3 + $0x398] sm:$0xff]   ;;  %v5763_v15 = vld [vmem:[%s6708_s3 + $0x470] sm:$0xff]  }
 0x465   : > { %5438 = vmatprep.subr.bf16.mxu1 %v5766_v12  ;;  %v5742_v25 = vld [vmem:[%s6708_s3 + $0x3c8] sm:$0xff]  }
 0x466   : > { %5439 = vmatpush3.bf16.msra.mxu1 %v5766_v12  ;;  %v5750_v41 = vld [vmem:[%s6708_s3 + $0x408] sm:$0xff]  }
 0x467   : > { %5279 = vmatpush3.bf16.msra.mxu0 %v5702_v13  ;;  %v5767_v13 = vld [vmem:[%s6709_s4 + $0x50] sm:$0xff]   ;;  %v5758_v1 = vld [vmem:[%s6708_s3 + $0x448] sm:$0xff]  }
 0x468   : > { %5280 = vmatprep.subr.bf16.mxu0 %v5703_v18  ;;  %5440 = vmatprep.subr.bf16.mxu1 %v5767_v13  ;;  %v5762_v14 = vld [vmem:[%s6708_s3 + $0x468] sm:$0xff]  }
 0x46a   : > { %5441 = vmatpush3.bf16.msra.mxu1 %v5767_v13 }
 0x46b   : > { %5281 = vmatpush3.bf16.msra.mxu0 %v5703_v18  ;;  %5442 = vmatprep.subr.bf16.mxu1 %v5768_v5  ;;  %v5738_v18 = vld [vmem:[%s6708_s3 + $0x3a8] sm:$0xff]  }
 0x46c   : > { %5282 = vmatprep.subr.bf16.mxu0 %v5704_v19 }
 0x46e   : > { %5443 = vmatpush3.bf16.msra.mxu1 %v5768_v5 }
 0x46f   : > { %5283 = vmatpush3.bf16.msra.mxu0 %v5704_v19  ;;  %v5770_v19 = vld [vmem:[%s6709_s4 + $0x68] sm:$0xff]  }
 0x470   : > { %5284 = vmatprep.subr.bf16.mxu0 %v5705_v20 }
 0x473   : > { %5285 = vmatpush3.bf16.msra.mxu0 %v5705_v20  ;;  %v5739_v20 = vld [vmem:[%s6708_s3 + $0x3b0] sm:$0xff]  }
 0x474   : > { %5286 = vmatprep.subr.bf16.mxu0 %v5706_v22 }
 0x477   : > { %5287 = vmatpush3.bf16.msra.mxu0 %v5706_v22  ;;  %v5740_v22 = vld [vmem:[%s6708_s3 + $0x3b8] sm:$0xff]  }
 0x478   : > { %5288 = vmatprep.subr.bf16.mxu0 %v5707_v46 }
 0x47b   : > { %5289 = vmatpush3.bf16.msra.mxu0 %v5707_v46  ;;  %v5741_v46 = vld [vmem:[%s6708_s3 + $0x3c0] sm:$0xff]  }
 0x47c   : > { %5290 = vmatprep.subr.bf16.mxu0 %v5708_v10 }
 0x47f   : > { %5291 = vmatpush3.bf16.msra.mxu0 %v5708_v10  ;;  %v3370_v10 = vld [vmem:[#allocation2 + $0xc] sm:$0xff] }
 0x480   : > { %5296 = vmatprep.subr.bf16.mxu0 %v5709_v23 }
 0x482   : > { %5293 = vmatmul.mubr.bf16.vlgmr.msra.gmra.mrb[24].mxu0 %v2654_v27 }
 0x483   : > { %5297 = vmatpush3.bf16.msra.mxu0 %v5709_v23  ;;  %5312 = vmatprep.mubr.bf16.mxu0 %v2889_v29  ;;  %v3371_v23 = vld [vmem:[#allocation2 + $0x14] sm:$0xff]  ;;  %v5745_v29 = vld [vmem:[%s6708_s3 + $0x3e0] sm:$0xff]  }
 0x484   : > { %5298 = vmatprep.subr.bf16.mxu0 %v5710_v28  ;;  %v3373_v27 = vpack.c.bf16 %v3371_v23, %v3370_v10 }
 0x487   : > { %5299 = vmatpush3.bf16.msra.mxu0 %v5710_v28  ;;  %v5743_v28 = vld [vmem:[%s6708_s3 + $0x3d0] sm:$0xff]  }
 0x488   : > { %5300 = vmatprep.subr.bf16.mxu0 %v5711_v30 }
 0x48b   : > { %5301 = vmatpush3.bf16.msra.mxu0 %v5711_v30  ;;  %v5746_v30 = vld [vmem:[%s6708_s3 + $0x3e8] sm:$0xff]  }
 0x48c   : > { %5302 = vmatprep.subr.bf16.mxu0 %v5712_v32 }
 0x48f   : > { %5303 = vmatpush3.bf16.msra.mxu0 %v5712_v32  ;;  %v5747_v32 = vld [vmem:[%s6708_s3 + $0x3f0] sm:$0xff]  }
 0x490   : > { %5304 = vmatprep.subr.bf16.mxu0 %v5713_v47 }
 0x493   : > { %5305 = vmatpush3.bf16.msra.mxu0 %v5713_v47  ;;  %v5748_v47 = vld [vmem:[%s6708_s3 + $0x3f8] sm:$0xff]  }
 0x494   : > { %5306 = vmatprep.subr.bf16.mxu0 %v5714_v33 }
 0x497   : > { %5307 = vmatpush3.bf16.msra.mxu0 %v5714_v33  ;;  %v5749_v33 = vld [vmem:[%s6708_s3 + $0x400] sm:$0xff]  }
 0x498   : > { %5308 = vmatprep.subr.bf16.mxu0 %v5715_v35 }
 0x49b   : > { %5309 = vmatpush3.bf16.msra.mxu0 %v5715_v35  ;;  %v3372_v35 = vld [vmem:[#allocation2 + $0x1c] sm:$0xff] }
 0x49c   : > { %5310 = vmatprep.subr.bf16.mxu0 %v5716_v37  ;;  %v3374_v40 = vpack.c.bf16 %v3372_v35, %v3372_v35 }
 0x49f   : > { %5311 = vmatpush3.bf16.msra.mxu0 %v5716_v37  ;;  %v3491_v37 = vld [vmem:[#allocation2 + $0xd] sm:$0xff] }
 0x4a0   : > { %5316 = vmatprep.subr.bf16.mxu0 %v5717_v38 }
 0x4a2   : > { %5313 = vmatmul.mubr.bf16.vlgmr.msra.gmra.mrb[24].mxu0 %v2890_v48 }
 0x4a3   : > { %5317 = vmatpush3.bf16.msra.mxu0 %v5717_v38  ;;  %5332 = vmatprep.mubr.bf16.mxu0 %v3010_v49  ;;  %v3492_v38 = vld [vmem:[#allocation2 + $0x15] sm:$0xff] }
 0x4a4   : > { %5318 = vmatprep.subr.bf16.mxu0 %v5718_v39  ;;  %v3494_v48 = vpack.c.bf16 %v3492_v38, %v3491_v37  ;;  %v5752_v49 = vld [vmem:[%s6708_s3 + $0x418] sm:$0xff]  }
 0x4a7   : > { %5319 = vmatpush3.bf16.msra.mxu0 %v5718_v39  ;;  %v5751_v39 = vld [vmem:[%s6708_s3 + $0x410] sm:$0xff]  }
 0x4a8   : > { %5320 = vmatprep.subr.bf16.mxu0 %v5719_v50 }
 0x4ab   : > { %5321 = vmatpush3.bf16.msra.mxu0 %v5719_v50  ;;  %v5753_v50 = vld [vmem:[%s6708_s3 + $0x420] sm:$0xff]  }
 0x4ac   : > { %5322 = vmatprep.subr.bf16.mxu0 %v5720_v51 }
 0x4af   : > { %5323 = vmatpush3.bf16.msra.mxu0 %v5720_v51  ;;  %v5754_v51 = vld [vmem:[%s6708_s3 + $0x428] sm:$0xff]  }
 0x4b0   : > { %5324 = vmatprep.subr.bf16.mxu0 %v5721_v52 }
 0x4b3   : > { %5325 = vmatpush3.bf16.msra.mxu0 %v5721_v52  ;;  %v5755_v52 = vld [vmem:[%s6708_s3 + $0x430] sm:$0xff]  }
 0x4b4   : > { %5326 = vmatprep.subr.bf16.mxu0 %v5722_v53 }
 0x4b7   : > { %5327 = vmatpush3.bf16.msra.mxu0 %v5722_v53  ;;  %v5756_v53 = vld [vmem:[%s6708_s3 + $0x438] sm:$0xff]  }
 0x4b8   : > { %5328 = vmatprep.subr.bf16.mxu0 %v5723_v42 }
 0x4bb   : > { %5329 = vmatpush3.bf16.msra.mxu0 %v5723_v42  ;;  %v5757_v42 = vld [vmem:[%s6708_s3 + $0x440] sm:$0xff]  }
 0x4bc   : > { %5330 = vmatprep.subr.bf16.mxu0 %v5724_v43 }
 0x4bf   : > { %5331 = vmatpush3.bf16.msra.mxu0 %v5724_v43  ;;  %v3493_v43 = vld [vmem:[#allocation2 + $0x1d] sm:$0xff] }
 0x4c0   : > { %5336 = vmatprep.subr.bf16.mxu0 %v5725_v44 }
 0x4c2   : > { %5333 = vmatmul.mubr.bf16.vlgmr.msra.gmra.mrb[24].mxu0 %v3011_v55  ;;  %v5760_v55 = vld [vmem:[%s6708_s3 + $0x458] sm:$0xff]  }
 0x4c3   : > { %5337 = vmatpush3.bf16.msra.mxu0 %v5725_v44  ;;  %5352 = vmatprep.mubr.bf16.mxu0 %v3131_v57  ;;  %v3495_v44 = vpack.c.bf16 %v3493_v43, %v3493_v43  ;;  %v3614_v57 = vld [vmem:[#allocation2 + $0x1e] sm:$0xff] }
 0x4c4   : > { %5338 = vmatprep.subr.bf16.mxu0 %v5726_v56 }
 0x4c7   : > { %5339 = vmatpush3.bf16.msra.mxu0 %v5726_v56  ;;  %v5761_v56 = vld [vmem:[%s6708_s3 + $0x460] sm:$0xff]  }
 0x4c8   : > { %5340 = vmatprep.subr.bf16.mxu0 %v5727_v58 }
 0x4cb   : > { %5341 = vmatpush3.bf16.msra.mxu0 %v5727_v58  ;;  %v3616_v58 = vpack.c.bf16 %v3614_v57, %v3614_v57 }
 0x4cc   : > { %5342 = vmatprep.subr.bf16.mxu0 %v5728_v60 }
 0x4cf   : > { %5343 = vmatpush3.bf16.msra.mxu0 %v5728_v60  ;;  %v5771_v60 = vld [vmem:[%s6709_s4 + $0x70] sm:$0xff]  }
 0x4d0   : > { %5344 = vmatprep.subr.bf16.mxu0 %v5729_v61 }
 0x4d3   : > { %5345 = vmatpush3.bf16.msra.mxu0 %v5729_v61  ;;  %v5772_v61 = vld [vmem:[%s6709_s4 + $0x78] sm:$0xff]  }
 0x4d4   : > { %5346 = vmatprep.subr.bf16.mxu0 %v5730_v36 }
 0x4d7   : > { %5347 = vmatpush3.bf16.msra.mxu0 %v5730_v36 }
 0x4d8   : > { %5348 = vmatprep.subr.bf16.mxu0 %v5731_v0 }
 0x4db   : > { %5349 = vmatpush3.bf16.msra.mxu0 %v5731_v0 }
 0x4dc   : > { %5350 = vmatprep.subr.bf16.mxu0 %v5732_v2 }
 0x4df   : > { %5351 = vmatpush3.bf16.msra.mxu0 %v5732_v2 }
 0x4e0   : > { %5356 = vmatprep.subr.bf16.mxu0 %v5733_v3 }
 0x4e2   : > { %5353 = vmatmul.mubr.bf16.vlgmr.msra.gmra.mrb[24].mxu0 %v3132_v7 }
 0x4e3   : > { %5357 = vmatpush3.bf16.msra.mxu0 %v5733_v3  ;;  %5372 = vmatprep.mubr.bf16.mxu0 %v3252_v34  ;;  %v5769_v34 = vld [vmem:[%s6709_s4 + $0x60] sm:$0xff]  }
 0x4e4   : > { %5358 = vmatprep.subr.bf16.mxu0 %v5734_v8  ;;  %5444 = vmatprep.subr.bf16.mxu1 %v5769_v34 }
 0x4e5   : > { %5445 = vmatpush3.bf16.msra.mxu1 %v5769_v34 }
 0x4e6   : > { %5446 = vmatprep.subr.bf16.mxu1 %v5770_v19 }
 0x4e7   : > { %5359 = vmatpush3.bf16.msra.mxu0 %v5734_v8 }
 0x4e8   : > { %5360 = vmatprep.subr.bf16.mxu0 %v5735_v45 }
 0x4e9   : > { %5447 = vmatpush3.bf16.msra.mxu1 %v5770_v19 }
 0x4ea   : > { %5448 = vmatprep.subr.bf16.mxu1 %v5771_v60 }
 0x4eb   : > { %5361 = vmatpush3.bf16.msra.mxu0 %v5735_v45 }
 0x4ec   : > { %5362 = vmatprep.subr.bf16.mxu0 %v5736_v16 }
 0x4ed   : > { %5449 = vmatpush3.bf16.msra.mxu1 %v5771_v60 }
 0x4ee   : > { %5450 = vmatprep.subr.bf16.mxu1 %v5772_v61 }
 0x4ef   : > { %5363 = vmatpush3.bf16.msra.mxu0 %v5736_v16 }
 0x4f0   : > { %5364 = vmatprep.subr.bf16.mxu0 %v5737_v6 }
 0x4f1   : > { %5451 = vmatpush3.bf16.msra.mxu1 %v5772_v61 }
 0x4f3   : > { %5365 = vmatpush3.bf16.msra.mxu0 %v5737_v6 }
 0x4f4   : > { %5366 = vmatprep.subr.bf16.mxu0 %v5738_v18 }
 0x4f7   : > { %5367 = vmatpush3.bf16.msra.mxu0 %v5738_v18 }
 0x4f8   : > { %5368 = vmatprep.subr.bf16.mxu0 %v5739_v20 }
 0x4fb   : > { %5369 = vmatpush3.bf16.msra.mxu0 %v5739_v20 }
 0x4fc   : > { %5370 = vmatprep.subr.bf16.mxu0 %v5740_v22 }
 0x4ff   : > { %5371 = vmatpush3.bf16.msra.mxu0 %v5740_v22 }
 0x500   : > { %5376 = vmatprep.subr.bf16.mxu0 %v5741_v46 }
 0x502   : > { %5373 = vmatmul.mubr.bf16.vlgmr.msra.gmra.mrb[24].mxu0 %v3253_v24 }
 0x503   : > { %5377 = vmatpush3.bf16.msra.mxu0 %v5741_v46  ;;  %5392 = vmatprep.mubr.bf16.mxu0 %v3373_v27 }
 0x504   : > { %5378 = vmatprep.subr.bf16.mxu0 %v5742_v25 }
 0x507   : > { %5379 = vmatpush3.bf16.msra.mxu0 %v5742_v25 }
 0x508   : > { %5380 = vmatprep.subr.bf16.mxu0 %v5743_v28 }
 0x50b   : > { %5381 = vmatpush3.bf16.msra.mxu0 %v5743_v28 }
 0x50c   : > { %5382 = vmatprep.subr.bf16.mxu0 %v5744_v63 }
 0x50f   : > { %5383 = vmatpush3.bf16.msra.mxu0 %v5744_v63 }
 0x510   : > { %5384 = vmatprep.subr.bf16.mxu0 %v5745_v29 }
 0x513   : > { %5385 = vmatpush3.bf16.msra.mxu0 %v5745_v29 }
 0x514   : > { %5386 = vmatprep.subr.bf16.mxu0 %v5746_v30 }
 0x517   : > { %5387 = vmatpush3.bf16.msra.mxu0 %v5746_v30 }
 0x518   : > { %5388 = vmatprep.subr.bf16.mxu0 %v5747_v32 }
 0x51b   : > { %5389 = vmatpush3.bf16.msra.mxu0 %v5747_v32 }
 0x51c   : > { %5390 = vmatprep.subr.bf16.mxu0 %v5748_v47 }
 0x51f   : > { %5391 = vmatpush3.bf16.msra.mxu0 %v5748_v47 }
 0x520   : > { %5396 = vmatprep.subr.bf16.mxu0 %v5749_v33 }
 0x522   : > { %5393 = vmatmul.mubr.bf16.vlgmr.msra.gmra.mrb[24].mxu0 %v3374_v40 }
 0x523   : > { %5397 = vmatpush3.bf16.msra.mxu0 %v5749_v33  ;;  %5412 = vmatprep.mubr.bf16.mxu0 %v3494_v48 }
 0x524   : > { %5398 = vmatprep.subr.bf16.mxu0 %v5750_v41 }
 0x527   : > { %5399 = vmatpush3.bf16.msra.mxu0 %v5750_v41 }
 0x528   : > { %5400 = vmatprep.subr.bf16.mxu0 %v5751_v39 }
 0x52b   : > { %5401 = vmatpush3.bf16.msra.mxu0 %v5751_v39 }
 0x52c   : > { %5402 = vmatprep.subr.bf16.mxu0 %v5752_v49 }
 0x52f   : > { %5403 = vmatpush3.bf16.msra.mxu0 %v5752_v49 }
 0x530   : > { %5404 = vmatprep.subr.bf16.mxu0 %v5753_v50 }
 0x533   : > { %5405 = vmatpush3.bf16.msra.mxu0 %v5753_v50 }
 0x534   : > { %5406 = vmatprep.subr.bf16.mxu0 %v5754_v51 }
 0x537   : > { %5407 = vmatpush3.bf16.msra.mxu0 %v5754_v51 }
 0x538   : > { %5408 = vmatprep.subr.bf16.mxu0 %v5755_v52 }
 0x53b   : > { %5409 = vmatpush3.bf16.msra.mxu0 %v5755_v52 }
 0x53c   : > { %5410 = vmatprep.subr.bf16.mxu0 %v5756_v53 }
 0x53f   : > { %5411 = vmatpush3.bf16.msra.mxu0 %v5756_v53 }
 0x540   : > { %5416 = vmatprep.subr.bf16.mxu0 %v5757_v42 }
 0x542   : > { %5413 = vmatmul.mubr.bf16.vlgmr.msra.gmra.mrb[24].mxu0 %v3495_v44 }
 0x543   : > { %5417 = vmatpush3.bf16.msra.mxu0 %v5757_v42  ;;  %5432 = vmatprep.mubr.bf16.mxu0 %v3615_v17  ;;  %v5764_v17 = vld [vmem:[%s6708_s3 + $0x478] sm:$0xff]  }
 0x544   : > { %5418 = vmatprep.subr.bf16.mxu0 %v5758_v1 }
 0x547   : > { %5419 = vmatpush3.bf16.msra.mxu0 %v5758_v1 }
 0x548   : > { %5420 = vmatprep.subr.bf16.mxu0 %v5759_v54 }
 0x54b   : > { %5421 = vmatpush3.bf16.msra.mxu0 %v5759_v54 }
 0x54c   : > { %5422 = vmatprep.subr.bf16.mxu0 %v5760_v55 }
 0x54f   : > { %5423 = vmatpush3.bf16.msra.mxu0 %v5760_v55 }
 0x550   : > { %5424 = vmatprep.subr.bf16.mxu0 %v5761_v56 }
 0x553   : > { %5425 = vmatpush3.bf16.msra.mxu0 %v5761_v56 }
 0x554   : > { %5426 = vmatprep.subr.bf16.mxu0 %v5762_v14 }
 0x557   : > { %5427 = vmatpush3.bf16.msra.mxu0 %v5762_v14 }
 0x558   : > { %5428 = vmatprep.subr.bf16.mxu0 %v5763_v15 }
 0x55b   : > { %5429 = vmatpush3.bf16.msra.mxu0 %v5763_v15 }
 0x55c   : > { %5430 = vmatprep.subr.bf16.mxu0 %v5764_v17 }
 0x55f   : > { %5431 = vmatpush3.bf16.msra.mxu0 %v5764_v17 }
 0x562   : > { %5433 = vmatmul.mubr.bf16.vlgmr.msra.gmra.mrb[24].mxu0 %v3616_v58 }
 0x635   : > { %v5434_v36 = vpop.f32.mrb[24].mxu0 }
 0x636   : > { %v3716_v0 = vpop.f32.mrb[25].mxu0  ;;  %v3735_v3 = vmax.f32 %v5434_v36, 0.0 }
 0x637   : > { %v5435_v2 = vpop.f32.mrb[26].mxu0  ;;  %v3733_v7 = vmax.f32 %v3716_v0, 0.0 }
 0x638   : > { %v3719_v4 = vpop.f32.mrb[27].mxu0  ;;  %v3737_v12 = vpack.c.bf16 %v3735_v3, %v3735_v3 }
 0x639   : > { %v3734_v8 = vmax.f32 %v3719_v4, 0.0 }
 0x63b   : > { %v3736_v9 = vpack.c.bf16 %v3734_v8, %v3733_v7 }
 0x63d   : > { %5452 = vmatprep.mubr.bf16.mxu1 %v3736_v9 }
 0x63e   : > { %5453 = vmatmul.mubr.bf16.vlgmr.msra.gmra.mrb[20].mxu1 %v3737_v12 }
 0x711   : > { %v5454_v45 = vpop.f32.mrb[20].mxu1 }
 0x712   : > { %v3855_v13 = vsel %vm6124_vm9, %v5454_v45, 0.0  ;;  %v3836_v16 = vpop.f32.mrb[21].mxu1 }
 0x713   : > { %v3858_v5 = vadd.f32 %v3855_v13, %v6431_v11  ;;  %v3853_v6 = vsel %vm6130_vm10, %v3836_v16, 0.0  ;;  %v5455_v34 = vpop.f32.mrb[22].mxu1 }
 0x714   : > { %v3856_v18 = vadd.f32 %v3853_v6, %v6435_v59  ;;  %v3839_v19 = vpop.f32.mrb[23].mxu1 }
 0x715   : > { %3861 = vst [vmem:[#allocation3 + $0x17] sm:$0xff] %v3858_v5  ;;  %v3854_v20 = vsel %vm6136_vm11, %v3839_v19, 0.0 }
 0x716   : > { %3859 = vst [vmem:[#allocation3 + $0x7] sm:$0xff] %v3856_v18  ;;  %v3857_v21 = vadd.f32 %v3854_v20, %v6442_v62 }
 0x718   : > { %3860 = vst [vmem:[#allocation3 + $0xf] sm:$0xff] %v3857_v21 }
 0x71c   : > { %v3865_v22 = vld [vmem:[#allocation3 + $0x18] sm:$0xff] }
 0x71d   : > { %v3871_v11 = vmax.f32 %v3865_v22, 0.0  ;;  %v3862_v46 = vld [vmem:[#allocation3] sm:$0xff] }
 0x71e   : > { %v3868_v26 = vmax.f32 %v3862_v46, 0.0 }
 0x71f   : > { %3877 = vst [vmem:[%s6084_s23 + $0x18] sm:$0xff] %v3871_v11  ;;  %v3863_v10 = vld [vmem:[#allocation3 + $0x8] sm:$0xff]  ;;  %v3864_v23 = vld [vmem:[#allocation3 + $0x10] sm:$0xff] }
 0x720   : > { %3874 = vst [vmem:[%s6084_s23] sm:$0xff] %v3868_v26  ;;  %v3869_v59 = vmax.f32 %v3863_v10, 0.0  ;;  %v3870_v24 = vmax.f32 %v3864_v23, 0.0 }
 0x722   : > { %3875 = vst [vmem:[%s6084_s23 + $0x8] sm:$0xff] %v3869_v59  ;;  %3876 = vst [vmem:[%s6084_s23 + $0x10] sm:$0xff] %v3870_v24 }
 0x723 PF: > { %s15_s18 = sadd.s32 1, %s5779_s18  }
 0x724   : > { %p12_p4 = scmp.ge.s32.totalorder %s15_s18, 4  }
 0x726   :  { %14 = sbr.rel (!%p12_p4) target bundleno = 1 (0x1), region = 95 }

</bundles_post_ra>
